<compile_context>
chip_gen: v7x
topology: tpu7x:2x2x1
jax: 0.10.0
libtpu: 0.0.40
codegen_flags: <defaults>
</compile_context>

<pallas_src>
from math import sqrt

import jax
import jax.numpy as jnp
from jax.experimental import pallas as pl
from jax.experimental.pallas import tpu as pltpu

LRELU_SLOPE = 0.2
DEMOD_EPS = 1e-8
PAD_L = 8  # left zero-pad along W inside the conv scratch, kept 8-aligned so
           # the interior store is a sublane-aligned VMEM store.


def _leaky(v):
    return jnp.maximum(v, LRELU_SLOPE * v)


def _conv3x3(xm, taps_ref, pad_ref, c_out):
    """Shared-weight 3x3 'same' cross-correlation, channels-last.

    xm: [H, W, C_in] value; taps_ref: [9, C_in, C_out] ref (tap = ky*3 + kx);
    pad_ref: [H+2, W+2*PAD_L, C_in] zero-padded VMEM scratch.
    """
    h, w, c_in = xm.shape
    pad_ref[...] = jnp.zeros_like(pad_ref)
    pad_ref[1:h + 1, PAD_L:PAD_L + w, :] = xm
    acc = jnp.zeros((h * w, c_out), jnp.float32)
    for ky in range(3):
        for kx in range(3):
            patch = pad_ref[ky:ky + h, PAD_L - 1 + kx:PAD_L - 1 + kx + w, :]
            acc = acc + jnp.dot(patch.reshape(h * w, c_in),
                                taps_ref[ky * 3 + kx],
                                preferred_element_type=jnp.float32)
    return acc.reshape(h, w, c_out)


def genblock_kernel(w_ref, x_ref, n0_ref, n1_ref,
                    sw1_ref, sb1_ref, taps1_ref, wsq1_ref, sn1_ref, b1_ref,
                    sw2_ref, sb2_ref, taps2_ref, wsq2_ref, sn2_ref, b2_ref,
                    sw3_ref, sb3_ref, wrgb_ref, brgb_ref,
                    xout_ref, rgb_ref,
                    pad1_ref, pad2_ref):
    h, w = x_ref.shape[1], x_ref.shape[2]
    c_out = b1_ref.shape[1]

    wv = w_ref[0].astype(jnp.float32)           # [1, W_DIM]
    xin = x_ref[0].astype(jnp.float32)          # [H, W, C_in]

    # ---- StyleBlock 1 -------------------------------------------------------
    s1 = jnp.dot(wv, sw1_ref[...],
                 preferred_element_type=jnp.float32) + sb1_ref[...]   # [1, C_in]
    y = _conv3x3(xin * s1, taps1_ref, pad1_ref, c_out)                # [H, W, C_out]
    sig1 = jax.lax.rsqrt(jnp.dot(s1 * s1, wsq1_ref[...],
                                 preferred_element_type=jnp.float32) + DEMOD_EPS)
    y = y * sig1
    y = y + sn1_ref[...] * n0_ref[0]
    y = _leaky(y + b1_ref[...])

    # ---- StyleBlock 2 -------------------------------------------------------
    s2 = jnp.dot(wv, sw2_ref[...],
                 preferred_element_type=jnp.float32) + sb2_ref[...]   # [1, C_out]
    y2 = _conv3x3(y * s2, taps2_ref, pad2_ref, c_out)
    sig2 = jax.lax.rsqrt(jnp.dot(s2 * s2, wsq2_ref[...],
                                 preferred_element_type=jnp.float32) + DEMOD_EPS)
    y2 = y2 * sig2
    y2 = y2 + sn2_ref[...] * n1_ref[0]
    y2 = _leaky(y2 + b2_ref[...])
    xout_ref[0] = y2.astype(xout_ref.dtype)

    # ---- ToRGB (1x1 modulated conv, no demodulation) ------------------------
    s3 = jnp.dot(wv, sw3_ref[...],
                 preferred_element_type=jnp.float32) + sb3_ref[...]   # [1, C_out]
    zm = (y2 * s3).reshape(h * w, c_out)
    rgb = jnp.dot(zm, wrgb_ref[...],
                  preferred_element_type=jnp.float32).reshape(h, w, 3)
    rgb = _leaky(rgb + brgb_ref[...])
    rgb_ref[0] = rgb.astype(rgb_ref.dtype)


# -------------------------- wrapper-side folding -------------------------- #

def _fuse_style_linear(Wp, bp, We, be):
    """Fold frozen 'fresh Linear' projection + EqualizedWeight linear into one
    affine map: s = w @ sw + sb."""
    c = 1.0 / sqrt(We.shape[1])
    m = We.T * c                                 # [W_DIM, C]
    return Wp.T @ m, (bp @ m + be).reshape(1, -1)


def _conv_taps(Wc):
    """EqualizedWeight-scaled conv weights, tap-major [k*k, C_in, C_out], plus
    the per-(i, o) squared-weight sums used for demodulation."""
    c_out, c_in, kh, kw = Wc.shape
    ws = Wc * (1.0 / sqrt(c_in * kh * kw))
    taps = jnp.transpose(ws, (2, 3, 1, 0)).reshape(kh * kw, c_in, c_out)
    wsq = jnp.sum(ws * ws, axis=(2, 3)).T        # [C_in, C_out]
    return taps, wsq


def genblock_pallas(x_nchw, w_lat, noise, params):
    B, c_in, H, W = x_nchw.shape
    w_dim = w_lat.shape[1]
    p1, p2, prgb = params["style1"], params["style2"], params["to_rgb"]
    c_out = p1["bias"].shape[0]

    sw1, sbias1 = _fuse_style_linear(p1["Wp"], p1["bp"], p1["We"], p1["be"])
    sw2, sbias2 = _fuse_style_linear(p2["Wp"], p2["bp"], p2["We"], p2["be"])
    sw3, sbias3 = _fuse_style_linear(prgb["Wp"], prgb["bp"], prgb["We"], prgb["be"])
    taps1, wsq1 = _conv_taps(p1["Wc"])
    taps2, wsq2 = _conv_taps(p2["Wc"])
    wrgb = (prgb["Wc"] * (1.0 / sqrt(c_out)))[:, :, 0, 0].T          # [C_out, 3]

    # channels-last activations; style vector as [B, 1, W_DIM]
    x_nhwc = jnp.transpose(x_nchw, (0, 2, 3, 1))
    n0 = jnp.transpose(noise[0], (0, 2, 3, 1))
    n1 = jnp.transpose(noise[1], (0, 2, 3, 1))
    w3 = w_lat.reshape(B, 1, w_dim)

    args = [
        w3, x_nhwc, n0, n1,
        sw1, sbias1, taps1, wsq1, p1["scale_noise"].reshape(1, 1),
        p1["bias"].reshape(1, -1),
        sw2, sbias2, taps2, wsq2, p2["scale_noise"].reshape(1, 1),
        p2["bias"].reshape(1, -1),
        sw3, sbias3, wrgb, prgb["bias"].reshape(1, -1),
    ]

    def batch4(i):
        return (i, 0, 0, 0)

    def const2(i):
        return (0, 0)

    def const3(i):
        return (0, 0, 0)

    in_specs = [
        pl.BlockSpec((1, 1, w_dim), lambda i: (i, 0, 0)),
        pl.BlockSpec((1, H, W, c_in), batch4),
        pl.BlockSpec((1, H, W, 1), batch4),
        pl.BlockSpec((1, H, W, 1), batch4),
    ]
    for a in args[4:]:
        in_specs.append(pl.BlockSpec(a.shape, const3 if a.ndim == 3 else const2))

    xo, rgb = pl.pallas_call(
        genblock_kernel,
        grid=(B,),
        in_specs=in_specs,
        out_specs=[
            pl.BlockSpec((1, H, W, c_out), batch4),
            pl.BlockSpec((1, H, W, 3), batch4),
        ],
        out_shape=[
            jax.ShapeDtypeStruct((B, H, W, c_out), jnp.float32),
            jax.ShapeDtypeStruct((B, H, W, 3), jnp.float32),
        ],
        scratch_shapes=[
            pltpu.VMEM((H + 2, W + 2 * PAD_L, c_in), jnp.float32),
            pltpu.VMEM((H + 2, W + 2 * PAD_L, c_out), jnp.float32),
        ],
        compiler_params=pltpu.CompilerParams(
            dimension_semantics=("parallel",)),
    )(*args)

    # back to PyTorch NCHW layout
    return jnp.transpose(xo, (0, 3, 1, 2)), jnp.transpose(rgb, (0, 3, 1, 2))


# ------------------------------ parameters -------------------------------- #

def init_params(key, w_dim, c_in, c_out):
    """Deterministic parameters mirroring the PyTorch module's shapes.
    (PyTorch initialises scale_noise / conv biases to zero; small non-zero
    values are used here so every code path is exercised by the test.)"""
    keys = iter(jax.random.split(key, 17))
    bound = 1.0 / sqrt(w_dim)

    def style_block(cin, cout):
        return dict(
            Wp=jax.random.uniform(next(keys), (w_dim, w_dim), jnp.float32, -bound, bound),
            bp=jax.random.uniform(next(keys), (w_dim,), jnp.float32, -bound, bound),
            We=jax.random.normal(next(keys), (cin, w_dim), jnp.float32),
            be=jnp.ones((cin,), jnp.float32),                       # bias=1
            Wc=jax.random.normal(next(keys), (cout, cin, 3, 3), jnp.float32),
            scale_noise=0.1 * jax.random.normal(next(keys), (1,), jnp.float32),
            bias=0.1 * jax.random.normal(next(keys), (cout,), jnp.float32),
        )

    def to_rgb(cfeat):
        return dict(
            Wp=jax.random.uniform(next(keys), (w_dim, w_dim), jnp.float32, -bound, bound),
            bp=jax.random.uniform(next(keys), (w_dim,), jnp.float32, -bound, bound),
            We=jax.random.normal(next(keys), (cfeat, w_dim), jnp.float32),
            be=jnp.ones((cfeat,), jnp.float32),                     # bias=1
            Wc=jax.random.normal(next(keys), (3, cfeat, 1, 1), jnp.float32),
            bias=0.1 * jax.random.normal(next(keys), (3,), jnp.float32),
        )

    return dict(style1=style_block(c_in, c_out),
                style2=style_block(c_out, c_out),
                to_rgb=to_rgb(c_out))


# --------------------------- pure-JAX reference ---------------------------- #

def _equalized_linear_ref(x, Wp, bp, We, be):
    h = x @ Wp.T + bp
    return h @ (We * (1.0 / sqrt(We.shape[1]))).T + be


def _conv_modulate_ref(x, s, Wc, demodulate):
    c_out, c_in, kh, kw = Wc.shape
    weights = (Wc * (1.0 / sqrt(c_in * kh * kw)))[None] * s[:, None, :, None, None]
    if demodulate:
        sigma_inv = jax.lax.rsqrt(
            jnp.sum(weights ** 2, axis=(2, 3, 4), keepdims=True) + DEMOD_EPS)
        weights = weights * sigma_inv
    pad = (kh - 1) // 2

    def one(xb, wb):
        return jax.lax.conv_general_dilated(
            xb[None], wb, window_strides=(1, 1),
            padding=[(pad, pad), (pad, pad)],
            dimension_numbers=("NCHW", "OIHW", "NCHW"))[0]

    return jax.vmap(one)(x, weights)


def _leaky_ref(v):
    return jnp.where(v >= 0, v, LRELU_SLOPE * v)


def _style_block_ref(x, w_lat, noise, p):
    s = _equalized_linear_ref(w_lat, p["Wp"], p["bp"], p["We"], p["be"])
    x = _conv_modulate_ref(x, s, p["Wc"], demodulate=True)
    if noise is not None:
        x = x + p["scale_noise"][None, :, None, None] * noise
    return _leaky_ref(x + p["bias"][None, :, None, None])


def _to_rgb_ref(x, w_lat, p):
    s = _equalized_linear_ref(w_lat, p["Wp"], p["bp"], p["We"], p["be"])
    x = _conv_modulate_ref(x, s, p["Wc"], demodulate=False)
    return _leaky_ref(x + p["bias"][None, :, None, None])


def genblock_ref(x, w_lat, noise, params):
    x = _style_block_ref(x, w_lat, noise[0], params["style1"])
    x = _style_block_ref(x, w_lat, noise[1], params["style2"])
    return x, _to_rgb_ref(x, w_lat, params["to_rgb"])


if __name__ == "__main__":
    B, C_IN, C_OUT, H, W, W_DIM = 2, 4, 8, 16, 16, 32
    key = jax.random.PRNGKey(0)
    kx, kw, kn0, kn1, kp = jax.random.split(key, 5)
    x = jax.random.normal(kx, (B, C_IN, H, W), jnp.float32)
    w_lat = jax.random.normal(kw, (B, W_DIM), jnp.float32)
    noise = (jax.random.normal(kn0, (B, 1, H, W), jnp.float32),
             jax.random.normal(kn1, (B, 1, H, W), jnp.float32))
    params = init_params(kp, W_DIM, C_IN, C_OUT)

    run = jax.jit(genblock_pallas)
    x_out, rgb_out = jax.block_until_ready(run(x, w_lat, noise, params))

    x_ref, rgb_ref = genblock_ref(x, w_lat, noise, params)
    assert x_out.shape == (B, C_OUT, H, W) and rgb_out.shape == (B, 3, H, W)
    assert jnp.allclose(x_out, x_ref, atol=2e-3, rtol=2e-3), "x mismatch vs reference"
    assert jnp.allclose(rgb_out, rgb_ref, atol=2e-3, rtol=2e-3), "rgb mismatch vs reference"
    print("KERNEL_OK")
</pallas_src>

<mosaic_0001>
module attributes {stable_mosaic.version = 11 : i64} {
  func.func @genblock_kernel(%arg0: i32, %arg1: memref<1x1x32xf32, #tpu.memory_space<vmem>>, %arg2: memref<1x16x16x4xf32, #tpu.memory_space<vmem>>, %arg3: memref<1x16x16x1xf32, #tpu.memory_space<vmem>>, %arg4: memref<1x16x16x1xf32, #tpu.memory_space<vmem>>, %arg5: memref<32x4xf32, #tpu.memory_space<vmem>>, %arg6: memref<1x4xf32, #tpu.memory_space<vmem>>, %arg7: memref<9x4x8xf32, #tpu.memory_space<vmem>>, %arg8: memref<4x8xf32, #tpu.memory_space<vmem>>, %arg9: memref<1x1xf32, #tpu.memory_space<vmem>>, %arg10: memref<1x8xf32, #tpu.memory_space<vmem>>, %arg11: memref<32x8xf32, #tpu.memory_space<vmem>>, %arg12: memref<1x8xf32, #tpu.memory_space<vmem>>, %arg13: memref<9x8x8xf32, #tpu.memory_space<vmem>>, %arg14: memref<8x8xf32, #tpu.memory_space<vmem>>, %arg15: memref<1x1xf32, #tpu.memory_space<vmem>>, %arg16: memref<1x8xf32, #tpu.memory_space<vmem>>, %arg17: memref<32x8xf32, #tpu.memory_space<vmem>>, %arg18: memref<1x8xf32, #tpu.memory_space<vmem>>, %arg19: memref<8x3xf32, #tpu.memory_space<vmem>>, %arg20: memref<1x3xf32, #tpu.memory_space<vmem>>, %arg21: memref<1x16x16x8xf32, #tpu.memory_space<vmem>>, %arg22: memref<1x16x16x3xf32, #tpu.memory_space<vmem>>, %arg23: memref<18x32x4xf32, #tpu.memory_space<vmem>>, %arg24: memref<18x32x8xf32, #tpu.memory_space<vmem>>) attributes {dimension_semantics = [#tpu.dimension_semantics<parallel>], iteration_bounds = array<i64: 2>, scalar_prefetch = 0 : i64, scratch_operands = 2 : i64, tpu.core_type = #tpu.core_type<tc>, window_params = [{transform_indices = @transform_0, window_bounds = array<i64: 1, 1, 32>}, {transform_indices = @transform_1, window_bounds = array<i64: 1, 16, 16, 4>}, {transform_indices = @transform_2, window_bounds = array<i64: 1, 16, 16, 1>}, {transform_indices = @transform_3, window_bounds = array<i64: 1, 16, 16, 1>}, {pipeline_mode = #tpu.pipeline_mode<synchronous>, transform_indices = @transform_4, window_bounds = array<i64: 32, 4>}, {pipeline_mode = #tpu.pipeline_mode<synchronous>, transform_indices = @transform_5, window_bounds = array<i64: 1, 4>}, {pipeline_mode = #tpu.pipeline_mode<synchronous>, transform_indices = @transform_6, window_bounds = array<i64: 9, 4, 8>}, {pipeline_mode = #tpu.pipeline_mode<synchronous>, transform_indices = @transform_7, window_bounds = array<i64: 4, 8>}, {pipeline_mode = #tpu.pipeline_mode<synchronous>, transform_indices = @transform_8, window_bounds = array<i64: 1, 1>}, {pipeline_mode = #tpu.pipeline_mode<synchronous>, transform_indices = @transform_9, window_bounds = array<i64: 1, 8>}, {pipeline_mode = #tpu.pipeline_mode<synchronous>, transform_indices = @transform_10, window_bounds = array<i64: 32, 8>}, {pipeline_mode = #tpu.pipeline_mode<synchronous>, transform_indices = @transform_11, window_bounds = array<i64: 1, 8>}, {pipeline_mode = #tpu.pipeline_mode<synchronous>, transform_indices = @transform_12, window_bounds = array<i64: 9, 8, 8>}, {pipeline_mode = #tpu.pipeline_mode<synchronous>, transform_indices = @transform_13, window_bounds = array<i64: 8, 8>}, {pipeline_mode = #tpu.pipeline_mode<synchronous>, transform_indices = @transform_14, window_bounds = array<i64: 1, 1>}, {pipeline_mode = #tpu.pipeline_mode<synchronous>, transform_indices = @transform_15, window_bounds = array<i64: 1, 8>}, {pipeline_mode = #tpu.pipeline_mode<synchronous>, transform_indices = @transform_16, window_bounds = array<i64: 32, 8>}, {pipeline_mode = #tpu.pipeline_mode<synchronous>, transform_indices = @transform_17, window_bounds = array<i64: 1, 8>}, {pipeline_mode = #tpu.pipeline_mode<synchronous>, transform_indices = @transform_18, window_bounds = array<i64: 8, 3>}, {pipeline_mode = #tpu.pipeline_mode<synchronous>, transform_indices = @transform_19, window_bounds = array<i64: 1, 3>}, {transform_indices = @transform_20, window_bounds = array<i64: 1, 16, 16, 8>}, {transform_indices = @transform_21, window_bounds = array<i64: 1, 16, 16, 3>}]} {
    %c0 = arith.constant 0 : index
    %c0_0 = arith.constant 0 : index
    %c0_1 = arith.constant 0 : index
    %0 = vector.load %arg1[%c0, %c0_0, %c0_1] : memref<1x1x32xf32, #tpu.memory_space<vmem>>, vector<1x1x32xf32>
    %1 = vector.shape_cast %0 : vector<1x1x32xf32> to vector<1x32xf32>
    %c0_2 = arith.constant 0 : index
    %c0_3 = arith.constant 0 : index
    %c0_4 = arith.constant 0 : index
    %c0_5 = arith.constant 0 : index
    %2 = vector.load %arg2[%c0_2, %c0_3, %c0_4, %c0_5] : memref<1x16x16x4xf32, #tpu.memory_space<vmem>>, vector<1x16x16x4xf32>
    %3 = vector.shape_cast %2 : vector<1x16x16x4xf32> to vector<16x16x4xf32>
    %c0_6 = arith.constant 0 : index
    %c0_7 = arith.constant 0 : index
    %4 = vector.load %arg5[%c0_6, %c0_7] : memref<32x4xf32, #tpu.memory_space<vmem>>, vector<32x4xf32>
    %cst = arith.constant dense<0.000000e+00> : vector<1x4xf32>
    %5 = tpu.matmul %1, %4, %cst {dimension_numbers = #tpu.dot_dimension_numbers<[1], [0], [0], [1], [0, 0, 1, 1], [], []>} : vector<1x32xf32>, vector<32x4xf32>, vector<1x4xf32> -> vector<1x4xf32>
    %c0_8 = arith.constant 0 : index
    %c0_9 = arith.constant 0 : index
    %6 = vector.load %arg6[%c0_8, %c0_9] : memref<1x4xf32, #tpu.memory_space<vmem>>, vector<1x4xf32>
    %7 = arith.addf %5, %6 : vector<1x4xf32>
    %8 = vector.shape_cast %7 : vector<1x4xf32> to vector<1x1x4xf32>
    %9 = vector.broadcast %8 : vector<1x1x4xf32> to vector<16x16x4xf32>
    %10 = arith.mulf %3, %9 : vector<16x16x4xf32>
    %cst_10 = arith.constant 0.000000e+00 : f32
    %11 = vector.broadcast %cst_10 : f32 to vector<18x32x4xf32>
    %c0_11 = arith.constant 0 : index
    %c0_12 = arith.constant 0 : index
    %c0_13 = arith.constant 0 : index
    %12 = vector.load %arg23[%c0_11, %c0_12, %c0_13] : memref<18x32x4xf32, #tpu.memory_space<vmem>>, vector<18x32x4xf32>
    tpu.vector_store %arg23[%c0_11, %c0_12, %c0_13], %11 {strides = array<i32>} : memref<18x32x4xf32, #tpu.memory_space<vmem>>, vector<18x32x4xf32>,
    %c1 = arith.constant 1 : index
    %c8 = arith.constant 8 : index
    %c0_14 = arith.constant 0 : index
    %13 = vector.load %arg23[%c1, %c8, %c0_14] : memref<18x32x4xf32, #tpu.memory_space<vmem>>, vector<16x16x4xf32>
    tpu.vector_store %arg23[%c1, %c8, %c0_14], %10 {strides = array<i32>} : memref<18x32x4xf32, #tpu.memory_space<vmem>>, vector<16x16x4xf32>,
    %cst_15 = arith.constant 0.000000e+00 : f32
    %14 = vector.broadcast %cst_15 : f32 to vector<256x8xf32>
    %c0_16 = arith.constant 0 : index
    %c7 = arith.constant 7 : index
    %c0_17 = arith.constant 0 : index
    %15 = vector.load %arg23[%c0_16, %c7, %c0_17] : memref<18x32x4xf32, #tpu.memory_space<vmem>>, vector<16x16x4xf32>
    %16 = vector.shape_cast %15 : vector<16x16x4xf32> to vector<256x4xf32>
    %c0_18 = arith.constant 0 : index
    %c0_19 = arith.constant 0 : index
    %c0_20 = arith.constant 0 : index
    %17 = vector.load %arg7[%c0_18, %c0_19, %c0_20] : memref<9x4x8xf32, #tpu.memory_space<vmem>>, vector<1x4x8xf32>
    %18 = vector.shape_cast %17 : vector<1x4x8xf32> to vector<4x8xf32>
    %cst_21 = arith.constant dense<0.000000e+00> : vector<256x8xf32>
    %19 = tpu.matmul %16, %18, %cst_21 {dimension_numbers = #tpu.dot_dimension_numbers<[1], [0], [0], [1], [0, 0, 1, 1], [], []>} : vector<256x4xf32>, vector<4x8xf32>, vector<256x8xf32> -> vector<256x8xf32>
    %20 = arith.addf %14, %19 : vector<256x8xf32>
    %c0_22 = arith.constant 0 : index
    %c8_23 = arith.constant 8 : index
    %c0_24 = arith.constant 0 : index
    %21 = vector.load %arg23[%c0_22, %c8_23, %c0_24] : memref<18x32x4xf32, #tpu.memory_space<vmem>>, vector<16x16x4xf32>
    %22 = vector.shape_cast %21 : vector<16x16x4xf32> to vector<256x4xf32>
    %c1_25 = arith.constant 1 : index
    %c0_26 = arith.constant 0 : index
    %c0_27 = arith.constant 0 : index
    %23 = vector.load %arg7[%c1_25, %c0_26, %c0_27] : memref<9x4x8xf32, #tpu.memory_space<vmem>>, vector<1x4x8xf32>
    %24 = vector.shape_cast %23 : vector<1x4x8xf32> to vector<4x8xf32>
    %cst_28 = arith.constant dense<0.000000e+00> : vector<256x8xf32>
    %25 = tpu.matmul %22, %24, %cst_28 {dimension_numbers = #tpu.dot_dimension_numbers<[1], [0], [0], [1], [0, 0, 1, 1], [], []>} : vector<256x4xf32>, vector<4x8xf32>, vector<256x8xf32> -> vector<256x8xf32>
    %26 = arith.addf %20, %25 : vector<256x8xf32>
    %c0_29 = arith.constant 0 : index
    %c9 = arith.constant 9 : index
    %c0_30 = arith.constant 0 : index
    %27 = vector.load %arg23[%c0_29, %c9, %c0_30] : memref<18x32x4xf32, #tpu.memory_space<vmem>>, vector<16x16x4xf32>
    %28 = vector.shape_cast %27 : vector<16x16x4xf32> to vector<256x4xf32>
    %c2 = arith.constant 2 : index
    %c0_31 = arith.constant 0 : index
    %c0_32 = arith.constant 0 : index
    %29 = vector.load %arg7[%c2, %c0_31, %c0_32] : memref<9x4x8xf32, #tpu.memory_space<vmem>>, vector<1x4x8xf32>
    %30 = vector.shape_cast %29 : vector<1x4x8xf32> to vector<4x8xf32>
    %cst_33 = arith.constant dense<0.000000e+00> : vector<256x8xf32>
    %31 = tpu.matmul %28, %30, %cst_33 {dimension_numbers = #tpu.dot_dimension_numbers<[1], [0], [0], [1], [0, 0, 1, 1], [], []>} : vector<256x4xf32>, vector<4x8xf32>, vector<256x8xf32> -> vector<256x8xf32>
    %32 = arith.addf %26, %31 : vector<256x8xf32>
    %c1_34 = arith.constant 1 : index
    %c7_35 = arith.constant 7 : index
    %c0_36 = arith.constant 0 : index
    %33 = vector.load %arg23[%c1_34, %c7_35, %c0_36] : memref<18x32x4xf32, #tpu.memory_space<vmem>>, vector<16x16x4xf32>
    %34 = vector.shape_cast %33 : vector<16x16x4xf32> to vector<256x4xf32>
    %c3 = arith.constant 3 : index
    %c0_37 = arith.constant 0 : index
    %c0_38 = arith.constant 0 : index
    %35 = vector.load %arg7[%c3, %c0_37, %c0_38] : memref<9x4x8xf32, #tpu.memory_space<vmem>>, vector<1x4x8xf32>
    %36 = vector.shape_cast %35 : vector<1x4x8xf32> to vector<4x8xf32>
    %cst_39 = arith.constant dense<0.000000e+00> : vector<256x8xf32>
    %37 = tpu.matmul %34, %36, %cst_39 {dimension_numbers = #tpu.dot_dimension_numbers<[1], [0], [0], [1], [0, 0, 1, 1], [], []>} : vector<256x4xf32>, vector<4x8xf32>, vector<256x8xf32> -> vector<256x8xf32>
    %38 = arith.addf %32, %37 : vector<256x8xf32>
    %c1_40 = arith.constant 1 : index
    %c8_41 = arith.constant 8 : index
    %c0_42 = arith.constant 0 : index
    %39 = vector.load %arg23[%c1_40, %c8_41, %c0_42] : memref<18x32x4xf32, #tpu.memory_space<vmem>>, vector<16x16x4xf32>
    %40 = vector.shape_cast %39 : vector<16x16x4xf32> to vector<256x4xf32>
    %c4 = arith.constant 4 : index
    %c0_43 = arith.constant 0 : index
    %c0_44 = arith.constant 0 : index
    %41 = vector.load %arg7[%c4, %c0_43, %c0_44] : memref<9x4x8xf32, #tpu.memory_space<vmem>>, vector<1x4x8xf32>
    %42 = vector.shape_cast %41 : vector<1x4x8xf32> to vector<4x8xf32>
    %cst_45 = arith.constant dense<0.000000e+00> : vector<256x8xf32>
    %43 = tpu.matmul %40, %42, %cst_45 {dimension_numbers = #tpu.dot_dimension_numbers<[1], [0], [0], [1], [0, 0, 1, 1], [], []>} : vector<256x4xf32>, vector<4x8xf32>, vector<256x8xf32> -> vector<256x8xf32>
    %44 = arith.addf %38, %43 : vector<256x8xf32>
    %c1_46 = arith.constant 1 : index
    %c9_47 = arith.constant 9 : index
    %c0_48 = arith.constant 0 : index
    %45 = vector.load %arg23[%c1_46, %c9_47, %c0_48] : memref<18x32x4xf32, #tpu.memory_space<vmem>>, vector<16x16x4xf32>
    %46 = vector.shape_cast %45 : vector<16x16x4xf32> to vector<256x4xf32>
    %c5 = arith.constant 5 : index
    %c0_49 = arith.constant 0 : index
    %c0_50 = arith.constant 0 : index
    %47 = vector.load %arg7[%c5, %c0_49, %c0_50] : memref<9x4x8xf32, #tpu.memory_space<vmem>>, vector<1x4x8xf32>
    %48 = vector.shape_cast %47 : vector<1x4x8xf32> to vector<4x8xf32>
    %cst_51 = arith.constant dense<0.000000e+00> : vector<256x8xf32>
    %49 = tpu.matmul %46, %48, %cst_51 {dimension_numbers = #tpu.dot_dimension_numbers<[1], [0], [0], [1], [0, 0, 1, 1], [], []>} : vector<256x4xf32>, vector<4x8xf32>, vector<256x8xf32> -> vector<256x8xf32>
    %50 = arith.addf %44, %49 : vector<256x8xf32>
    %c2_52 = arith.constant 2 : index
    %c7_53 = arith.constant 7 : index
    %c0_54 = arith.constant 0 : index
    %51 = vector.load %arg23[%c2_52, %c7_53, %c0_54] : memref<18x32x4xf32, #tpu.memory_space<vmem>>, vector<16x16x4xf32>
    %52 = vector.shape_cast %51 : vector<16x16x4xf32> to vector<256x4xf32>
    %c6 = arith.constant 6 : index
    %c0_55 = arith.constant 0 : index
    %c0_56 = arith.constant 0 : index
    %53 = vector.load %arg7[%c6, %c0_55, %c0_56] : memref<9x4x8xf32, #tpu.memory_space<vmem>>, vector<1x4x8xf32>
    %54 = vector.shape_cast %53 : vector<1x4x8xf32> to vector<4x8xf32>
    %cst_57 = arith.constant dense<0.000000e+00> : vector<256x8xf32>
    %55 = tpu.matmul %52, %54, %cst_57 {dimension_numbers = #tpu.dot_dimension_numbers<[1], [0], [0], [1], [0, 0, 1, 1], [], []>} : vector<256x4xf32>, vector<4x8xf32>, vector<256x8xf32> -> vector<256x8xf32>
    %56 = arith.addf %50, %55 : vector<256x8xf32>
    %c2_58 = arith.constant 2 : index
    %c8_59 = arith.constant 8 : index
    %c0_60 = arith.constant 0 : index
    %57 = vector.load %arg23[%c2_58, %c8_59, %c0_60] : memref<18x32x4xf32, #tpu.memory_space<vmem>>, vector<16x16x4xf32>
    %58 = vector.shape_cast %57 : vector<16x16x4xf32> to vector<256x4xf32>
    %c7_61 = arith.constant 7 : index
    %c0_62 = arith.constant 0 : index
    %c0_63 = arith.constant 0 : index
    %59 = vector.load %arg7[%c7_61, %c0_62, %c0_63] : memref<9x4x8xf32, #tpu.memory_space<vmem>>, vector<1x4x8xf32>
    %60 = vector.shape_cast %59 : vector<1x4x8xf32> to vector<4x8xf32>
    %cst_64 = arith.constant dense<0.000000e+00> : vector<256x8xf32>
    %61 = tpu.matmul %58, %60, %cst_64 {dimension_numbers = #tpu.dot_dimension_numbers<[1], [0], [0], [1], [0, 0, 1, 1], [], []>} : vector<256x4xf32>, vector<4x8xf32>, vector<256x8xf32> -> vector<256x8xf32>
    %62 = arith.addf %56, %61 : vector<256x8xf32>
    %c2_65 = arith.constant 2 : index
    %c9_66 = arith.constant 9 : index
    %c0_67 = arith.constant 0 : index
    %63 = vector.load %arg23[%c2_65, %c9_66, %c0_67] : memref<18x32x4xf32, #tpu.memory_space<vmem>>, vector<16x16x4xf32>
    %64 = vector.shape_cast %63 : vector<16x16x4xf32> to vector<256x4xf32>
    %c8_68 = arith.constant 8 : index
    %c0_69 = arith.constant 0 : index
    %c0_70 = arith.constant 0 : index
    %65 = vector.load %arg7[%c8_68, %c0_69, %c0_70] : memref<9x4x8xf32, #tpu.memory_space<vmem>>, vector<1x4x8xf32>
    %66 = vector.shape_cast %65 : vector<1x4x8xf32> to vector<4x8xf32>
    %cst_71 = arith.constant dense<0.000000e+00> : vector<256x8xf32>
    %67 = tpu.matmul %64, %66, %cst_71 {dimension_numbers = #tpu.dot_dimension_numbers<[1], [0], [0], [1], [0, 0, 1, 1], [], []>} : vector<256x4xf32>, vector<4x8xf32>, vector<256x8xf32> -> vector<256x8xf32>
    %68 = arith.addf %62, %67 : vector<256x8xf32>
    %69 = vector.shape_cast %68 : vector<256x8xf32> to vector<16x16x8xf32>
    %70 = arith.mulf %7, %7 : vector<1x4xf32>
    %c0_72 = arith.constant 0 : index
    %c0_73 = arith.constant 0 : index
    %71 = vector.load %arg8[%c0_72, %c0_73] : memref<4x8xf32, #tpu.memory_space<vmem>>, vector<4x8xf32>
    %cst_74 = arith.constant dense<0.000000e+00> : vector<1x8xf32>
    %72 = tpu.matmul %70, %71, %cst_74 {dimension_numbers = #tpu.dot_dimension_numbers<[1], [0], [0], [1], [0, 0, 1, 1], [], []>} : vector<1x4xf32>, vector<4x8xf32>, vector<1x8xf32> -> vector<1x8xf32>
    %cst_75 = arith.constant 9.99999993E-9 : f32
    %73 = vector.broadcast %cst_75 : f32 to vector<1x8xf32>
    %74 = arith.addf %72, %73 : vector<1x8xf32>
    %75 = math.rsqrt %74 : vector<1x8xf32>
    %76 = vector.shape_cast %75 : vector<1x8xf32> to vector<1x1x8xf32>
    %77 = vector.broadcast %76 : vector<1x1x8xf32> to vector<16x16x8xf32>
    %78 = arith.mulf %69, %77 : vector<16x16x8xf32>
    %c0_76 = arith.constant 0 : index
    %c0_77 = arith.constant 0 : index
    %79 = vector.load %arg9[%c0_76, %c0_77] : memref<1x1xf32, #tpu.memory_space<vmem>>, vector<1x1xf32>
    %c0_78 = arith.constant 0 : index
    %c0_79 = arith.constant 0 : index
    %c0_80 = arith.constant 0 : index
    %c0_81 = arith.constant 0 : index
    %80 = vector.load %arg3[%c0_78, %c0_79, %c0_80, %c0_81] : memref<1x16x16x1xf32, #tpu.memory_space<vmem>>, vector<1x16x16x1xf32>
    %81 = vector.shape_cast %80 : vector<1x16x16x1xf32> to vector<16x16x1xf32>
    %82 = vector.shape_cast %79 : vector<1x1xf32> to vector<1x1x1xf32>
    %83 = vector.broadcast %82 : vector<1x1x1xf32> to vector<16x16x1xf32>
    %84 = arith.mulf %83, %81 : vector<16x16x1xf32>
    %85 = vector.broadcast %84 : vector<16x16x1xf32> to vector<16x16x8xf32>
    %86 = arith.addf %78, %85 : vector<16x16x8xf32>
    %c0_82 = arith.constant 0 : index
    %c0_83 = arith.constant 0 : index
    %87 = vector.load %arg10[%c0_82, %c0_83] : memref<1x8xf32, #tpu.memory_space<vmem>>, vector<1x8xf32>
    %88 = vector.shape_cast %87 : vector<1x8xf32> to vector<1x1x8xf32>
    %89 = vector.broadcast %88 : vector<1x1x8xf32> to vector<16x16x8xf32>
    %90 = arith.addf %86, %89 : vector<16x16x8xf32>
    %cst_84 = arith.constant 2.000000e-01 : f32
    %91 = vector.broadcast %cst_84 : f32 to vector<16x16x8xf32>
    %92 = arith.mulf %91, %90 : vector<16x16x8xf32>
    %93 = arith.maximumf %90, %92 : vector<16x16x8xf32>
    %c0_85 = arith.constant 0 : index
    %c0_86 = arith.constant 0 : index
    %94 = vector.load %arg11[%c0_85, %c0_86] : memref<32x8xf32, #tpu.memory_space<vmem>>, vector<32x8xf32>
    %cst_87 = arith.constant dense<0.000000e+00> : vector<1x8xf32>
    %95 = tpu.matmul %1, %94, %cst_87 {dimension_numbers = #tpu.dot_dimension_numbers<[1], [0], [0], [1], [0, 0, 1, 1], [], []>} : vector<1x32xf32>, vector<32x8xf32>, vector<1x8xf32> -> vector<1x8xf32>
    %c0_88 = arith.constant 0 : index
    %c0_89 = arith.constant 0 : index
    %96 = vector.load %arg12[%c0_88, %c0_89] : memref<1x8xf32, #tpu.memory_space<vmem>>, vector<1x8xf32>
    %97 = arith.addf %95, %96 : vector<1x8xf32>
    %98 = vector.shape_cast %97 : vector<1x8xf32> to vector<1x1x8xf32>
    %99 = vector.broadcast %98 : vector<1x1x8xf32> to vector<16x16x8xf32>
    %100 = arith.mulf %93, %99 : vector<16x16x8xf32>
    %cst_90 = arith.constant 0.000000e+00 : f32
    %101 = vector.broadcast %cst_90 : f32 to vector<18x32x8xf32>
    %c0_91 = arith.constant 0 : index
    %c0_92 = arith.constant 0 : index
    %c0_93 = arith.constant 0 : index
    %102 = vector.load %arg24[%c0_91, %c0_92, %c0_93] : memref<18x32x8xf32, #tpu.memory_space<vmem>>, vector<18x32x8xf32>
    tpu.vector_store %arg24[%c0_91, %c0_92, %c0_93], %101 {strides = array<i32>} : memref<18x32x8xf32, #tpu.memory_space<vmem>>, vector<18x32x8xf32>,
    %c1_94 = arith.constant 1 : index
    %c8_95 = arith.constant 8 : index
    %c0_96 = arith.constant 0 : index
    %103 = vector.load %arg24[%c1_94, %c8_95, %c0_96] : memref<18x32x8xf32, #tpu.memory_space<vmem>>, vector<16x16x8xf32>
    tpu.vector_store %arg24[%c1_94, %c8_95, %c0_96], %100 {strides = array<i32>} : memref<18x32x8xf32, #tpu.memory_space<vmem>>, vector<16x16x8xf32>,
    %cst_97 = arith.constant 0.000000e+00 : f32
    %104 = vector.broadcast %cst_97 : f32 to vector<256x8xf32>
    %c0_98 = arith.constant 0 : index
    %c7_99 = arith.constant 7 : index
    %c0_100 = arith.constant 0 : index
    %105 = vector.load %arg24[%c0_98, %c7_99, %c0_100] : memref<18x32x8xf32, #tpu.memory_space<vmem>>, vector<16x16x8xf32>
    %106 = vector.shape_cast %105 : vector<16x16x8xf32> to vector<256x8xf32>
    %c0_101 = arith.constant 0 : index
    %c0_102 = arith.constant 0 : index
    %c0_103 = arith.constant 0 : index
    %107 = vector.load %arg13[%c0_101, %c0_102, %c0_103] : memref<9x8x8xf32, #tpu.memory_space<vmem>>, vector<1x8x8xf32>
    %108 = vector.shape_cast %107 : vector<1x8x8xf32> to vector<8x8xf32>
    %cst_104 = arith.constant dense<0.000000e+00> : vector<256x8xf32>
    %109 = tpu.matmul %106, %108, %cst_104 {dimension_numbers = #tpu.dot_dimension_numbers<[1], [0], [0], [1], [0, 0, 1, 1], [], []>} : vector<256x8xf32>, vector<8x8xf32>, vector<256x8xf32> -> vector<256x8xf32>
    %110 = arith.addf %104, %109 : vector<256x8xf32>
    %c0_105 = arith.constant 0 : index
    %c8_106 = arith.constant 8 : index
    %c0_107 = arith.constant 0 : index
    %111 = vector.load %arg24[%c0_105, %c8_106, %c0_107] : memref<18x32x8xf32, #tpu.memory_space<vmem>>, vector<16x16x8xf32>
    %112 = vector.shape_cast %111 : vector<16x16x8xf32> to vector<256x8xf32>
    %c1_108 = arith.constant 1 : index
    %c0_109 = arith.constant 0 : index
    %c0_110 = arith.constant 0 : index
    %113 = vector.load %arg13[%c1_108, %c0_109, %c0_110] : memref<9x8x8xf32, #tpu.memory_space<vmem>>, vector<1x8x8xf32>
    %114 = vector.shape_cast %113 : vector<1x8x8xf32> to vector<8x8xf32>
    %cst_111 = arith.constant dense<0.000000e+00> : vector<256x8xf32>
    %115 = tpu.matmul %112, %114, %cst_111 {dimension_numbers = #tpu.dot_dimension_numbers<[1], [0], [0], [1], [0, 0, 1, 1], [], []>} : vector<256x8xf32>, vector<8x8xf32>, vector<256x8xf32> -> vector<256x8xf32>
    %116 = arith.addf %110, %115 : vector<256x8xf32>
    %c0_112 = arith.constant 0 : index
    %c9_113 = arith.constant 9 : index
    %c0_114 = arith.constant 0 : index
    %117 = vector.load %arg24[%c0_112, %c9_113, %c0_114] : memref<18x32x8xf32, #tpu.memory_space<vmem>>, vector<16x16x8xf32>
    %118 = vector.shape_cast %117 : vector<16x16x8xf32> to vector<256x8xf32>
    %c2_115 = arith.constant 2 : index
    %c0_116 = arith.constant 0 : index
    %c0_117 = arith.constant 0 : index
    %119 = vector.load %arg13[%c2_115, %c0_116, %c0_117] : memref<9x8x8xf32, #tpu.memory_space<vmem>>, vector<1x8x8xf32>
    %120 = vector.shape_cast %119 : vector<1x8x8xf32> to vector<8x8xf32>
    %cst_118 = arith.constant dense<0.000000e+00> : vector<256x8xf32>
    %121 = tpu.matmul %118, %120, %cst_118 {dimension_numbers = #tpu.dot_dimension_numbers<[1], [0], [0], [1], [0, 0, 1, 1], [], []>} : vector<256x8xf32>, vector<8x8xf32>, vector<256x8xf32> -> vector<256x8xf32>
    %122 = arith.addf %116, %121 : vector<256x8xf32>
    %c1_119 = arith.constant 1 : index
    %c7_120 = arith.constant 7 : index
    %c0_121 = arith.constant 0 : index
    %123 = vector.load %arg24[%c1_119, %c7_120, %c0_121] : memref<18x32x8xf32, #tpu.memory_space<vmem>>, vector<16x16x8xf32>
    %124 = vector.shape_cast %123 : vector<16x16x8xf32> to vector<256x8xf32>
    %c3_122 = arith.constant 3 : index
    %c0_123 = arith.constant 0 : index
    %c0_124 = arith.constant 0 : index
    %125 = vector.load %arg13[%c3_122, %c0_123, %c0_124] : memref<9x8x8xf32, #tpu.memory_space<vmem>>, vector<1x8x8xf32>
    %126 = vector.shape_cast %125 : vector<1x8x8xf32> to vector<8x8xf32>
    %cst_125 = arith.constant dense<0.000000e+00> : vector<256x8xf32>
    %127 = tpu.matmul %124, %126, %cst_125 {dimension_numbers = #tpu.dot_dimension_numbers<[1], [0], [0], [1], [0, 0, 1, 1], [], []>} : vector<256x8xf32>, vector<8x8xf32>, vector<256x8xf32> -> vector<256x8xf32>
    %128 = arith.addf %122, %127 : vector<256x8xf32>
    %c1_126 = arith.constant 1 : index
    %c8_127 = arith.constant 8 : index
    %c0_128 = arith.constant 0 : index
    %129 = vector.load %arg24[%c1_126, %c8_127, %c0_128] : memref<18x32x8xf32, #tpu.memory_space<vmem>>, vector<16x16x8xf32>
    %130 = vector.shape_cast %129 : vector<16x16x8xf32> to vector<256x8xf32>
    %c4_129 = arith.constant 4 : index
    %c0_130 = arith.constant 0 : index
    %c0_131 = arith.constant 0 : index
    %131 = vector.load %arg13[%c4_129, %c0_130, %c0_131] : memref<9x8x8xf32, #tpu.memory_space<vmem>>, vector<1x8x8xf32>
    %132 = vector.shape_cast %131 : vector<1x8x8xf32> to vector<8x8xf32>
    %cst_132 = arith.constant dense<0.000000e+00> : vector<256x8xf32>
    %133 = tpu.matmul %130, %132, %cst_132 {dimension_numbers = #tpu.dot_dimension_numbers<[1], [0], [0], [1], [0, 0, 1, 1], [], []>} : vector<256x8xf32>, vector<8x8xf32>, vector<256x8xf32> -> vector<256x8xf32>
    %134 = arith.addf %128, %133 : vector<256x8xf32>
    %c1_133 = arith.constant 1 : index
    %c9_134 = arith.constant 9 : index
    %c0_135 = arith.constant 0 : index
    %135 = vector.load %arg24[%c1_133, %c9_134, %c0_135] : memref<18x32x8xf32, #tpu.memory_space<vmem>>, vector<16x16x8xf32>
    %136 = vector.shape_cast %135 : vector<16x16x8xf32> to vector<256x8xf32>
    %c5_136 = arith.constant 5 : index
    %c0_137 = arith.constant 0 : index
    %c0_138 = arith.constant 0 : index
    %137 = vector.load %arg13[%c5_136, %c0_137, %c0_138] : memref<9x8x8xf32, #tpu.memory_space<vmem>>, vector<1x8x8xf32>
    %138 = vector.shape_cast %137 : vector<1x8x8xf32> to vector<8x8xf32>
    %cst_139 = arith.constant dense<0.000000e+00> : vector<256x8xf32>
    %139 = tpu.matmul %136, %138, %cst_139 {dimension_numbers = #tpu.dot_dimension_numbers<[1], [0], [0], [1], [0, 0, 1, 1], [], []>} : vector<256x8xf32>, vector<8x8xf32>, vector<256x8xf32> -> vector<256x8xf32>
    %140 = arith.addf %134, %139 : vector<256x8xf32>
    %c2_140 = arith.constant 2 : index
    %c7_141 = arith.constant 7 : index
    %c0_142 = arith.constant 0 : index
    %141 = vector.load %arg24[%c2_140, %c7_141, %c0_142] : memref<18x32x8xf32, #tpu.memory_space<vmem>>, vector<16x16x8xf32>
    %142 = vector.shape_cast %141 : vector<16x16x8xf32> to vector<256x8xf32>
    %c6_143 = arith.constant 6 : index
    %c0_144 = arith.constant 0 : index
    %c0_145 = arith.constant 0 : index
    %143 = vector.load %arg13[%c6_143, %c0_144, %c0_145] : memref<9x8x8xf32, #tpu.memory_space<vmem>>, vector<1x8x8xf32>
    %144 = vector.shape_cast %143 : vector<1x8x8xf32> to vector<8x8xf32>
    %cst_146 = arith.constant dense<0.000000e+00> : vector<256x8xf32>
    %145 = tpu.matmul %142, %144, %cst_146 {dimension_numbers = #tpu.dot_dimension_numbers<[1], [0], [0], [1], [0, 0, 1, 1], [], []>} : vector<256x8xf32>, vector<8x8xf32>, vector<256x8xf32> -> vector<256x8xf32>
    %146 = arith.addf %140, %145 : vector<256x8xf32>
    %c2_147 = arith.constant 2 : index
    %c8_148 = arith.constant 8 : index
    %c0_149 = arith.constant 0 : index
    %147 = vector.load %arg24[%c2_147, %c8_148, %c0_149] : memref<18x32x8xf32, #tpu.memory_space<vmem>>, vector<16x16x8xf32>
    %148 = vector.shape_cast %147 : vector<16x16x8xf32> to vector<256x8xf32>
    %c7_150 = arith.constant 7 : index
    %c0_151 = arith.constant 0 : index
    %c0_152 = arith.constant 0 : index
    %149 = vector.load %arg13[%c7_150, %c0_151, %c0_152] : memref<9x8x8xf32, #tpu.memory_space<vmem>>, vector<1x8x8xf32>
    %150 = vector.shape_cast %149 : vector<1x8x8xf32> to vector<8x8xf32>
    %cst_153 = arith.constant dense<0.000000e+00> : vector<256x8xf32>
    %151 = tpu.matmul %148, %150, %cst_153 {dimension_numbers = #tpu.dot_dimension_numbers<[1], [0], [0], [1], [0, 0, 1, 1], [], []>} : vector<256x8xf32>, vector<8x8xf32>, vector<256x8xf32> -> vector<256x8xf32>
    %152 = arith.addf %146, %151 : vector<256x8xf32>
    %c2_154 = arith.constant 2 : index
    %c9_155 = arith.constant 9 : index
    %c0_156 = arith.constant 0 : index
    %153 = vector.load %arg24[%c2_154, %c9_155, %c0_156] : memref<18x32x8xf32, #tpu.memory_space<vmem>>, vector<16x16x8xf32>
    %154 = vector.shape_cast %153 : vector<16x16x8xf32> to vector<256x8xf32>
    %c8_157 = arith.constant 8 : index
    %c0_158 = arith.constant 0 : index
    %c0_159 = arith.constant 0 : index
    %155 = vector.load %arg13[%c8_157, %c0_158, %c0_159] : memref<9x8x8xf32, #tpu.memory_space<vmem>>, vector<1x8x8xf32>
    %156 = vector.shape_cast %155 : vector<1x8x8xf32> to vector<8x8xf32>
    %cst_160 = arith.constant dense<0.000000e+00> : vector<256x8xf32>
    %157 = tpu.matmul %154, %156, %cst_160 {dimension_numbers = #tpu.dot_dimension_numbers<[1], [0], [0], [1], [0, 0, 1, 1], [], []>} : vector<256x8xf32>, vector<8x8xf32>, vector<256x8xf32> -> vector<256x8xf32>
    %158 = arith.addf %152, %157 : vector<256x8xf32>
    %159 = vector.shape_cast %158 : vector<256x8xf32> to vector<16x16x8xf32>
    %160 = arith.mulf %97, %97 : vector<1x8xf32>
    %c0_161 = arith.constant 0 : index
    %c0_162 = arith.constant 0 : index
    %161 = vector.load %arg14[%c0_161, %c0_162] : memref<8x8xf32, #tpu.memory_space<vmem>>, vector<8x8xf32>
    %cst_163 = arith.constant dense<0.000000e+00> : vector<1x8xf32>
    %162 = tpu.matmul %160, %161, %cst_163 {dimension_numbers = #tpu.dot_dimension_numbers<[1], [0], [0], [1], [0, 0, 1, 1], [], []>} : vector<1x8xf32>, vector<8x8xf32>, vector<1x8xf32> -> vector<1x8xf32>
    %cst_164 = arith.constant 9.99999993E-9 : f32
    %163 = vector.broadcast %cst_164 : f32 to vector<1x8xf32>
    %164 = arith.addf %162, %163 : vector<1x8xf32>
    %165 = math.rsqrt %164 : vector<1x8xf32>
    %166 = vector.shape_cast %165 : vector<1x8xf32> to vector<1x1x8xf32>
    %167 = vector.broadcast %166 : vector<1x1x8xf32> to vector<16x16x8xf32>
    %168 = arith.mulf %159, %167 : vector<16x16x8xf32>
    %c0_165 = arith.constant 0 : index
    %c0_166 = arith.constant 0 : index
    %169 = vector.load %arg15[%c0_165, %c0_166] : memref<1x1xf32, #tpu.memory_space<vmem>>, vector<1x1xf32>
    %c0_167 = arith.constant 0 : index
    %c0_168 = arith.constant 0 : index
    %c0_169 = arith.constant 0 : index
    %c0_170 = arith.constant 0 : index
    %170 = vector.load %arg4[%c0_167, %c0_168, %c0_169, %c0_170] : memref<1x16x16x1xf32, #tpu.memory_space<vmem>>, vector<1x16x16x1xf32>
    %171 = vector.shape_cast %170 : vector<1x16x16x1xf32> to vector<16x16x1xf32>
    %172 = vector.shape_cast %169 : vector<1x1xf32> to vector<1x1x1xf32>
    %173 = vector.broadcast %172 : vector<1x1x1xf32> to vector<16x16x1xf32>
    %174 = arith.mulf %173, %171 : vector<16x16x1xf32>
    %175 = vector.broadcast %174 : vector<16x16x1xf32> to vector<16x16x8xf32>
    %176 = arith.addf %168, %175 : vector<16x16x8xf32>
    %c0_171 = arith.constant 0 : index
    %c0_172 = arith.constant 0 : index
    %177 = vector.load %arg16[%c0_171, %c0_172] : memref<1x8xf32, #tpu.memory_space<vmem>>, vector<1x8xf32>
    %178 = vector.shape_cast %177 : vector<1x8xf32> to vector<1x1x8xf32>
    %179 = vector.broadcast %178 : vector<1x1x8xf32> to vector<16x16x8xf32>
    %180 = arith.addf %176, %179 : vector<16x16x8xf32>
    %cst_173 = arith.constant 2.000000e-01 : f32
    %181 = vector.broadcast %cst_173 : f32 to vector<16x16x8xf32>
    %182 = arith.mulf %181, %180 : vector<16x16x8xf32>
    %183 = arith.maximumf %180, %182 : vector<16x16x8xf32>
    %c0_174 = arith.constant 0 : index
    %c0_175 = arith.constant 0 : index
    %c0_176 = arith.constant 0 : index
    %c0_177 = arith.constant 0 : index
    %184 = vector.load %arg21[%c0_174, %c0_175, %c0_176, %c0_177] : memref<1x16x16x8xf32, #tpu.memory_space<vmem>>, vector<1x16x16x8xf32>
    %185 = vector.shape_cast %184 : vector<1x16x16x8xf32> to vector<16x16x8xf32>
    %186 = vector.shape_cast %183 : vector<16x16x8xf32> to vector<1x16x16x8xf32>
    tpu.vector_store %arg21[%c0_174, %c0_175, %c0_176, %c0_177], %186 {strides = array<i32>} : memref<1x16x16x8xf32, #tpu.memory_space<vmem>>, vector<1x16x16x8xf32>,
    %c0_178 = arith.constant 0 : index
    %c0_179 = arith.constant 0 : index
    %187 = vector.load %arg17[%c0_178, %c0_179] : memref<32x8xf32, #tpu.memory_space<vmem>>, vector<32x8xf32>
    %cst_180 = arith.constant dense<0.000000e+00> : vector<1x8xf32>
    %188 = tpu.matmul %1, %187, %cst_180 {dimension_numbers = #tpu.dot_dimension_numbers<[1], [0], [0], [1], [0, 0, 1, 1], [], []>} : vector<1x32xf32>, vector<32x8xf32>, vector<1x8xf32> -> vector<1x8xf32>
    %c0_181 = arith.constant 0 : index
    %c0_182 = arith.constant 0 : index
    %189 = vector.load %arg18[%c0_181, %c0_182] : memref<1x8xf32, #tpu.memory_space<vmem>>, vector<1x8xf32>
    %190 = arith.addf %188, %189 : vector<1x8xf32>
    %191 = vector.shape_cast %190 : vector<1x8xf32> to vector<1x1x8xf32>
    %192 = vector.broadcast %191 : vector<1x1x8xf32> to vector<16x16x8xf32>
    %193 = arith.mulf %183, %192 : vector<16x16x8xf32>
    %194 = vector.shape_cast %193 : vector<16x16x8xf32> to vector<256x8xf32>
    %c0_183 = arith.constant 0 : index
    %c0_184 = arith.constant 0 : index
    %195 = vector.load %arg19[%c0_183, %c0_184] : memref<8x3xf32, #tpu.memory_space<vmem>>, vector<8x3xf32>
    %cst_185 = arith.constant dense<0.000000e+00> : vector<256x3xf32>
    %196 = tpu.matmul %194, %195, %cst_185 {dimension_numbers = #tpu.dot_dimension_numbers<[1], [0], [0], [1], [0, 0, 1, 1], [], []>} : vector<256x8xf32>, vector<8x3xf32>, vector<256x3xf32> -> vector<256x3xf32>
    %197 = vector.shape_cast %196 : vector<256x3xf32> to vector<16x16x3xf32>
    %c0_186 = arith.constant 0 : index
    %c0_187 = arith.constant 0 : index
    %198 = vector.load %arg20[%c0_186, %c0_187] : memref<1x3xf32, #tpu.memory_space<vmem>>, vector<1x3xf32>
    %199 = vector.shape_cast %198 : vector<1x3xf32> to vector<1x1x3xf32>
    %200 = vector.broadcast %199 : vector<1x1x3xf32> to vector<16x16x3xf32>
    %201 = arith.addf %197, %200 : vector<16x16x3xf32>
    %cst_188 = arith.constant 2.000000e-01 : f32
    %202 = vector.broadcast %cst_188 : f32 to vector<16x16x3xf32>
    %203 = arith.mulf %202, %201 : vector<16x16x3xf32>
    %204 = arith.maximumf %201, %203 : vector<16x16x3xf32>
    %c0_189 = arith.constant 0 : index
    %c0_190 = arith.constant 0 : index
    %c0_191 = arith.constant 0 : index
    %c0_192 = arith.constant 0 : index
    %205 = vector.load %arg22[%c0_189, %c0_190, %c0_191, %c0_192] : memref<1x16x16x3xf32, #tpu.memory_space<vmem>>, vector<1x16x16x3xf32>
    %206 = vector.shape_cast %205 : vector<1x16x16x3xf32> to vector<16x16x3xf32>
    %207 = vector.shape_cast %204 : vector<16x16x3xf32> to vector<1x16x16x3xf32>
    tpu.vector_store %arg22[%c0_189, %c0_190, %c0_191, %c0_192], %207 {strides = array<i32>} : memref<1x16x16x3xf32, #tpu.memory_space<vmem>>, vector<1x16x16x3xf32>,
    return
  }
  func.func @transform_0(%arg0: i32) -> (i32, i32, i32) {
    %c0_i32 = arith.constant 0 : i32
    %c0_i32_0 = arith.constant 0 : i32
    %c0_i32_1 = arith.constant 0 : i32
    return %arg0, %c0_i32, %c0_i32_0 : i32, i32, i32
  }
  func.func @transform_1(%arg0: i32) -> (i32, i32, i32, i32) {
    %c0_i32 = arith.constant 0 : i32
    %c0_i32_0 = arith.constant 0 : i32
    %c0_i32_1 = arith.constant 0 : i32
    %c0_i32_2 = arith.constant 0 : i32
    return %arg0, %c0_i32, %c0_i32_0, %c0_i32_1 : i32, i32, i32, i32
  }
  func.func @transform_2(%arg0: i32) -> (i32, i32, i32, i32) {
    %c0_i32 = arith.constant 0 : i32
    %c0_i32_0 = arith.constant 0 : i32
    %c0_i32_1 = arith.constant 0 : i32
    %c0_i32_2 = arith.constant 0 : i32
    return %arg0, %c0_i32, %c0_i32_0, %c0_i32_1 : i32, i32, i32, i32
  }
  func.func @transform_3(%arg0: i32) -> (i32, i32, i32, i32) {
    %c0_i32 = arith.constant 0 : i32
    %c0_i32_0 = arith.constant 0 : i32
    %c0_i32_1 = arith.constant 0 : i32
    %c0_i32_2 = arith.constant 0 : i32
    return %arg0, %c0_i32, %c0_i32_0, %c0_i32_1 : i32, i32, i32, i32
  }
  func.func @transform_4(%arg0: i32) -> (i32, i32) {
    %c0_i32 = arith.constant 0 : i32
    %c0_i32_0 = arith.constant 0 : i32
    %c0_i32_1 = arith.constant 0 : i32
    return %c0_i32, %c0_i32_0 : i32, i32
  }
  func.func @transform_5(%arg0: i32) -> (i32, i32) {
    %c0_i32 = arith.constant 0 : i32
    %c0_i32_0 = arith.constant 0 : i32
    %c0_i32_1 = arith.constant 0 : i32
    return %c0_i32, %c0_i32_0 : i32, i32
  }
  func.func @transform_6(%arg0: i32) -> (i32, i32, i32) {
    %c0_i32 = arith.constant 0 : i32
    %c0_i32_0 = arith.constant 0 : i32
    %c0_i32_1 = arith.constant 0 : i32
    %c0_i32_2 = arith.constant 0 : i32
    return %c0_i32, %c0_i32_0, %c0_i32_1 : i32, i32, i32
  }
  func.func @transform_7(%arg0: i32) -> (i32, i32) {
    %c0_i32 = arith.constant 0 : i32
    %c0_i32_0 = arith.constant 0 : i32
    %c0_i32_1 = arith.constant 0 : i32
    return %c0_i32, %c0_i32_0 : i32, i32
  }
  func.func @transform_8(%arg0: i32) -> (i32, i32) {
    %c0_i32 = arith.constant 0 : i32
    %c0_i32_0 = arith.constant 0 : i32
    %c0_i32_1 = arith.constant 0 : i32
    return %c0_i32, %c0_i32_0 : i32, i32
  }
  func.func @transform_9(%arg0: i32) -> (i32, i32) {
    %c0_i32 = arith.constant 0 : i32
    %c0_i32_0 = arith.constant 0 : i32
    %c0_i32_1 = arith.constant 0 : i32
    return %c0_i32, %c0_i32_0 : i32, i32
  }
  func.func @transform_10(%arg0: i32) -> (i32, i32) {
    %c0_i32 = arith.constant 0 : i32
    %c0_i32_0 = arith.constant 0 : i32
    %c0_i32_1 = arith.constant 0 : i32
    return %c0_i32, %c0_i32_0 : i32, i32
  }
  func.func @transform_11(%arg0: i32) -> (i32, i32) {
    %c0_i32 = arith.constant 0 : i32
    %c0_i32_0 = arith.constant 0 : i32
    %c0_i32_1 = arith.constant 0 : i32
    return %c0_i32, %c0_i32_0 : i32, i32
  }
  func.func @transform_12(%arg0: i32) -> (i32, i32, i32) {
    %c0_i32 = arith.constant 0 : i32
    %c0_i32_0 = arith.constant 0 : i32
    %c0_i32_1 = arith.constant 0 : i32
    %c0_i32_2 = arith.constant 0 : i32
    return %c0_i32, %c0_i32_0, %c0_i32_1 : i32, i32, i32
  }
  func.func @transform_13(%arg0: i32) -> (i32, i32) {
    %c0_i32 = arith.constant 0 : i32
    %c0_i32_0 = arith.constant 0 : i32
    %c0_i32_1 = arith.constant 0 : i32
    return %c0_i32, %c0_i32_0 : i32, i32
  }
  func.func @transform_14(%arg0: i32) -> (i32, i32) {
    %c0_i32 = arith.constant 0 : i32
    %c0_i32_0 = arith.constant 0 : i32
    %c0_i32_1 = arith.constant 0 : i32
    return %c0_i32, %c0_i32_0 : i32, i32
  }
  func.func @transform_15(%arg0: i32) -> (i32, i32) {
    %c0_i32 = arith.constant 0 : i32
    %c0_i32_0 = arith.constant 0 : i32
    %c0_i32_1 = arith.constant 0 : i32
    return %c0_i32, %c0_i32_0 : i32, i32
  }
  func.func @transform_16(%arg0: i32) -> (i32, i32) {
    %c0_i32 = arith.constant 0 : i32
    %c0_i32_0 = arith.constant 0 : i32
    %c0_i32_1 = arith.constant 0 : i32
    return %c0_i32, %c0_i32_0 : i32, i32
  }
  func.func @transform_17(%arg0: i32) -> (i32, i32) {
    %c0_i32 = arith.constant 0 : i32
    %c0_i32_0 = arith.constant 0 : i32
    %c0_i32_1 = arith.constant 0 : i32
    return %c0_i32, %c0_i32_0 : i32, i32
  }
  func.func @transform_18(%arg0: i32) -> (i32, i32) {
    %c0_i32 = arith.constant 0 : i32
    %c0_i32_0 = arith.constant 0 : i32
    %c0_i32_1 = arith.constant 0 : i32
    return %c0_i32, %c0_i32_0 : i32, i32
  }
  func.func @transform_19(%arg0: i32) -> (i32, i32) {
    %c0_i32 = arith.constant 0 : i32
    %c0_i32_0 = arith.constant 0 : i32
    %c0_i32_1 = arith.constant 0 : i32
    return %c0_i32, %c0_i32_0 : i32, i32
  }
  func.func @transform_20(%arg0: i32) -> (i32, i32, i32, i32) {
    %c0_i32 = arith.constant 0 : i32
    %c0_i32_0 = arith.constant 0 : i32
    %c0_i32_1 = arith.constant 0 : i32
    %c0_i32_2 = arith.constant 0 : i32
    return %arg0, %c0_i32, %c0_i32_0, %c0_i32_1 : i32, i32, i32, i32
  }
  func.func @transform_21(%arg0: i32) -> (i32, i32, i32, i32) {
    %c0_i32 = arith.constant 0 : i32
    %c0_i32_0 = arith.constant 0 : i32
    %c0_i32_1 = arith.constant 0 : i32
    %c0_i32_2 = arith.constant 0 : i32
    return %arg0, %c0_i32, %c0_i32_0, %c0_i32_1 : i32, i32, i32, i32
  }
}

</mosaic_0001>

<bundles_post_ra>
// kernel: genblock_pallas.1
= control target key start
LH: loop header
LB: loop body
LE: loop exit
PB: predicated region body
PF: predicated region fallthrough
CT: control target
= control target key end

     0   :  { %s15665_s0 = inlined_call_operand.vmem [shape: f32[2,1,32], index: 0, kind: input, shape index: {}]   ;;  %s15666_s1 = inlined_call_operand.vmem [shape: f32[2,16,16,4], index: 1, kind: input, shape index: {}]   ;;  %s15667_s2 = inlined_call_operand.vmem [shape: f32[2,16,16,1], index: 2, kind: input, shape index: {}]   ;;  %s15668_s3 = inlined_call_operand.vmem [shape: f32[2,16,16,1], index: 3, kind: input, shape index: {}]   ;;  %s15669_s4 = inlined_call_operand.vmem [shape: f32[32,4], index: 4, kind: input, shape index: {}]   ;;  %s15670_s5 = inlined_call_operand.vmem [shape: f32[1,4], index: 5, kind: input, shape index: {}]   ;;  %s15671_s6 = inlined_call_operand.vmem [shape: f32[9,4,8], index: 6, kind: input, shape index: {}]   ;;  %s15672_s7 = inlined_call_operand.vmem [shape: f32[4,8], index: 7, kind: input, shape index: {}]   ;;  %s15673_s8 = inlined_call_operand.<no memory space> [shape: f32[1,1], index: 8, kind: input, shape index: {}]   ;;  %s15674_s9 = inlined_call_operand.vmem [shape: f32[1,8], index: 9, kind: input, shape index: {}]   ;;  %s15675_s10 = inlined_call_operand.vmem [shape: f32[32,8], index: 10, kind: input, shape index: {}]   ;;  %s15676_s11 = inlined_call_operand.vmem [shape: f32[1,8], index: 11, kind: input, shape index: {}]   ;;  %s15677_s12 = inlined_call_operand.vmem [shape: f32[9,8,8], index: 12, kind: input, shape index: {}]   ;;  %s15678_s13 = inlined_call_operand.vmem [shape: f32[8,8], index: 13, kind: input, shape index: {}]   ;;  %s15679_s15 = inlined_call_operand.vmem [shape: f32[1,8], index: 15, kind: input, shape index: {}]   ;;  %s15680_s16 = inlined_call_operand.vmem [shape: f32[32,8], index: 16, kind: input, shape index: {}]   ;;  %s15681_s17 = inlined_call_operand.vmem [shape: f32[1,8], index: 17, kind: input, shape index: {}]   ;;  %s15682_s18 = inlined_call_operand.vmem [shape: f32[8,3], index: 18, kind: input, shape index: {}]   ;;  %s15683_s19 = inlined_call_operand.vmem [shape: f32[1,3], index: 19, kind: input, shape index: {}]   ;;  %s15684_s20 = inlined_call_operand.vmem [shape: f32[2,16,16,8], index: 20, kind: output, shape index: {0}]   ;;  %s15685_s21 = inlined_call_operand.vmem [shape: f32[2,16,16,3], index: 21, kind: output, shape index: {1}]   ;;  %s15686_s14 = inlined_call_operand.<no memory space> [shape: f32[1,1], index: 14, kind: input, shape index: {}]  }
   0x1   :  { %15795 = sst [smem:[#allocation49_spill]] %s15665_s0  ;;  %v27_v0 = vstv %s15673_s8  ;;  %v29_v1 = vstv %s15686_s14 }
   0x2   :  { %15796 = sst [smem:[#allocation50_spill]] %s15666_s1  ;;  %28 = vst [vmem:[#allocation4] sm:$0x1] %v27_v0  ;;  %30 = vst [vmem:[#allocation5] sm:$0x1] %v29_v1 }
   0x3   :  { %15797 = sst [smem:[#allocation51_spill]] %s15667_s2 }
   0x4   :  { %15798 = sst [smem:[#allocation52_spill]] %s15668_s3  ;;  %s12733_s3 = smov 0  }
   0x5   :  { %15799 = sst [smem:[#allocation53_spill]] %s15669_s4 }
   0x6   :  { %15800 = sst [smem:[#allocation54_spill]] %s15670_s5 }
   0x7 LB: > { %s9746_s28 = sadd.s32 4294967295, %s12611_s3   ;;  %p9750_p0 = scmp.ge.s32.totalorder %s12611_s3, 1  ;;  %s12611_s3 = sphi %s12733_s3, %s36_s3  }
   0x8   : > { %p622_p1 = scmp.lt.s32.totalorder %s12611_s3, 3 }
   0xa   : > { %p623_p2 = pnand %p9750_p0, %p622_p1 }
   0xc   : > { %626 = sbr.rel (%p623_p2) target bundleno = 2110 (0x83e), region = 100 }
  0x13   : > { %s15801_s14 = sld [smem:[#allocation53_spill]]  ;;  %v15690_v5 = vmov 0.0|0.0   ;;  %vm12614_vm0 = vmmov 0   ;;  %v15688_v8 = vmov 0.0   ;;  %p700_p3 = scmp.lt.s32.totalorder %s9746_s28, 1  ;;  %vm766_vm1 = vcmask 261120  }
  0x14   : > { %12051 = vmatprep.subr.bf16.mxu0 %v15690_v5  ;;  %11066 = vmatprep.mubr.msk.f32.mxu0 %vm12614_vm0, %v15688_v8  ;;  %s15802_s2 = sld [smem:[#allocation49_spill]]  ;;  %vm876_vm2 = vcmask 31744   ;;  %v12770_v11 = vld [vmem:[%s15671_s6 + $0x4] sm:$0xf]  ;;  %vm1145_vm3 = vcmask 1043456   ;;  %v840_v16 = vlaneseq  ;;  %s15803_s23 = sld [smem:[#allocation50_spill]] }
  0x15   : > { %s16013_s28 = smov (!%p700_p3, %s9746_s28), 1  ;;  %878 = vst.msk [vmem:[#allocation2 + $0x8] sm:$0xff] %vm876_vm2, %v15688_v8  ;;  %877 = vst.msk [vmem:[#allocation2] sm:$0xff] %vm876_vm2, %v15688_v8  ;;  %12069 = vmatprep.subr.msk.mxu1 %vm1145_vm3, %v12770_v11  ;;  %v12930_v14 = vld [vmem:[%s15671_s6] sm:$0xf]  ;;  %s15804_s26 = sld [smem:[#allocation54_spill]] }
  0x16   : > { %879 = vst.msk [vmem:[#allocation2 + $0x10] sm:$0xff] %vm876_vm2, %v15688_v8  ;;  %880 = vst.msk [vmem:[#allocation2 + $0x18] sm:$0xff] %vm876_vm2, %v15688_v8  ;;  %12070 = vmatpush3.msk.msra.mxu1 %vm1145_vm3, %v12770_v11  ;;  %v4430_v15 = vld [vmem:[%s15672_s7] sm:$0xf]  ;;  %s12940_s30 = sshll.u32 %s16013_s28, 8  ;;  %v841_v17 = vshrl.u32 %v840_v16, 7 }
  0x17   : > { %881 = vst.msk [vmem:[#allocation2 + $0x20] sm:$0xff] %vm876_vm2, %v15688_v8  ;;  %882 = vst.msk [vmem:[#allocation2 + $0x28] sm:$0xff] %vm876_vm2, %v15688_v8  ;;  %11119 = vmatprep.subr.msk.mxu1 %vm1145_vm3, %v12930_v14  ;;  %s15863_s27 = sld [smem:[#allocation51_spill]]  ;;  %s15878_s29 = sld [smem:[#allocation52_spill]]  ;;  %vm5021_vm4 = vcmask 64512   ;;  %vm9592_vm5 = vcmask 23552  }
  0x18   : > { %883 = vst.msk [vmem:[#allocation2 + $0x30] sm:$0xff] %vm876_vm2, %v15688_v8  ;;  %884 = vst.msk [vmem:[#allocation2 + $0x38] sm:$0xff] %vm876_vm2, %v15688_v8  ;;  %v12951_v19 = vsub.s32 0, %v841_v17 }
  0x19   : > { %v761_v2 = vld [vmem:[%s15801_s14] sm:$0xff]  ;;  %v762_v3 = vld [vmem:[%s15801_s14 + $0x8] sm:$0xff]  ;;  %v763_v4 = vld [vmem:[%s15801_s14 + $0x10] sm:$0xff]  ;;  %885 = vst.msk [vmem:[#allocation2 + $0x40] sm:$0xff] %vm876_vm2, %v15688_v8 }
  0x1a   : > { %v12052_v6 = vpack.c.bf16 %v762_v3, %v761_v2  ;;  %v764_v7 = vld [vmem:[%s15801_s14 + $0x18] sm:$0xff]  ;;  %s12763_s25 = scalar_lea.vmem %s15802_s2, %s16013_s28  ;;  %886 = vst.msk [vmem:[#allocation2 + $0x48] sm:$0xff] %vm876_vm2, %v15688_v8  ;;  %887 = vst.msk [vmem:[#allocation2 + $0x50] sm:$0xff] %vm876_vm2, %v15688_v8  ;;  %s12946_s1 = scalar_lea.vmem %s15803_s23, %s12940_s30 }
  0x1b   : > { %v12055_v9 = vpack.c.bf16 %v764_v7, %v763_v4  ;;  %v728_v10 = vld [vmem:[%s12763_s25] sm:$0x1]  ;;  %888 = vst.msk [vmem:[#allocation2 + $0x58] sm:$0xff] %vm876_vm2, %v15688_v8  ;;  %889 = vst.msk [vmem:[#allocation2 + $0x60] sm:$0xff] %vm876_vm2, %v15688_v8  ;;  %v739_v22 = vld [vmem:[%s12946_s1 + $0x50] sm:$0xff]  ;;  %s15566_s23 = scalar_lea.vmem %s15685_s21, %s12940_s30 }
  0x1c   : > { %12053 = vmatpush3.bf16.msra.mxu0 %v12052_v6  ;;  %890 = vst.msk [vmem:[#allocation2 + $0x68] sm:$0xff] %vm876_vm2, %v15688_v8  ;;  %891 = vst.msk [vmem:[#allocation2 + $0x70] sm:$0xff] %vm876_vm2, %v15688_v8  ;;  %v1015_v12 = vld [vmem:[#allocation2 + $0x8] sm:$0xff]  ;;  %v765_v18 = vld [vmem:[%s15804_s26] sm:$0x1] }
  0x1d   : > { %12054 = vmatprep.subr.bf16.mxu0 %v15690_v5  ;;  %892 = vst.msk [vmem:[#allocation2 + $0x78] sm:$0xff] %vm876_vm2, %v15688_v8  ;;  %893 = vst.msk [vmem:[#allocation2 + $0x80] sm:$0xff] %vm876_vm2, %v15688_v8  ;;  %v1016_v13 = vld [vmem:[#allocation2 + $0x10] sm:$0xff]  ;;  %v729_v21 = vld [vmem:[%s12946_s1] sm:$0xff]  ;;  %s13664_s8 = scalar_lea.vmem %s15863_s27, %s12940_s30  ;;  %s13824_s0 = scalar_lea.vmem %s15878_s29, %s12940_s30 }
  0x1e   : > { %894 = vst.msk [vmem:[#allocation2 + $0x88] sm:$0xff] %vm876_vm2, %v15688_v8  ;;  %895 = vst.msk [vmem:[#allocation2 + $0x90] sm:$0xff] %vm876_vm2, %v15688_v8  ;;  %v730_v23 = vld [vmem:[%s12946_s1 + $0x8] sm:$0xff]  ;;  %v740_v24 = vld [vmem:[%s12946_s1 + $0x58] sm:$0xff] }
  0x1f   : > { %896 = vst.msk [vmem:[#allocation2 + $0x98] sm:$0xff] %vm876_vm2, %v15688_v8  ;;  %897 = vst.msk [vmem:[#allocation2 + $0xa0] sm:$0xff] %vm876_vm2, %v15688_v8  ;;  %v731_v27 = vld [vmem:[%s12946_s1 + $0x10] sm:$0xff]  ;;  %v741_v28 = vld [vmem:[%s12946_s1 + $0x60] sm:$0xff] }
  0x20   : > { %12056 = vmatpush3.bf16.msra.mxu0 %v12055_v9  ;;  %898 = vst.msk [vmem:[#allocation2 + $0xa8] sm:$0xff] %vm876_vm2, %v15688_v8  ;;  %899 = vst.msk [vmem:[#allocation2 + $0xb0] sm:$0xff] %vm876_vm2, %v15688_v8  ;;  %v732_v29 = vld [vmem:[%s12946_s1 + $0x18] sm:$0xff]  ;;  %v742_v30 = vld [vmem:[%s12946_s1 + $0x68] sm:$0xff] }
  0x21   : > { %900 = vst.msk [vmem:[#allocation2 + $0xb8] sm:$0xff] %vm876_vm2, %v15688_v8  ;;  %901 = vst.msk [vmem:[#allocation2 + $0xc0] sm:$0xff] %vm876_vm2, %v15688_v8  ;;  %11069 = vmatprep.subr.msk.mxu0 %vm1145_vm3, %v12770_v11  ;;  %v733_v31 = vld [vmem:[%s12946_s1 + $0x20] sm:$0xff]  ;;  %v743_v32 = vld [vmem:[%s12946_s1 + $0x70] sm:$0xff] }
  0x22   : > { %902 = vst.msk [vmem:[#allocation2 + $0xc8] sm:$0xff] %vm876_vm2, %v15688_v8  ;;  %903 = vst.msk [vmem:[#allocation2 + $0xd0] sm:$0xff] %vm876_vm2, %v15688_v8  ;;  %v734_v33 = vld [vmem:[%s12946_s1 + $0x28] sm:$0xff]  ;;  %v744_v35 = vld [vmem:[%s12946_s1 + $0x78] sm:$0xff] }
  0x23   : > { %11067 = vmatmul.mubr.msk.f32.vlgmr.msra.gmra.mrb[0].mxu0 %vm766_vm1, %v728_v10  ;;  %904 = vst.msk [vmem:[#allocation2 + $0xd8] sm:$0xff] %vm876_vm2, %v15688_v8  ;;  %905 = vst.msk [vmem:[#allocation2 + $0xe0] sm:$0xff] %vm876_vm2, %v15688_v8  ;;  %v735_v36 = vld [vmem:[%s12946_s1 + $0x30] sm:$0xff]  ;;  %v745_v37 = vld [vmem:[%s12946_s1 + $0x80] sm:$0xff] }
  0x24   : > { %906 = vst.msk [vmem:[#allocation2 + $0xe8] sm:$0xff] %vm876_vm2, %v15688_v8  ;;  %907 = vst.msk [vmem:[#allocation2 + $0xf0] sm:$0xff] %vm876_vm2, %v15688_v8  ;;  %11070 = vmatpush3.msk.msra.mxu0 %vm1145_vm3, %v12770_v11  ;;  %11071 = vmatprep.mubr.msk.f32.mxu0 %vm876_vm2, %v1015_v12  ;;  %v736_v38 = vld [vmem:[%s12946_s1 + $0x38] sm:$0xff]  ;;  %v746_v39 = vld [vmem:[%s12946_s1 + $0x88] sm:$0xff] }
  0x25   : > { %908 = vst.msk [vmem:[#allocation2 + $0xf8] sm:$0xff] %vm876_vm2, %v15688_v8  ;;  %909 = vst.msk [vmem:[#allocation2 + $0x100] sm:$0xff] %vm876_vm2, %v15688_v8  ;;  %11519 = vmatprep.subr.mxu0 %v15688_v8  ;;  %v737_v40 = vld [vmem:[%s12946_s1 + $0x40] sm:$0xff]  ;;  %v747_v45 = vld [vmem:[%s12946_s1 + $0x90] sm:$0xff] }
  0x26   : > { %910 = vst.msk [vmem:[#allocation2 + $0x108] sm:$0xff] %vm876_vm2, %v15688_v8  ;;  %911 = vst.msk [vmem:[#allocation2 + $0x110] sm:$0xff] %vm876_vm2, %v15688_v8  ;;  %v738_v46 = vld [vmem:[%s12946_s1 + $0x48] sm:$0xff]  ;;  %v748_v47 = vld [vmem:[%s12946_s1 + $0x98] sm:$0xff] }
  0x27   : > { %912 = vst.msk [vmem:[#allocation2 + $0x118] sm:$0xff] %vm876_vm2, %v15688_v8  ;;  %913 = vst.msk [vmem:[#allocation2 + $0x120] sm:$0xff] %vm876_vm2, %v15688_v8  ;;  %11072 = vmatmul.mubr.msk.f32.vlgmr.msra.gmra.mrb[2].mxu0 %vm876_vm2, %v1016_v13  ;;  %v749_v52 = vld [vmem:[%s12946_s1 + $0xa0] sm:$0xff]  ;;  %v750_v53 = vld [vmem:[%s12946_s1 + $0xa8] sm:$0xff] }
  0x28   : > { %914 = vst.msk [vmem:[#allocation2 + $0x128] sm:$0xff] %vm876_vm2, %v15688_v8  ;;  %915 = vst.msk [vmem:[#allocation2 + $0x130] sm:$0xff] %vm876_vm2, %v15688_v8  ;;  %11520 = vmatpush3.msk.msra.mxu0 %vm1145_vm3, %v4430_v15  ;;  %v751_v54 = vld [vmem:[%s12946_s1 + $0xb0] sm:$0xff]  ;;  %v752_v59 = vld [vmem:[%s12946_s1 + $0xb8] sm:$0xff] }
  0x29   : > { %916 = vst.msk [vmem:[#allocation2 + $0x138] sm:$0xff] %vm876_vm2, %v15688_v8  ;;  %917 = vst.msk [vmem:[#allocation2 + $0x140] sm:$0xff] %vm876_vm2, %v15688_v8  ;;  %12057 = vmatprep.subr.bf16.mxu0 %v15690_v5  ;;  %v753_v60 = vld [vmem:[%s12946_s1 + $0xc0] sm:$0xff]  ;;  %v754_v61 = vld [vmem:[%s12946_s1 + $0xc8] sm:$0xff] }
  0x2a   : > { %918 = vst.msk [vmem:[#allocation2 + $0x148] sm:$0xff] %vm876_vm2, %v15688_v8  ;;  %919 = vst.msk [vmem:[#allocation2 + $0x150] sm:$0xff] %vm876_vm2, %v15688_v8  ;;  %v755_v2 = vld [vmem:[%s12946_s1 + $0xd0] sm:$0xff]  ;;  %v756_v3 = vld [vmem:[%s12946_s1 + $0xd8] sm:$0xff] }
  0x2b   : > { %920 = vst.msk [vmem:[#allocation2 + $0x158] sm:$0xff] %vm876_vm2, %v15688_v8  ;;  %921 = vst.msk [vmem:[#allocation2 + $0x160] sm:$0xff] %vm876_vm2, %v15688_v8  ;;  %v757_v4 = vld [vmem:[%s12946_s1 + $0xe0] sm:$0xff]  ;;  %v758_v11 = vld [vmem:[%s12946_s1 + $0xe8] sm:$0xff] }
  0x2c   : > { %922 = vst.msk [vmem:[#allocation2 + $0x168] sm:$0xff] %vm876_vm2, %v15688_v8  ;;  %923 = vst.msk [vmem:[#allocation2 + $0x170] sm:$0xff] %vm876_vm2, %v15688_v8  ;;  %v759_v12 = vld [vmem:[%s12946_s1 + $0xf0] sm:$0xff]  ;;  %v760_v13 = vld [vmem:[%s12946_s1 + $0xf8] sm:$0xff] }
  0x2d   : > { %924 = vst.msk [vmem:[#allocation2 + $0x178] sm:$0xff] %vm876_vm2, %v15688_v8  ;;  %925 = vst.msk [vmem:[#allocation2 + $0x180] sm:$0xff] %vm876_vm2, %v15688_v8  ;;  %v1698_v5 = vld [vmem:[#allocation2 + $0x9] sm:$0xff] }
  0x2e   : > { %926 = vst.msk [vmem:[#allocation2 + $0x188] sm:$0xff] %vm876_vm2, %v15688_v8  ;;  %927 = vst.msk [vmem:[#allocation2 + $0x190] sm:$0xff] %vm876_vm2, %v15688_v8 }
  0x2f   : > { %928 = vst.msk [vmem:[#allocation2 + $0x198] sm:$0xff] %vm876_vm2, %v15688_v8  ;;  %929 = vst.msk [vmem:[#allocation2 + $0x1a0] sm:$0xff] %vm876_vm2, %v15688_v8 }
  0x30   : > { %930 = vst.msk [vmem:[#allocation2 + $0x1a8] sm:$0xff] %vm876_vm2, %v15688_v8  ;;  %931 = vst.msk [vmem:[#allocation2 + $0x1b0] sm:$0xff] %vm876_vm2, %v15688_v8 }
  0x31   : > { %932 = vst.msk [vmem:[#allocation2 + $0x1b8] sm:$0xff] %vm876_vm2, %v15688_v8  ;;  %933 = vst.msk [vmem:[#allocation2 + $0x1c0] sm:$0xff] %vm876_vm2, %v15688_v8 }
  0x32   : > { %934 = vst.msk [vmem:[#allocation2 + $0x1c8] sm:$0xff] %vm876_vm2, %v15688_v8  ;;  %935 = vst.msk [vmem:[#allocation2 + $0x1d0] sm:$0xff] %vm876_vm2, %v15688_v8 }
  0x33   : > { %936 = vst.msk [vmem:[#allocation2 + $0x1d8] sm:$0xff] %vm876_vm2, %v15688_v8  ;;  %937 = vst.msk [vmem:[#allocation2 + $0x1e0] sm:$0xff] %vm876_vm2, %v15688_v8 }
  0x34   : > { %938 = vst.msk [vmem:[#allocation2 + $0x1e8] sm:$0xff] %vm876_vm2, %v15688_v8  ;;  %939 = vst.msk [vmem:[#allocation2 + $0x1f0] sm:$0xff] %vm876_vm2, %v15688_v8 }
  0x35   : > { %940 = vst.msk [vmem:[#allocation2 + $0x1f8] sm:$0xff] %vm876_vm2, %v15688_v8  ;;  %941 = vst.msk [vmem:[#allocation2 + $0x200] sm:$0xff] %vm876_vm2, %v15688_v8 }
  0x36   : > { %942 = vst.msk [vmem:[#allocation2 + $0x208] sm:$0xff] %vm876_vm2, %v15688_v8  ;;  %943 = vst.msk [vmem:[#allocation2 + $0x210] sm:$0xff] %vm876_vm2, %v15688_v8 }
  0x37   : > { %944 = vst.msk [vmem:[#allocation2 + $0x218] sm:$0xff] %vm876_vm2, %v15688_v8  ;;  %945 = vst.msk [vmem:[#allocation2 + $0x220] sm:$0xff] %vm876_vm2, %v15688_v8 }
  0x38   : > { %946 = vst.msk [vmem:[#allocation2 + $0x228] sm:$0xff] %vm876_vm2, %v15688_v8  ;;  %947 = vst.msk [vmem:[#allocation2 + $0x230] sm:$0xff] %vm876_vm2, %v15688_v8 }
  0x39   : > { %948 = vst.msk [vmem:[#allocation2 + $0x238] sm:$0xff] %vm876_vm2, %v15688_v8  ;;  %15805 = vst [vmem:[#allocation6_spill] sm:$0xff] %v12951_v19 }
  0xf6   : > { %v836_v20 = vpop.f32.mrb[0].mxu0 }
  0xf7   : > { %v12957_v25 = vadd.f32 %v836_v20, %v765_v18  ;;  %v11068_v26 = vpop.f32.mrb[1].mxu0 }
  0xf9   : > { %v12968_v34 = vrot.slane %v12957_v25, %v12951_v19  ;;  %v13330_v19 = vld [vmem:[%s15671_s6 + $0x10] sm:$0xf] }
  0xfb   : > { %v844_v41 = vmul.f32 %v12968_v34, %v729_v21  ;;  %v854_v42 = vmul.f32 %v12968_v34, %v739_v22  ;;  %v845_v43 = vmul.f32 %v12968_v34, %v730_v23  ;;  %v855_v44 = vmul.f32 %v12968_v34, %v740_v24 }
  0xfc   : > { %v846_v48 = vmul.f32 %v12968_v34, %v731_v27  ;;  %v856_v49 = vmul.f32 %v12968_v34, %v741_v28  ;;  %v847_v50 = vmul.f32 %v12968_v34, %v732_v29  ;;  %v857_v51 = vmul.f32 %v12968_v34, %v742_v30 }
  0xfd   : > { %950 = vst.msk [vmem:[#allocation2 + $0x28] sm:$0xff] %vm876_vm2, %v844_v41  ;;  %960 = vst.msk [vmem:[#allocation2 + $0xc8] sm:$0xff] %vm876_vm2, %v854_v42  ;;  %v848_v55 = vmul.f32 %v12968_v34, %v733_v31  ;;  %v858_v56 = vmul.f32 %v12968_v34, %v743_v32  ;;  %v849_v57 = vmul.f32 %v12968_v34, %v734_v33  ;;  %v13070_v33 = vld [vmem:[%s15671_s6 + $0x8] sm:$0xf] }
  0xfe   : > { %951 = vst.msk [vmem:[#allocation2 + $0x30] sm:$0xff] %vm876_vm2, %v845_v43  ;;  %961 = vst.msk [vmem:[#allocation2 + $0xd0] sm:$0xff] %vm876_vm2, %v855_v44  ;;  %v859_v58 = vmul.f32 %v12968_v34, %v744_v35  ;;  %v850_v62 = vmul.f32 %v12968_v34, %v735_v36  ;;  %v860_v63 = vmul.f32 %v12968_v34, %v745_v37 }
  0xff   : > { %952 = vst.msk [vmem:[#allocation2 + $0x48] sm:$0xff] %vm876_vm2, %v846_v48  ;;  %962 = vst.msk [vmem:[#allocation2 + $0xe8] sm:$0xff] %vm876_vm2, %v856_v49  ;;  %v851_v0 = vmul.f32 %v12968_v34, %v736_v38  ;;  %v861_v1 = vmul.f32 %v12968_v34, %v746_v39  ;;  %v852_v6 = vmul.f32 %v12968_v34, %v737_v40 }
 0x100   : > { %953 = vst.msk [vmem:[#allocation2 + $0x50] sm:$0xff] %vm876_vm2, %v847_v50  ;;  %963 = vst.msk [vmem:[#allocation2 + $0xf0] sm:$0xff] %vm876_vm2, %v857_v51  ;;  %v862_v7 = vmul.f32 %v12968_v34, %v747_v45  ;;  %v853_v9 = vmul.f32 %v12968_v34, %v738_v46  ;;  %v863_v10 = vmul.f32 %v12968_v34, %v748_v47 }
 0x101   : > { %954 = vst.msk [vmem:[#allocation2 + $0x68] sm:$0xff] %vm876_vm2, %v848_v55  ;;  %964 = vst.msk [vmem:[#allocation2 + $0x108] sm:$0xff] %vm876_vm2, %v858_v56  ;;  %v864_v15 = vmul.f32 %v12968_v34, %v749_v52  ;;  %v865_v16 = vmul.f32 %v12968_v34, %v750_v53  ;;  %v866_v17 = vmul.f32 %v12968_v34, %v751_v54 }
 0x102   : > { %955 = vst.msk [vmem:[#allocation2 + $0x70] sm:$0xff] %vm876_vm2, %v849_v57  ;;  %965 = vst.msk [vmem:[#allocation2 + $0x110] sm:$0xff] %vm876_vm2, %v859_v58  ;;  %v867_v18 = vmul.f32 %v12968_v34, %v752_v59  ;;  %v868_v20 = vmul.f32 %v12968_v34, %v753_v60  ;;  %v869_v21 = vmul.f32 %v12968_v34, %v754_v61  ;;  %v982_v58 = vld [vmem:[#allocation2 + $0x7] sm:$0xff]  ;;  %v983_v60 = vld [vmem:[#allocation2 + $0xf] sm:$0xff] }
 0x103   : > { %956 = vst.msk [vmem:[#allocation2 + $0x88] sm:$0xff] %vm876_vm2, %v850_v62  ;;  %966 = vst.msk [vmem:[#allocation2 + $0x128] sm:$0xff] %vm876_vm2, %v860_v63  ;;  %v870_v22 = vmul.f32 %v12968_v34, %v755_v2  ;;  %v871_v23 = vmul.f32 %v12968_v34, %v756_v3  ;;  %v872_v24 = vmul.f32 %v12968_v34, %v757_v4  ;;  %v13195_v61 = vld [vmem:[%s15671_s6 + $0xc] sm:$0xf] }
 0x104   : > { %957 = vst.msk [vmem:[#allocation2 + $0x90] sm:$0xff] %vm876_vm2, %v851_v0  ;;  %967 = vst.msk [vmem:[#allocation2 + $0x130] sm:$0xff] %vm876_vm2, %v861_v1  ;;  %v873_v26 = vmul.f32 %v12968_v34, %v758_v11  ;;  %v874_v27 = vmul.f32 %v12968_v34, %v759_v12  ;;  %v875_v28 = vmul.f32 %v12968_v34, %v760_v13  ;;  %v13051_v29 = vld [vmem:[#allocation2 + $0x28] sm:$0xff] }
 0x105   : > { %958 = vst.msk [vmem:[#allocation2 + $0xa8] sm:$0xff] %vm876_vm2, %v852_v6  ;;  %968 = vst.msk [vmem:[#allocation2 + $0x148] sm:$0xff] %vm876_vm2, %v862_v7  ;;  %v13053_v30 = vld [vmem:[#allocation2 + $0xc8] sm:$0xff]  ;;  %v13055_v31 = vld [vmem:[#allocation2 + $0x30] sm:$0xff]  ;;  %11074 = vmatprep.mubr.msk.f32.mxu0 %vm876_vm2, %v13051_v29  ;;  %v4429_v50 = vmul.f32 %v12957_v25, %v12957_v25 }
 0x106   : > { %959 = vst.msk [vmem:[#allocation2 + $0xb0] sm:$0xff] %vm876_vm2, %v853_v9  ;;  %969 = vst.msk [vmem:[#allocation2 + $0x150] sm:$0xff] %vm876_vm2, %v863_v10  ;;  %11089 = vmatprep.mubr.msk.f32.mxu1 %vm876_vm2, %v13053_v30  ;;  %v13065_v32 = vld [vmem:[#allocation2 + $0xd0] sm:$0xff]  ;;  %11075 = vmatmul.mubr.msk.f32.gmra.mrb[4].mxu0 %vm876_vm2, %v13055_v31  ;;  %v13076_v34 = vld [vmem:[#allocation2 + $0x48] sm:$0xff] }
 0x107   : > { %970 = vst.msk [vmem:[#allocation2 + $0x168] sm:$0xff] %vm876_vm2, %v864_v15  ;;  %971 = vst.msk [vmem:[#allocation2 + $0x170] sm:$0xff] %vm876_vm2, %v865_v16  ;;  %11090 = vmatmul.mubr.msk.f32.vlgmr.msra.gmra.mrb[0].mxu1 %vm876_vm2, %v13065_v32  ;;  %11077 = vmatprep.mubr.msk.f32.mxu0 %vm876_vm2, %v13076_v34  ;;  %v13082_v35 = vld [vmem:[#allocation2 + $0xe8] sm:$0xff]  ;;  %v13088_v36 = vld [vmem:[#allocation2 + $0x50] sm:$0xff] }
 0x108   : > { %972 = vst.msk [vmem:[#allocation2 + $0x188] sm:$0xff] %vm876_vm2, %v866_v17  ;;  %973 = vst.msk [vmem:[#allocation2 + $0x190] sm:$0xff] %vm876_vm2, %v867_v18  ;;  %11120 = vmatpush3.msk.msra.mxu1 %vm1145_vm3, %v12930_v14  ;;  %11092 = vmatprep.mubr.msk.f32.mxu1 %vm876_vm2, %v13082_v35  ;;  %v13090_v37 = vld [vmem:[#allocation2 + $0xf0] sm:$0xff]  ;;  %v13096_v14 = vld [vmem:[#allocation2 + $0x68] sm:$0xff] }
 0x109   : > { %974 = vst.msk [vmem:[#allocation2 + $0x1a8] sm:$0xff] %vm876_vm2, %v868_v20  ;;  %975 = vst.msk [vmem:[#allocation2 + $0x1b0] sm:$0xff] %vm876_vm2, %v869_v21  ;;  %11169 = vmatprep.subr.msk.mxu1 %vm1145_vm3, %v13070_v33  ;;  %v13098_v38 = vld [vmem:[#allocation2 + $0x108] sm:$0xff]  ;;  %v13104_v39 = vld [vmem:[#allocation2 + $0x70] sm:$0xff] }
 0x10a   : > { %976 = vst.msk [vmem:[#allocation2 + $0x1c8] sm:$0xff] %vm876_vm2, %v870_v22  ;;  %977 = vst.msk [vmem:[#allocation2 + $0x1d0] sm:$0xff] %vm876_vm2, %v871_v23  ;;  %11078 = vmatmul.mubr.msk.f32.gmra.mrb[6].mxu0 %vm876_vm2, %v13088_v36  ;;  %v13106_v40 = vld [vmem:[#allocation2 + $0x110] sm:$0xff]  ;;  %v13112_v41 = vld [vmem:[#allocation2 + $0x88] sm:$0xff]  ;;  %v13284_v23 = vpop.f32.mrb[2].mxu0 }
 0x10b   : > { %978 = vst.msk [vmem:[#allocation2 + $0x1e8] sm:$0xff] %vm876_vm2, %v872_v24  ;;  %979 = vst.msk [vmem:[#allocation2 + $0x1f0] sm:$0xff] %vm876_vm2, %v873_v26  ;;  %11093 = vmatmul.mubr.msk.f32.gmra.mrb[2].mxu1 %vm876_vm2, %v13090_v37  ;;  %11080 = vmatprep.mubr.msk.f32.mxu0 %vm876_vm2, %v13096_v14  ;;  %v13114_v42 = vld [vmem:[#allocation2 + $0x128] sm:$0xff]  ;;  %v13120_v43 = vld [vmem:[#allocation2 + $0x90] sm:$0xff]  ;;  %v13288_v24 = vpop.f32.mrb[3].mxu0 }
 0x10c   : > { %980 = vst.msk [vmem:[#allocation2 + $0x208] sm:$0xff] %vm876_vm2, %v874_v27  ;;  %981 = vst.msk [vmem:[#allocation2 + $0x210] sm:$0xff] %vm876_vm2, %v875_v28  ;;  %11095 = vmatprep.mubr.msk.f32.mxu1 %vm876_vm2, %v13098_v38  ;;  %v13122_v44 = vld [vmem:[#allocation2 + $0x130] sm:$0xff]  ;;  %v13128_v45 = vld [vmem:[#allocation2 + $0xa8] sm:$0xff] }
 0x10d   : > { %v13130_v46 = vld [vmem:[#allocation2 + $0x148] sm:$0xff]  ;;  %v13136_v47 = vld [vmem:[#allocation2 + $0xb0] sm:$0xff]  ;;  %15809 = vst [vmem:[#allocation10_spill] sm:$0xff] %v13284_v23  ;;  %15810 = vst [vmem:[#allocation11_spill] sm:$0xff] %v13288_v24 }
 0x10e   : > { %11081 = vmatmul.mubr.msk.f32.gmra.mrb[8].mxu0 %vm876_vm2, %v13104_v39  ;;  %v13138_v48 = vld [vmem:[#allocation2 + $0x150] sm:$0xff]  ;;  %v13144_v49 = vld [vmem:[#allocation2 + $0x168] sm:$0xff] }
 0x10f   : > { %11096 = vmatmul.mubr.msk.f32.gmra.mrb[4].mxu1 %vm876_vm2, %v13106_v40  ;;  %11083 = vmatprep.mubr.msk.f32.mxu0 %vm876_vm2, %v13112_v41  ;;  %v13152_v51 = vld [vmem:[#allocation2 + $0x170] sm:$0xff]  ;;  %v13157_v52 = vld [vmem:[#allocation2 + $0x188] sm:$0xff] }
 0x110   : > { %11098 = vmatprep.mubr.msk.f32.mxu1 %vm876_vm2, %v13114_v42  ;;  %v13163_v53 = vld [vmem:[#allocation2 + $0x190] sm:$0xff]  ;;  %v13167_v25 = vld [vmem:[#allocation2 + $0x1a8] sm:$0xff] }
 0x111   : > { %v13171_v54 = vld [vmem:[#allocation2 + $0x1b0] sm:$0xff]  ;;  %v13175_v55 = vld [vmem:[#allocation2 + $0x1c8] sm:$0xff] }
 0x112   : > { %11084 = vmatmul.mubr.msk.f32.gmra.mrb[10].mxu0 %vm876_vm2, %v13120_v43  ;;  %v13179_v56 = vld [vmem:[#allocation2 + $0x1d0] sm:$0xff]  ;;  %v13183_v57 = vld [vmem:[#allocation2 + $0x1e8] sm:$0xff] }
 0x113   : > { %11099 = vmatmul.mubr.msk.f32.gmra.mrb[6].mxu1 %vm876_vm2, %v13122_v44  ;;  %11086 = vmatprep.mubr.msk.f32.mxu0 %vm876_vm2, %v13128_v45  ;;  %15806 = vst [vmem:[#allocation7_spill] sm:$0xff] %v13183_v57  ;;  %v13187_v59 = vld [vmem:[#allocation2 + $0x1f0] sm:$0xff]  ;;  %v13198_v62 = vld [vmem:[#allocation2 + $0x27] sm:$0xff] }
 0x114   : > { %11101 = vmatprep.mubr.msk.f32.mxu1 %vm876_vm2, %v13130_v46  ;;  %15807 = vst [vmem:[#allocation8_spill] sm:$0xff] %v13187_v59  ;;  %v13206_v63 = vld [vmem:[#allocation2 + $0x2f] sm:$0xff]  ;;  %v13210_v0 = vld [vmem:[#allocation2 + $0x47] sm:$0xff] }
 0x115   : > { %v13214_v1 = vld [vmem:[#allocation2 + $0x4f] sm:$0xff]  ;;  %v13218_v2 = vld [vmem:[#allocation2 + $0x67] sm:$0xff] }
 0x116   : > { %11087 = vmatmul.mubr.msk.f32.gmra.mrb[12].mxu0 %vm876_vm2, %v13136_v47  ;;  %v13222_v3 = vld [vmem:[#allocation2 + $0x6f] sm:$0xff]  ;;  %v13226_v4 = vld [vmem:[#allocation2 + $0x87] sm:$0xff] }
 0x117   : > { %11102 = vmatmul.mubr.msk.f32.gmra.mrb[8].mxu1 %vm876_vm2, %v13138_v48  ;;  %11521 = vmatprep.mubr.msk.f32.mxu0 %vm12614_vm0, %v15688_v8  ;;  %v13230_v6 = vld [vmem:[#allocation2 + $0x8f] sm:$0xff]  ;;  %v13234_v7 = vld [vmem:[#allocation2 + $0xa7] sm:$0xff] }
 0x118   : > { %11104 = vmatprep.mubr.msk.f32.mxu1 %vm876_vm2, %v13144_v49  ;;  %v13238_v9 = vld [vmem:[#allocation2 + $0xaf] sm:$0xff]  ;;  %v13242_v10 = vld [vmem:[#allocation2 + $0xc7] sm:$0xff] }
 0x119   : > { %v13246_v11 = vld [vmem:[#allocation2 + $0xcf] sm:$0xff]  ;;  %v13250_v12 = vld [vmem:[#allocation2 + $0xe7] sm:$0xff] }
 0x11a   : > { %11522 = vmatmul.mubr.msk.f32.vlgmr.msra.gmra.mrb[14].mxu0 %vm876_vm2, %v4429_v50  ;;  %v13254_v13 = vld [vmem:[#allocation2 + $0xef] sm:$0xff]  ;;  %v13258_v15 = vld [vmem:[#allocation2 + $0x107] sm:$0xff] }
 0x11b   : > { %11105 = vmatmul.mubr.msk.f32.gmra.mrb[10].mxu1 %vm876_vm2, %v13152_v51  ;;  %11532 = vmatprep.mubr.msk.f32.mxu0 %vm12614_vm0, %v15688_v8  ;;  %v13262_v16 = vld [vmem:[#allocation2 + $0x10f] sm:$0xff]  ;;  %v13266_v17 = vld [vmem:[#allocation2 + $0x127] sm:$0xff] }
 0x11c   : > { %11107 = vmatprep.mubr.msk.f32.mxu1 %vm876_vm2, %v13157_v52  ;;  %v13270_v18 = vld [vmem:[#allocation2 + $0x12f] sm:$0xff]  ;;  %v13274_v20 = vld [vmem:[#allocation2 + $0x147] sm:$0xff] }
 0x11d   : > { %v13278_v21 = vld [vmem:[#allocation2 + $0x14f] sm:$0xff]  ;;  %v13282_v22 = vld [vmem:[#allocation2 + $0x167] sm:$0xff] }
 0x11e   : > { %15808 = vst [vmem:[#allocation9_spill] sm:$0xff] %v13278_v21  ;;  %v13290_v26 = vld [vmem:[#allocation2 + $0x16f] sm:$0xff]  ;;  %v13294_v27 = vld [vmem:[#allocation2 + $0x187] sm:$0xff] }
 0x11f   : > { %11108 = vmatmul.mubr.msk.f32.gmra.mrb[12].mxu1 %vm876_vm2, %v13163_v53  ;;  %15811 = vst [vmem:[#allocation12_spill] sm:$0xff] %v13294_v27  ;;  %v13298_v28 = vld [vmem:[#allocation2 + $0x18f] sm:$0xff]  ;;  %v13318_v8 = vld [vmem:[#allocation2 + $0x1e7] sm:$0xff] }
 0x120   : > { %11110 = vmatprep.mubr.msk.f32.mxu1 %vm876_vm2, %v13167_v25  ;;  %v13306_v50 = vld [vmem:[#allocation2 + $0x1af] sm:$0xff] }
 0x121   : > { %v13322_v24 = vld [vmem:[#allocation2 + $0x1ef] sm:$0xff] }
 0x122   : > { %v1699_v23 = vld [vmem:[#allocation2 + $0x11] sm:$0xff] }
 0x123   : > { %11111 = vmatmul.mubr.msk.f32.gmra.mrb[14].mxu1 %vm876_vm2, %v13171_v54 }
 0x124   : > { %11113 = vmatprep.mubr.msk.f32.mxu1 %vm876_vm2, %v13175_v55 }
 0x127   : > { %11114 = vmatmul.mubr.msk.f32.gmra.mrb[16].mxu1 %vm876_vm2, %v13179_v56 }
 0x128   : > { %11116 = vmatprep.mubr.msk.f32.mxu1 %vm876_vm2, %v13183_v57  ;;  %v13345_v57 = vld [vmem:[#allocation2 + $0x49] sm:$0xff] }
 0x129   : > { %15815 = vst [vmem:[#allocation16_spill] sm:$0xff] %v13345_v57 }
 0x12b   : > { %11117 = vmatmul.mubr.msk.f32.gmra.mrb[18].mxu1 %vm876_vm2, %v13187_v59  ;;  %v13333_v59 = vld [vmem:[#allocation2 + $0x29] sm:$0xff] }
 0x12c   : > { %11121 = vmatprep.mubr.msk.f32.mxu1 %vm876_vm2, %v982_v58  ;;  %v13310_v58 = vld [vmem:[#allocation2 + $0x1c7] sm:$0xff]  ;;  %15813 = vst [vmem:[#allocation14_spill] sm:$0xff] %v13333_v59 }
 0x12f   : > { %11122 = vmatmul.mubr.msk.f32.vlgmr.msra.gmra.mrb[20].mxu1 %vm876_vm2, %v983_v60  ;;  %v13314_v60 = vld [vmem:[#allocation2 + $0x1cf] sm:$0xff] }
 0x130   : > { %11170 = vmatpush3.msk.msra.mxu1 %vm1145_vm3, %v13070_v33  ;;  %11124 = vmatprep.mubr.msk.f32.mxu1 %vm876_vm2, %v13198_v62  ;;  %v13302_v33 = vld [vmem:[#allocation2 + $0x1a7] sm:$0xff]  ;;  %15812 = vst [vmem:[#allocation13_spill] sm:$0xff] %v13314_v60 }
 0x131   : > { %11219 = vmatprep.subr.msk.mxu1 %vm1145_vm3, %v13195_v61 }
 0x133   : > { %11125 = vmatmul.mubr.msk.f32.gmra.mrb[22].mxu1 %vm876_vm2, %v13206_v63 }
 0x134   : > { %11127 = vmatprep.mubr.msk.f32.mxu1 %vm876_vm2, %v13210_v0 }
 0x137   : > { %11128 = vmatmul.mubr.msk.f32.gmra.mrb[24].mxu1 %vm876_vm2, %v13214_v1 }
 0x138   : > { %11130 = vmatprep.mubr.msk.f32.mxu1 %vm876_vm2, %v13218_v2 }
 0x13b   : > { %11131 = vmatmul.mubr.msk.f32.gmra.mrb[26].mxu1 %vm876_vm2, %v13222_v3 }
 0x13c   : > { %11133 = vmatprep.mubr.msk.f32.mxu1 %vm876_vm2, %v13226_v4 }
 0x13f   : > { %11134 = vmatmul.mubr.msk.f32.gmra.mrb[28].mxu1 %vm876_vm2, %v13230_v6 }
 0x140   : > { %11136 = vmatprep.mubr.msk.f32.mxu1 %vm876_vm2, %v13234_v7 }
 0x143   : > { %11137 = vmatmul.mubr.msk.f32.gmra.mrb[30].mxu1 %vm876_vm2, %v13238_v9 }
 0x144   : > { %11139 = vmatprep.mubr.msk.f32.mxu1 %vm876_vm2, %v13242_v10 }
 0x147   : > { %11140 = vmatmul.mubr.msk.f32.gmra.mrb[0].mxu1 %vm876_vm2, %v13246_v11 }
 0x148   : > { %11142 = vmatprep.mubr.msk.f32.mxu1 %vm876_vm2, %v13250_v12 }
 0x14b   : > { %11143 = vmatmul.mubr.msk.f32.gmra.mrb[2].mxu1 %vm876_vm2, %v13254_v13 }
 0x14c   : > { %11145 = vmatprep.mubr.msk.f32.mxu1 %vm876_vm2, %v13258_v15 }
 0x14f   : > { %11146 = vmatmul.mubr.msk.f32.gmra.mrb[4].mxu1 %vm876_vm2, %v13262_v16 }
 0x150   : > { %11148 = vmatprep.mubr.msk.f32.mxu1 %vm876_vm2, %v13266_v17 }
 0x153   : > { %11149 = vmatmul.mubr.msk.f32.gmra.mrb[6].mxu1 %vm876_vm2, %v13270_v18 }
 0x154   : > { %11151 = vmatprep.mubr.msk.f32.mxu1 %vm876_vm2, %v13274_v20 }
 0x157   : > { %11152 = vmatmul.mubr.msk.f32.gmra.mrb[8].mxu1 %vm876_vm2, %v13278_v21 }
 0x158   : > { %11154 = vmatprep.mubr.msk.f32.mxu1 %vm876_vm2, %v13282_v22 }
 0x15b   : > { %11155 = vmatmul.mubr.msk.f32.gmra.mrb[10].mxu1 %vm876_vm2, %v13290_v26 }
 0x15c   : > { %11157 = vmatprep.mubr.msk.f32.mxu1 %vm876_vm2, %v13294_v27 }
 0x15f   : > { %11158 = vmatmul.mubr.msk.f32.gmra.mrb[12].mxu1 %vm876_vm2, %v13298_v28 }
 0x160   : > { %11160 = vmatprep.mubr.msk.f32.mxu1 %vm876_vm2, %v13302_v33 }
 0x163   : > { %11161 = vmatmul.mubr.msk.f32.gmra.mrb[14].mxu1 %vm876_vm2, %v13306_v50 }
 0x164   : > { %11163 = vmatprep.mubr.msk.f32.mxu1 %vm876_vm2, %v13310_v58 }
 0x167   : > { %11164 = vmatmul.mubr.msk.f32.gmra.mrb[16].mxu1 %vm876_vm2, %v13314_v60 }
 0x168   : > { %11166 = vmatprep.mubr.msk.f32.mxu1 %vm876_vm2, %v13318_v8 }
 0x16b   : > { %11167 = vmatmul.mubr.msk.f32.gmra.mrb[18].mxu1 %vm876_vm2, %v13322_v24 }
 0x16c   : > { %11171 = vmatprep.mubr.msk.f32.mxu1 %vm876_vm2, %v1698_v5  ;;  %v13341_v5 = vld [vmem:[#allocation2 + $0x31] sm:$0xff] }
 0x16d   : > { %15814 = vst [vmem:[#allocation15_spill] sm:$0xff] %v13341_v5 }
 0x16f   : > { %11172 = vmatmul.mubr.msk.f32.vlgmr.msra.gmra.mrb[20].mxu1 %vm876_vm2, %v1699_v23  ;;  %v13349_v23 = vld [vmem:[#allocation2 + $0x51] sm:$0xff] }
 0x170   : > { %11220 = vmatpush3.msk.msra.mxu1 %vm1145_vm3, %v13195_v61  ;;  %11174 = vmatprep.mubr.msk.f32.mxu1 %vm876_vm2, %v13333_v59  ;;  %15816 = vst [vmem:[#allocation17_spill] sm:$0xff] %v13349_v23  ;;  %v13353_v61 = vld [vmem:[#allocation2 + $0x69] sm:$0xff]  ;;  %v13357_v59 = vld [vmem:[#allocation2 + $0x71] sm:$0xff] }
 0x171   : > { %11269 = vmatprep.subr.msk.mxu1 %vm1145_vm3, %v13330_v19  ;;  %15817 = vst [vmem:[#allocation18_spill] sm:$0xff] %v13353_v61  ;;  %15818 = vst [vmem:[#allocation19_spill] sm:$0xff] %v13357_v59 }
 0x173   : > { %11175 = vmatmul.mubr.msk.f32.gmra.mrb[22].mxu1 %vm876_vm2, %v13341_v5  ;;  %v13361_v5 = vld [vmem:[#allocation2 + $0x89] sm:$0xff] }
 0x174   : > { %11177 = vmatprep.mubr.msk.f32.mxu1 %vm876_vm2, %v13345_v57  ;;  %15819 = vst [vmem:[#allocation20_spill] sm:$0xff] %v13361_v5  ;;  %v13365_v57 = vld [vmem:[#allocation2 + $0x91] sm:$0xff] }
 0x175   : > { %15820 = vst [vmem:[#allocation21_spill] sm:$0xff] %v13365_v57 }
 0x177   : > { %11178 = vmatmul.mubr.msk.f32.gmra.mrb[24].mxu1 %vm876_vm2, %v13349_v23  ;;  %v13369_v23 = vld [vmem:[#allocation2 + $0xa9] sm:$0xff] }
 0x178   : > { %11180 = vmatprep.mubr.msk.f32.mxu1 %vm876_vm2, %v13353_v61  ;;  %15821 = vst [vmem:[#allocation22_spill] sm:$0xff] %v13369_v23  ;;  %v13373_v61 = vld [vmem:[#allocation2 + $0xb1] sm:$0xff] }
 0x179   : > { %15822 = vst [vmem:[#allocation23_spill] sm:$0xff] %v13373_v61 }
 0x17b   : > { %11181 = vmatmul.mubr.msk.f32.gmra.mrb[26].mxu1 %vm876_vm2, %v13357_v59  ;;  %v13377_v59 = vld [vmem:[#allocation2 + $0xc9] sm:$0xff] }
 0x17c   : > { %11183 = vmatprep.mubr.msk.f32.mxu1 %vm876_vm2, %v13361_v5  ;;  %15823 = vst [vmem:[#allocation24_spill] sm:$0xff] %v13377_v59  ;;  %v13381_v5 = vld [vmem:[#allocation2 + $0xd1] sm:$0xff] }
 0x17d   : > { %15824 = vst [vmem:[#allocation25_spill] sm:$0xff] %v13381_v5 }
 0x17f   : > { %11184 = vmatmul.mubr.msk.f32.gmra.mrb[28].mxu1 %vm876_vm2, %v13365_v57  ;;  %v13385_v57 = vld [vmem:[#allocation2 + $0xe9] sm:$0xff] }
 0x180   : > { %11186 = vmatprep.mubr.msk.f32.mxu1 %vm876_vm2, %v13369_v23  ;;  %15825 = vst [vmem:[#allocation26_spill] sm:$0xff] %v13385_v57  ;;  %v13389_v23 = vld [vmem:[#allocation2 + $0xf1] sm:$0xff] }
 0x181   : > { %15826 = vst [vmem:[#allocation27_spill] sm:$0xff] %v13389_v23 }
 0x183   : > { %11187 = vmatmul.mubr.msk.f32.gmra.mrb[30].mxu1 %vm876_vm2, %v13373_v61  ;;  %v13393_v61 = vld [vmem:[#allocation2 + $0x109] sm:$0xff] }
 0x184   : > { %11189 = vmatprep.mubr.msk.f32.mxu1 %vm876_vm2, %v13377_v59  ;;  %15827 = vst [vmem:[#allocation28_spill] sm:$0xff] %v13393_v61  ;;  %v13397_v59 = vld [vmem:[#allocation2 + $0x111] sm:$0xff] }
 0x185   : > { %15828 = vst [vmem:[#allocation29_spill] sm:$0xff] %v13397_v59 }
 0x187   : > { %11190 = vmatmul.mubr.msk.f32.gmra.mrb[0].mxu1 %vm876_vm2, %v13381_v5  ;;  %v13401_v5 = vld [vmem:[#allocation2 + $0x129] sm:$0xff] }
 0x188   : > { %11192 = vmatprep.mubr.msk.f32.mxu1 %vm876_vm2, %v13385_v57  ;;  %15829 = vst [vmem:[#allocation30_spill] sm:$0xff] %v13401_v5  ;;  %v13405_v57 = vld [vmem:[#allocation2 + $0x131] sm:$0xff] }
 0x189   : > { %15830 = vst [vmem:[#allocation31_spill] sm:$0xff] %v13405_v57 }
 0x18b   : > { %11193 = vmatmul.mubr.msk.f32.gmra.mrb[2].mxu1 %vm876_vm2, %v13389_v23  ;;  %v13409_v23 = vld [vmem:[#allocation2 + $0x149] sm:$0xff] }
 0x18c   : > { %11195 = vmatprep.mubr.msk.f32.mxu1 %vm876_vm2, %v13393_v61  ;;  %15831 = vst [vmem:[#allocation32_spill] sm:$0xff] %v13409_v23  ;;  %v13413_v61 = vld [vmem:[#allocation2 + $0x151] sm:$0xff] }
 0x18d   : > { %15832 = vst [vmem:[#allocation33_spill] sm:$0xff] %v13413_v61 }
 0x18f   : > { %11196 = vmatmul.mubr.msk.f32.gmra.mrb[4].mxu1 %vm876_vm2, %v13397_v59  ;;  %v13417_v59 = vld [vmem:[#allocation2 + $0x169] sm:$0xff] }
 0x190   : > { %11198 = vmatprep.mubr.msk.f32.mxu1 %vm876_vm2, %v13401_v5  ;;  %15833 = vst [vmem:[#allocation34_spill] sm:$0xff] %v13417_v59  ;;  %v13421_v5 = vld [vmem:[#allocation2 + $0x171] sm:$0xff] }
 0x191   : > { %15834 = vst [vmem:[#allocation35_spill] sm:$0xff] %v13421_v5 }
 0x193   : > { %11199 = vmatmul.mubr.msk.f32.gmra.mrb[6].mxu1 %vm876_vm2, %v13405_v57  ;;  %v13425_v57 = vld [vmem:[#allocation2 + $0x189] sm:$0xff] }
 0x194   : > { %11201 = vmatprep.mubr.msk.f32.mxu1 %vm876_vm2, %v13409_v23  ;;  %15835 = vst [vmem:[#allocation36_spill] sm:$0xff] %v13425_v57  ;;  %v13429_v23 = vld [vmem:[#allocation2 + $0x191] sm:$0xff] }
 0x195   : > { %15836 = vst [vmem:[#allocation37_spill] sm:$0xff] %v13429_v23 }
 0x197   : > { %11202 = vmatmul.mubr.msk.f32.gmra.mrb[8].mxu1 %vm876_vm2, %v13413_v61  ;;  %v13433_v61 = vld [vmem:[#allocation2 + $0x1a9] sm:$0xff] }
 0x198   : > { %11204 = vmatprep.mubr.msk.f32.mxu1 %vm876_vm2, %v13417_v59  ;;  %15837 = vst [vmem:[#allocation38_spill] sm:$0xff] %v13433_v61  ;;  %v13437_v59 = vld [vmem:[#allocation2 + $0x1b1] sm:$0xff] }
 0x19b   : > { %11205 = vmatmul.mubr.msk.f32.gmra.mrb[10].mxu1 %vm876_vm2, %v13421_v5  ;;  %v13441_v5 = vld [vmem:[#allocation2 + $0x1c9] sm:$0xff] }
 0x19c   : > { %11207 = vmatprep.mubr.msk.f32.mxu1 %vm876_vm2, %v13425_v57  ;;  %15838 = vst [vmem:[#allocation39_spill] sm:$0xff] %v13441_v5  ;;  %v13445_v57 = vld [vmem:[#allocation2 + $0x1d1] sm:$0xff] }
 0x19f   : > { %11208 = vmatmul.mubr.msk.f32.gmra.mrb[12].mxu1 %vm876_vm2, %v13429_v23  ;;  %v13449_v23 = vld [vmem:[#allocation2 + $0x1e9] sm:$0xff] }
 0x1a0   : > { %11210 = vmatprep.mubr.msk.f32.mxu1 %vm876_vm2, %v13433_v61  ;;  %v13453_v61 = vld [vmem:[#allocation2 + $0x1f1] sm:$0xff] }
 0x1a3   : > { %11211 = vmatmul.mubr.msk.f32.gmra.mrb[14].mxu1 %vm876_vm2, %v13437_v59 }
 0x1a4   : > { %11213 = vmatprep.mubr.msk.f32.mxu1 %vm876_vm2, %v13441_v5  ;;  %v9931_v5 = vld [vmem:[%s15671_s6 + $0x14] sm:$0xf] }
 0x1a7   : > { %11214 = vmatmul.mubr.msk.f32.gmra.mrb[16].mxu1 %vm876_vm2, %v13445_v57 }
 0x1a8   : > { %11216 = vmatprep.mubr.msk.f32.mxu1 %vm876_vm2, %v13449_v23 }
 0x1ab   : > { %11217 = vmatmul.mubr.msk.f32.gmra.mrb[18].mxu1 %vm876_vm2, %v13453_v61 }
 0x1ac   : > { %11221 = vmatprep.mubr.msk.f32.mxu1 %vm876_vm2, %v13198_v62 }
 0x1af   : > { %11222 = vmatmul.mubr.msk.f32.vlgmr.msra.gmra.mrb[20].mxu1 %vm876_vm2, %v13206_v63 }
 0x1b0   : > { %11270 = vmatpush3.msk.msra.mxu1 %vm1145_vm3, %v13330_v19  ;;  %11224 = vmatprep.mubr.msk.f32.mxu1 %vm876_vm2, %v13210_v0 }
 0x1b1   : > { %11319 = vmatprep.subr.msk.mxu1 %vm1145_vm3, %v9931_v5 }
 0x1b3   : > { %11225 = vmatmul.mubr.msk.f32.gmra.mrb[22].mxu1 %vm876_vm2, %v13214_v1 }
 0x1b4   : > { %11227 = vmatprep.mubr.msk.f32.mxu1 %vm876_vm2, %v13218_v2 }
 0x1b7   : > { %11228 = vmatmul.mubr.msk.f32.gmra.mrb[24].mxu1 %vm876_vm2, %v13222_v3 }
 0x1b8   : > { %11230 = vmatprep.mubr.msk.f32.mxu1 %vm876_vm2, %v13226_v4 }
 0x1bb   : > { %11231 = vmatmul.mubr.msk.f32.gmra.mrb[26].mxu1 %vm876_vm2, %v13230_v6 }
 0x1bc   : > { %11233 = vmatprep.mubr.msk.f32.mxu1 %vm876_vm2, %v13234_v7 }
 0x1bf   : > { %11234 = vmatmul.mubr.msk.f32.gmra.mrb[28].mxu1 %vm876_vm2, %v13238_v9 }
 0x1c0   : > { %11236 = vmatprep.mubr.msk.f32.mxu1 %vm876_vm2, %v13242_v10 }
 0x1c3   : > { %11237 = vmatmul.mubr.msk.f32.gmra.mrb[30].mxu1 %vm876_vm2, %v13246_v11 }
 0x1c4   : > { %11239 = vmatprep.mubr.msk.f32.mxu1 %vm876_vm2, %v13250_v12 }
 0x1c7   : > { %11240 = vmatmul.mubr.msk.f32.gmra.mrb[0].mxu1 %vm876_vm2, %v13254_v13 }
 0x1c8   : > { %11242 = vmatprep.mubr.msk.f32.mxu1 %vm876_vm2, %v13258_v15 }
 0x1cb   : > { %11243 = vmatmul.mubr.msk.f32.gmra.mrb[2].mxu1 %vm876_vm2, %v13262_v16 }
 0x1cc   : > { %11245 = vmatprep.mubr.msk.f32.mxu1 %vm876_vm2, %v13266_v17 }
 0x1cf   : > { %11246 = vmatmul.mubr.msk.f32.gmra.mrb[4].mxu1 %vm876_vm2, %v13270_v18 }
 0x1d0   : > { %11248 = vmatprep.mubr.msk.f32.mxu1 %vm876_vm2, %v13274_v20 }
 0x1d3   : > { %11249 = vmatmul.mubr.msk.f32.gmra.mrb[6].mxu1 %vm876_vm2, %v13278_v21 }
 0x1d4   : > { %11251 = vmatprep.mubr.msk.f32.mxu1 %vm876_vm2, %v13282_v22 }
 0x1d7   : > { %11252 = vmatmul.mubr.msk.f32.gmra.mrb[8].mxu1 %vm876_vm2, %v13290_v26 }
 0x1d8   : > { %11254 = vmatprep.mubr.msk.f32.mxu1 %vm876_vm2, %v13294_v27 }
 0x1d9   : > { %v13509_v19 = vpop.f32.mrb[4].mxu0 }
 0x1da   : > { %15839 = vst [vmem:[#allocation40_spill] sm:$0xff] %v13509_v19  ;;  %v13511_v62 = vpop.f32.mrb[5].mxu0 }
 0x1db   : > { %15840 = vst [vmem:[#allocation41_spill] sm:$0xff] %v13511_v62  ;;  %11255 = vmatmul.mubr.msk.f32.gmra.mrb[10].mxu1 %vm876_vm2, %v13298_v28 }
 0x1dc   : > { %11257 = vmatprep.mubr.msk.f32.mxu1 %vm876_vm2, %v13302_v33 }
 0x1dd   : > { %v13517_v63 = vpop.f32.mrb[6].mxu0 }
 0x1de   : > { %15841 = vst [vmem:[#allocation42_spill] sm:$0xff] %v13517_v63  ;;  %v13519_v21 = vpop.f32.mrb[7].mxu0 }
 0x1df   : > { %15842 = vst [vmem:[#allocation43_spill] sm:$0xff] %v13519_v21  ;;  %11258 = vmatmul.mubr.msk.f32.gmra.mrb[12].mxu1 %vm876_vm2, %v13306_v50  ;;  %v13539_v21 = vld [vmem:[#allocation2 + $0x207] sm:$0xff] }
 0x1e0   : > { %11260 = vmatprep.mubr.msk.f32.mxu1 %vm876_vm2, %v13310_v58 }
 0x1e1   : > { %v13525_v27 = vpop.f32.mrb[8].mxu0 }
 0x1e2   : > { %15843 = vst [vmem:[#allocation44_spill] sm:$0xff] %v13525_v27  ;;  %v13527_v19 = vpop.f32.mrb[9].mxu0 }
 0x1e3   : > { %15844 = vst [vmem:[#allocation45_spill] sm:$0xff] %v13527_v19  ;;  %11261 = vmatmul.mubr.msk.f32.gmra.mrb[14].mxu1 %vm876_vm2, %v13314_v60  ;;  %v13545_v19 = vld [vmem:[#allocation2 + $0x20f] sm:$0xff] }
 0x1e4   : > { %11263 = vmatprep.mubr.msk.f32.mxu1 %vm876_vm2, %v13318_v8 }
 0x1e5   : > { %v13533_v62 = vpop.f32.mrb[10].mxu0 }
 0x1e6   : > { %15845 = vst [vmem:[#allocation46_spill] sm:$0xff] %v13533_v62  ;;  %v13535_v63 = vpop.f32.mrb[11].mxu0  ;;  %v9965_v62 = vld [vmem:[%s15671_s6 + $0x18] sm:$0xf] }
 0x1e7   : > { %15846 = vst [vmem:[#allocation47_spill] sm:$0xff] %v13535_v63  ;;  %11264 = vmatmul.mubr.msk.f32.gmra.mrb[16].mxu1 %vm876_vm2, %v13322_v24 }
 0x1e8   : > { %11266 = vmatprep.mubr.msk.f32.mxu1 %vm876_vm2, %v13539_v21 }
 0x1e9   : > { %v13543_v27 = vpop.f32.mrb[12].mxu0 }
 0x1ea   : > { %15847 = vst [vmem:[#allocation48_spill] sm:$0xff] %v13543_v27  ;;  %v13547_v60 = vpop.f32.mrb[13].mxu0 }
 0x1eb   : > { %11267 = vmatmul.mubr.msk.f32.gmra.mrb[18].mxu1 %vm876_vm2, %v13545_v19 }
 0x1ec   : > { %11271 = vmatprep.mubr.msk.f32.mxu1 %vm876_vm2, %v13051_v29  ;;  %v15848_v29 = vld [vmem:[#allocation7_spill] sm:$0xff] }
 0x1ed   : > { %v13553_v63 = vpop.f32.mrb[14].mxu0 }
 0x1ee   : > { %v11523_v27 = vpop.f32.mrb[15].mxu0 }
 0x1ef   : > { %11272 = vmatmul.mubr.msk.f32.vlgmr.msra.gmra.mrb[20].mxu1 %vm876_vm2, %v13055_v31  ;;  %v13618_v31 = vld [vmem:[#allocation2 + $0x208] sm:$0xff] }
 0x1f0   : > { %11320 = vmatpush3.msk.msra.mxu1 %vm1145_vm3, %v9931_v5  ;;  %11274 = vmatprep.mubr.msk.f32.mxu1 %vm876_vm2, %v13076_v34  ;;  %v15850_v34 = vld [vmem:[#allocation14_spill] sm:$0xff] }
 0x1f1   : > { %11369 = vmatprep.subr.msk.mxu1 %vm1145_vm3, %v9965_v62 }
 0x1f3   : > { %11275 = vmatmul.mubr.msk.f32.gmra.mrb[22].mxu1 %vm876_vm2, %v13088_v36  ;;  %v15851_v36 = vld [vmem:[#allocation15_spill] sm:$0xff] }
 0x1f4   : > { %11277 = vmatprep.mubr.msk.f32.mxu1 %vm876_vm2, %v13096_v14  ;;  %v15853_v14 = vld [vmem:[#allocation17_spill] sm:$0xff] }
 0x1f7   : > { %11278 = vmatmul.mubr.msk.f32.gmra.mrb[24].mxu1 %vm876_vm2, %v13104_v39  ;;  %v15855_v39 = vld [vmem:[#allocation19_spill] sm:$0xff] }
 0x1f8   : > { %11280 = vmatprep.mubr.msk.f32.mxu1 %vm876_vm2, %v13112_v41  ;;  %v15857_v41 = vld [vmem:[#allocation21_spill] sm:$0xff] }
 0x1fb   : > { %11281 = vmatmul.mubr.msk.f32.gmra.mrb[26].mxu1 %vm876_vm2, %v13120_v43  ;;  %v15859_v43 = vld [vmem:[#allocation23_spill] sm:$0xff] }
 0x1fc   : > { %11283 = vmatprep.mubr.msk.f32.mxu1 %vm876_vm2, %v13128_v45  ;;  %v15861_v45 = vld [vmem:[#allocation25_spill] sm:$0xff] }
 0x1ff   : > { %11284 = vmatmul.mubr.msk.f32.gmra.mrb[28].mxu1 %vm876_vm2, %v13136_v47  ;;  %v15864_v47 = vld [vmem:[#allocation27_spill] sm:$0xff] }
 0x200   : > { %11286 = vmatprep.mubr.msk.f32.mxu1 %vm876_vm2, %v13053_v30  ;;  %v15849_v30 = vld [vmem:[#allocation8_spill] sm:$0xff] }
 0x203   : > { %11287 = vmatmul.mubr.msk.f32.gmra.mrb[30].mxu1 %vm876_vm2, %v13065_v32  ;;  %v13622_v32 = vld [vmem:[#allocation2 + $0x210] sm:$0xff] }
 0x204   : > { %11289 = vmatprep.mubr.msk.f32.mxu1 %vm876_vm2, %v13082_v35  ;;  %v13631_v35 = vld [vmem:[%s15671_s6 + $0x1c] sm:$0xf] }
 0x207   : > { %11290 = vmatmul.mubr.msk.f32.gmra.mrb[0].mxu1 %vm876_vm2, %v13090_v37  ;;  %v15852_v37 = vld [vmem:[#allocation16_spill] sm:$0xff] }
 0x208   : > { %11292 = vmatprep.mubr.msk.f32.mxu1 %vm876_vm2, %v13098_v38  ;;  %v15854_v38 = vld [vmem:[#allocation18_spill] sm:$0xff] }
 0x20b   : > { %11293 = vmatmul.mubr.msk.f32.gmra.mrb[2].mxu1 %vm876_vm2, %v13106_v40  ;;  %v15856_v40 = vld [vmem:[#allocation20_spill] sm:$0xff] }
 0x20c   : > { %11295 = vmatprep.mubr.msk.f32.mxu1 %vm876_vm2, %v13114_v42  ;;  %v15858_v42 = vld [vmem:[#allocation22_spill] sm:$0xff] }
 0x20f   : > { %11296 = vmatmul.mubr.msk.f32.gmra.mrb[4].mxu1 %vm876_vm2, %v13122_v44  ;;  %v15860_v44 = vld [vmem:[#allocation24_spill] sm:$0xff] }
 0x210   : > { %11298 = vmatprep.mubr.msk.f32.mxu1 %vm876_vm2, %v13130_v46  ;;  %v15862_v46 = vld [vmem:[#allocation26_spill] sm:$0xff] }
 0x213   : > { %11299 = vmatmul.mubr.msk.f32.gmra.mrb[6].mxu1 %vm876_vm2, %v13138_v48  ;;  %v15865_v48 = vld [vmem:[#allocation28_spill] sm:$0xff] }
 0x214   : > { %11301 = vmatprep.mubr.msk.f32.mxu1 %vm876_vm2, %v13144_v49  ;;  %v12616_v49 = vmov 0  }
 0x215   : > { %12595 = vset.pattern.permute.xlu0 %v12616_v49  ;;  %12596 = vset.pattern.permute.xlu1 %v12616_v49  ;;  %v15871_v49 = vld [vmem:[#allocation34_spill] sm:$0xff] }
 0x217   : > { %11302 = vmatmul.mubr.msk.f32.gmra.mrb[8].mxu1 %vm876_vm2, %v13152_v51  ;;  %v13670_v51 = vld [vmem:[#allocation4] ss:$0 sm:$0xff] }
 0x218   : > { %11304 = vmatprep.mubr.msk.f32.mxu1 %vm876_vm2, %v13157_v52  ;;  %v4545_v52 = vld [vmem:[%s13664_s8] sm:$0xff] }
 0x21b   : > { %11305 = vmatmul.mubr.msk.f32.gmra.mrb[10].mxu1 %vm876_vm2, %v13163_v53  ;;  %v4583_v53 = vmul.f32 %v13670_v51, %v4545_v52  ;;  %v4550_v52 = vld [vmem:[%s13664_s8 + $0x28] sm:$0xff] }
 0x21c   : > { %11307 = vmatprep.mubr.msk.f32.mxu1 %vm876_vm2, %v13167_v25  ;;  %v15866_v25 = vld [vmem:[#allocation29_spill] sm:$0xff] }
 0x21d   : > { %4617 = vperm.xlu0 %12595, %v4583_v53   ;;  %v4551_v53 = vld [vmem:[%s13664_s8 + $0x30] sm:$0xff] }
 0x21f   : > { %11308 = vmatmul.mubr.msk.f32.gmra.mrb[12].mxu1 %vm876_vm2, %v13171_v54  ;;  %v15867_v54 = vld [vmem:[#allocation30_spill] sm:$0xff] }
 0x220   : > { %11310 = vmatprep.mubr.msk.f32.mxu1 %vm876_vm2, %v13175_v55  ;;  %v4547_v55 = vld [vmem:[%s13664_s8 + $0x10] sm:$0xff] }
 0x221   : > { %v4585_v27 = vmul.f32 %v13670_v51, %v4547_v55  ;;  %v15872_v55 = vld [vmem:[#allocation35_spill] sm:$0xff] }
 0x223   : > { %11311 = vmatmul.mubr.msk.f32.gmra.mrb[14].mxu1 %vm876_vm2, %v13179_v56  ;;  %v4546_v56 = vld [vmem:[%s13664_s8 + $0x8] sm:$0xff]  ;;  %4627 = vperm.xlu1 %12596, %v4585_v27   ;;  %v4552_v27 = vld [vmem:[%s13664_s8 + $0x38] sm:$0xff] }
 0x224   : > { %11313 = vmatprep.mubr.msk.f32.mxu1 %vm876_vm2, %v15848_v29  ;;  %v4584_v5 = vmul.f32 %v13670_v51, %v4546_v56  ;;  %v15869_v29 = vld [vmem:[#allocation32_spill] sm:$0xff] }
 0x225   : > { %v15873_v56 = vld [vmem:[#allocation36_spill] sm:$0xff] }
 0x226   : > { %4622 = vperm.xlu0 %12595, %v4584_v5   ;;  %v4553_v5 = vld [vmem:[%s13664_s8 + $0x40] sm:$0xff] }
 0x227   : > { %11314 = vmatmul.mubr.msk.f32.gmra.mrb[16].mxu1 %vm876_vm2, %v15849_v30  ;;  %v4548_v30 = vld [vmem:[%s13664_s8 + $0x18] sm:$0xff] }
 0x228   : > { %11316 = vmatprep.mubr.msk.f32.mxu1 %vm876_vm2, %v13618_v31 }
 0x22b   : > { %11317 = vmatmul.mubr.msk.f32.gmra.mrb[18].mxu1 %vm876_vm2, %v13622_v32 }
 0x22c   : > { %11321 = vmatprep.mubr.msk.f32.mxu1 %vm876_vm2, %v15850_v34  ;;  %v4549_v34 = vld [vmem:[%s13664_s8 + $0x20] sm:$0xff] }
 0x22f   : > { %11322 = vmatmul.mubr.msk.f32.vlgmr.msra.gmra.mrb[20].mxu1 %vm876_vm2, %v15851_v36  ;;  %v4586_v36 = vmul.f32 %v13670_v51, %v4548_v30  ;;  %v15874_v30 = vld [vmem:[#allocation37_spill] sm:$0xff] }
 0x230   : > { %11370 = vmatpush3.msk.msra.mxu1 %vm1145_vm3, %v9965_v62  ;;  %11324 = vmatprep.mubr.msk.f32.mxu1 %vm876_vm2, %v15852_v37  ;;  %v15868_v62 = vld [vmem:[#allocation31_spill] sm:$0xff] }
 0x231   : > { %11419 = vmatprep.subr.msk.mxu1 %vm1145_vm3, %v13631_v35  ;;  %4632 = vperm.xlu1 %12596, %v4586_v36   ;;  %v4554_v36 = vld [vmem:[%s13664_s8 + $0x48] sm:$0xff] }
 0x233   : > { %11325 = vmatmul.mubr.msk.f32.gmra.mrb[22].mxu1 %vm876_vm2, %v15853_v14 }
 0x234   : > { %11327 = vmatprep.mubr.msk.f32.mxu1 %vm876_vm2, %v15854_v38 }
 0x237   : > { %11328 = vmatmul.mubr.msk.f32.gmra.mrb[24].mxu1 %vm876_vm2, %v15855_v39 }
 0x238   : > { %11330 = vmatprep.mubr.msk.f32.mxu1 %vm876_vm2, %v15856_v40 }
 0x23b   : > { %11331 = vmatmul.mubr.msk.f32.gmra.mrb[26].mxu1 %vm876_vm2, %v15857_v41 }
 0x23c   : > { %11333 = vmatprep.mubr.msk.f32.mxu1 %vm876_vm2, %v15858_v42 }
 0x23f   : > { %11334 = vmatmul.mubr.msk.f32.gmra.mrb[28].mxu1 %vm876_vm2, %v15859_v43 }
 0x240   : > { %11336 = vmatprep.mubr.msk.f32.mxu1 %vm876_vm2, %v15860_v44 }
 0x243   : > { %11337 = vmatmul.mubr.msk.f32.gmra.mrb[30].mxu1 %vm876_vm2, %v15861_v45 }
 0x244   : > { %11339 = vmatprep.mubr.msk.f32.mxu1 %vm876_vm2, %v15862_v46 }
 0x247   : > { %11340 = vmatmul.mubr.msk.f32.gmra.mrb[0].mxu1 %vm876_vm2, %v15864_v47  ;;  %v4587_v47 = vmul.f32 %v13670_v51, %v4549_v34  ;;  %v15875_v34 = vld [vmem:[#allocation38_spill] sm:$0xff] }
 0x248   : > { %11342 = vmatprep.mubr.msk.f32.mxu1 %vm876_vm2, %v15865_v48  ;;  %v15870_v48 = vld [vmem:[#allocation33_spill] sm:$0xff] }
 0x249   : > { %4637 = vperm.xlu0 %12595, %v4587_v47   ;;  %v4555_v47 = vld [vmem:[%s13664_s8 + $0x50] sm:$0xff] }
 0x24b   : > { %11343 = vmatmul.mubr.msk.f32.gmra.mrb[2].mxu1 %vm876_vm2, %v15866_v25  ;;  %v4588_v25 = vmul.f32 %v13670_v51, %v4550_v52  ;;  %v15876_v52 = vld [vmem:[#allocation39_spill] sm:$0xff] }
 0x24c   : > { %11345 = vmatprep.mubr.msk.f32.mxu1 %vm876_vm2, %v15867_v54  ;;  %v4589_v54 = vmul.f32 %v13670_v51, %v4551_v53  ;;  %v4556_v53 = vld [vmem:[%s13664_s8 + $0x58] sm:$0xff] }
 0x24d   : > { %4642 = vperm.xlu1 %12596, %v4588_v25   ;;  %v4557_v25 = vld [vmem:[%s13664_s8 + $0x60] sm:$0xff] }
 0x24e   : > { %4647 = vperm.xlu0 %12595, %v4589_v54   ;;  %v4594_v54 = vmul.f32 %v13670_v51, %v4556_v53  ;;  %v4564_v53 = vld [vmem:[%s13664_s8 + $0x98] sm:$0xff] }
 0x24f   : > { %11346 = vmatmul.mubr.msk.f32.gmra.mrb[4].mxu1 %vm876_vm2, %v15868_v62  ;;  %v4590_v62 = vmul.f32 %v13670_v51, %v4552_v27 }
 0x250   : > { %11348 = vmatprep.mubr.msk.f32.mxu1 %vm876_vm2, %v15869_v29  ;;  %v4591_v29 = vmul.f32 %v13670_v51, %v4553_v5 }
 0x251   : > { %4652 = vperm.xlu1 %12596, %v4590_v62   ;;  %v13732_v62 = vld [vmem:[#allocation2 + $0x209] sm:$0xff] }
 0x252   : > { %4657 = vperm.xlu0 %12595, %v4591_v29   ;;  %v4561_v29 = vld [vmem:[%s13664_s8 + $0x80] sm:$0xff] }
 0x253   : > { %11349 = vmatmul.mubr.msk.f32.gmra.mrb[6].mxu1 %vm876_vm2, %v15870_v48  ;;  %v4592_v48 = vmul.f32 %v13670_v51, %v4554_v36  ;;  %v4563_v36 = vld [vmem:[%s13664_s8 + $0x90] sm:$0xff] }
 0x254   : > { %11351 = vmatprep.mubr.msk.f32.mxu1 %vm876_vm2, %v15871_v49  ;;  %v4593_v49 = vmul.f32 %v13670_v51, %v4555_v47 }
 0x255   : > { %4662 = vperm.xlu1 %12596, %v4592_v48   ;;  %v4601_v48 = vmul.f32 %v13670_v51, %v4563_v36 }
 0x256   : > { %4667 = vperm.xlu0 %12595, %v4593_v49   ;;  %v13753_v49 = vld [vmem:[%s15671_s6 + $0x20] sm:$0xf] }
 0x257   : > { %11352 = vmatmul.mubr.msk.f32.gmra.mrb[8].mxu1 %vm876_vm2, %v15872_v55  ;;  %v4595_v55 = vmul.f32 %v13670_v51, %v4557_v25  ;;  %v4565_v25 = vld [vmem:[%s13664_s8 + $0xa0] sm:$0xff] }
 0x258   : > { %11354 = vmatprep.mubr.msk.f32.mxu1 %vm876_vm2, %v15873_v56  ;;  %v4559_v56 = vld [vmem:[%s13664_s8 + $0x70] sm:$0xff] }
 0x259   : > { %4672 = vperm.xlu1 %12596, %v4594_v54   ;;  %v4597_v5 = vmul.f32 %v13670_v51, %v4559_v56  ;;  %v4912_v54 = vld [vmem:[%s15675_s10 + $0x10] sm:$0xff]  ;;  %v15877_v56 = vmov 0.0|0.0  }
 0x25a   : > { %4677 = vperm.xlu0 %12595, %v4595_v55   ;;  %v4913_v55 = vld [vmem:[%s15675_s10 + $0x18] sm:$0xff] }
 0x25b   : > { %11355 = vmatmul.mubr.msk.f32.gmra.mrb[10].mxu1 %vm876_vm2, %v15874_v30  ;;  %v4599_v30 = vmul.f32 %v13670_v51, %v4561_v29  ;;  %v4569_v29 = vld [vmem:[%s13664_s8 + $0xc0] sm:$0xff] }
 0x25c   : > { %11357 = vmatprep.mubr.msk.f32.mxu1 %vm876_vm2, %v15875_v34  ;;  %v13740_v34 = vld [vmem:[#allocation2 + $0x211] sm:$0xff] }
 0x25e   : > { %4687 = vperm.xlu0 %12595, %v4597_v5   ;;  %v4567_v5 = vld [vmem:[%s13664_s8 + $0xb0] sm:$0xff] }
 0x25f   : > { %11358 = vmatmul.mubr.msk.f32.gmra.mrb[12].mxu1 %vm876_vm2, %v13437_v59  ;;  %v4558_v59 = vld [vmem:[%s13664_s8 + $0x68] sm:$0xff] }
 0x260   : > { %11360 = vmatprep.mubr.msk.f32.mxu1 %vm876_vm2, %v15876_v52  ;;  %v4596_v27 = vmul.f32 %v13670_v51, %v4558_v59  ;;  %v4911_v52 = vld [vmem:[%s15675_s10 + $0x8] sm:$0xff] }
 0x261   : > { %v4566_v59 = vld [vmem:[%s13664_s8 + $0xa8] sm:$0xff] }
 0x262   : > { %4682 = vperm.xlu1 %12596, %v4596_v27   ;;  %4697 = vperm.xlu0 %12595, %v4599_v30   ;;  %v4604_v27 = vmul.f32 %v13670_v51, %v4566_v59  ;;  %v4607_v30 = vmul.f32 %v13670_v51, %v4569_v29 }
 0x263   : > { %11361 = vmatmul.mubr.msk.f32.gmra.mrb[14].mxu1 %vm876_vm2, %v13445_v57  ;;  %v4560_v57 = vld [vmem:[%s13664_s8 + $0x78] sm:$0xff] }
 0x264   : > { %11363 = vmatprep.mubr.msk.f32.mxu1 %vm876_vm2, %v13449_v23  ;;  %v4598_v23 = vmul.f32 %v13670_v51, %v4560_v57  ;;  %v4568_v57 = vld [vmem:[%s13664_s8 + $0xb8] sm:$0xff] }
 0x266   : > { %4692 = vperm.xlu1 %12596, %v4598_v23   ;;  %4707 = vperm.xlu0 %12595, %v4601_v48   ;;  %v4606_v23 = vmul.f32 %v13670_v51, %v4568_v57  ;;  %v8667_v57 = vld [vmem:[%s13824_s0 + $0x40] sm:$0xff] }
 0x267   : > { %11364 = vmatmul.mubr.msk.f32.gmra.mrb[16].mxu1 %vm876_vm2, %v13453_v61  ;;  %v4562_v61 = vld [vmem:[%s13664_s8 + $0x88] sm:$0xff] }
 0x268   : > { %11366 = vmatprep.mubr.msk.f32.mxu1 %vm876_vm2, %v13732_v62  ;;  %v4600_v47 = vmul.f32 %v13670_v51, %v4562_v61  ;;  %v12601_v61 = vld [vmem:[%s12763_s25] sm:$0x1] }
 0x26a   : > { %4702 = vperm.xlu1 %12596, %v4600_v47  }
 0x26b   : > { %11367 = vmatmul.mubr.msk.f32.gmra.mrb[18].mxu1 %vm876_vm2, %v13740_v34 }
 0x26c   : > { %11371 = vmatprep.mubr.msk.f32.mxu1 %vm876_vm2, %v13210_v0  ;;  %v4910_v0 = vld [vmem:[%s15675_s10] sm:$0xff] }
 0x26f   : > { %11372 = vmatmul.mubr.msk.f32.vlgmr.msra.gmra.mrb[20].mxu1 %vm876_vm2, %v13214_v1  ;;  %v12058_v1 = vpack.c.bf16 %v4911_v52, %v4910_v0  ;;  %v4575_v52 = vld [vmem:[%s13664_s8 + $0xf0] sm:$0xff] }
 0x270   : > { %11420 = vmatpush3.msk.msra.mxu1 %vm1145_vm3, %v13631_v35  ;;  %11374 = vmatprep.mubr.msk.f32.mxu1 %vm876_vm2, %v13218_v2  ;;  %v4602_v35 = vmul.f32 %v13670_v51, %v4564_v53  ;;  %v4603_v2 = vmul.f32 %v13670_v51, %v4565_v25  ;;  %v4613_v53 = vmul.f32 %v13670_v51, %v4575_v52 }
 0x271   : > { %11469 = vmatprep.subr.msk.mxu1 %vm1145_vm3, %v13753_v49  ;;  %12059 = vmatpush3.bf16.msra.mxu0 %v12058_v1  ;;  %v8659_v1 = vld [vmem:[%s13824_s0] sm:$0xff] }
 0x272   : > { %4712 = vperm.xlu1 %12596, %v4602_v35   ;;  %4717 = vperm.xlu0 %12595, %v4603_v2  }
 0x273   : > { %11375 = vmatmul.mubr.msk.f32.gmra.mrb[22].mxu1 %vm876_vm2, %v13222_v3  ;;  %12060 = vmatprep.subr.bf16.mxu0 %v15877_v56  ;;  %v12061_v3 = vpack.c.bf16 %v4913_v55, %v4912_v54  ;;  %v15879_v55 = vld [vmem:[#allocation9_spill] sm:$0xff] }
 0x274   : > { %11377 = vmatprep.mubr.msk.f32.mxu1 %vm876_vm2, %v13226_v4  ;;  %v4605_v4 = vmul.f32 %v13670_v51, %v4567_v5 }
 0x275   : > { %12062 = vmatpush3.bf16.msra.mxu0 %v12061_v3  ;;  %v15880_v3 = vld [vmem:[#allocation12_spill] sm:$0xff] }
 0x276   : > { %4722 = vperm.xlu1 %12596, %v4604_v27   ;;  %4727 = vperm.xlu0 %12595, %v4605_v4   ;;  %v8664_v27 = vld [vmem:[%s13824_s0 + $0x28] sm:$0xff] }
 0x277   : > { %11378 = vmatmul.mubr.msk.f32.gmra.mrb[24].mxu1 %vm876_vm2, %v13230_v6  ;;  %v4570_v6 = vld [vmem:[%s13664_s8 + $0xc8] sm:$0xff] }
 0x278   : > { %11380 = vmatprep.mubr.msk.f32.mxu1 %vm876_vm2, %v13234_v7  ;;  %11533 = vmatmul.mubr.msk.f32.vlgmr.msra.gmra.mrb[16].mxu0 %vm766_vm1, %v12601_v61  ;;  %v4571_v7 = vld [vmem:[%s13664_s8 + $0xd0] sm:$0xff]  ;;  %v4608_v36 = vmul.f32 %v13670_v51, %v4570_v6  ;;  %v15881_v6 = vld [vmem:[#allocation13_spill] sm:$0xff] }
 0x279   : > { %v4609_v47 = vmul.f32 %v13670_v51, %v4571_v7 }
 0x27a   : > { %4732 = vperm.xlu1 %12596, %v4606_v23   ;;  %4737 = vperm.xlu0 %12595, %v4607_v30  }
 0x27b   : > { %11381 = vmatmul.mubr.msk.f32.gmra.mrb[26].mxu1 %vm876_vm2, %v13238_v9  ;;  %v4572_v9 = vld [vmem:[%s13664_s8 + $0xd8] sm:$0xff] }
 0x27c   : > { %11383 = vmatprep.mubr.msk.f32.mxu1 %vm876_vm2, %v13242_v10  ;;  %v4573_v10 = vld [vmem:[%s13664_s8 + $0xe0] sm:$0xff]  ;;  %v4610_v48 = vmul.f32 %v13670_v51, %v4572_v9  ;;  %v8673_v9 = vld [vmem:[%s13824_s0 + $0x70] sm:$0xff] }
 0x27d   : > { %v4611_v0 = vmul.f32 %v13670_v51, %v4573_v10 }
 0x27e   : > { %4742 = vperm.xlu1 %12596, %v4608_v36   ;;  %4747 = vperm.xlu0 %12595, %v4609_v47   ;;  %v8672_v47 = vld [vmem:[%s13824_s0 + $0x68] sm:$0xff] }
 0x27f   : > { %11384 = vmatmul.mubr.msk.f32.gmra.mrb[28].mxu1 %vm876_vm2, %v13246_v11  ;;  %v4574_v11 = vld [vmem:[%s13664_s8 + $0xe8] sm:$0xff] }
 0x280   : > { %11386 = vmatprep.mubr.msk.f32.mxu1 %vm876_vm2, %v13250_v12  ;;  %v4612_v12 = vmul.f32 %v13670_v51, %v4574_v11  ;;  %v8675_v11 = vld [vmem:[%s13824_s0 + $0x80] sm:$0xff] }
 0x282   : > { %4752 = vperm.xlu1 %12596, %v4610_v48   ;;  %4757 = vperm.xlu0 %12595, %v4611_v0   ;;  %v8674_v0 = vld [vmem:[%s13824_s0 + $0x78] sm:$0xff] }
 0x283   : > { %11387 = vmatmul.mubr.msk.f32.gmra.mrb[30].mxu1 %vm876_vm2, %v13254_v13  ;;  %v4576_v13 = vld [vmem:[%s13664_s8 + $0xf8] sm:$0xff]  ;;  %s15343_s8 = scalar_lea.vmem %s15684_s20, %s12940_s30 }
 0x284   : > { %11389 = vmatprep.mubr.msk.f32.mxu1 %vm876_vm2, %v13258_v15  ;;  %v13833_v15 = vld [vmem:[#allocation5] ss:$0 sm:$0xff]  ;;  %v4614_v35 = vmul.f32 %v13670_v51, %v4576_v13  ;;  %v8677_v13 = vld [vmem:[%s13824_s0 + $0x90] sm:$0xff] }
 0x285   : > { %v8697_v25 = vmul.f32 %v13833_v15, %v8659_v1  ;;  %v8702_v5 = vmul.f32 %v13833_v15, %v8664_v27  ;;  %v8705_v23 = vmul.f32 %v13833_v15, %v8667_v57  ;;  %v8710_v10 = vmul.f32 %v13833_v15, %v8672_v47 }
 0x286   : > { %4762 = vperm.xlu1 %12596, %v4612_v12   ;;  %4767 = vperm.xlu0 %12595, %v4613_v53   ;;  %v8711_v48 = vmul.f32 %v13833_v15, %v8673_v9  ;;  %v8713_v52 = vmul.f32 %v13833_v15, %v8675_v11  ;;  %v3649_v12 = vld [vmem:[#allocation2 + $0x48] sm:$0xff]  ;;  %v8715_v1 = vmul.f32 %v13833_v15, %v8677_v13  ;;  %v3666_v13 = vld [vmem:[#allocation2 + $0x150] sm:$0xff] }
 0x287   : > { %11390 = vmatmul.mubr.msk.f32.gmra.mrb[0].mxu1 %vm876_vm2, %v13262_v16  ;;  %v8660_v16 = vld [vmem:[%s13824_s0 + $0x8] sm:$0xff] }
 0x288   : > { %11392 = vmatprep.mubr.msk.f32.mxu1 %vm876_vm2, %v13266_v17  ;;  %v8661_v17 = vld [vmem:[%s13824_s0 + $0x10] sm:$0xff]  ;;  %v8698_v2 = vmul.f32 %v13833_v15, %v8660_v16  ;;  %v8676_v53 = vld [vmem:[%s13824_s0 + $0x88] sm:$0xff]  ;;  %v8679_v16 = vld [vmem:[%s13824_s0 + $0xa0] sm:$0xff] }
 0x289   : > { %v8699_v54 = vmul.f32 %v13833_v15, %v8661_v17  ;;  %v3651_v17 = vld [vmem:[#allocation2 + $0x68] sm:$0xff] }
 0x28a   : > { %4772 = vperm.xlu1 %12596, %v4614_v35   ;;  %8731 = vperm.xlu0 %12595, %v8697_v25   ;;  %v3650_v35 = vld [vmem:[#allocation2 + $0x50] sm:$0xff]  ;;  %v8678_v25 = vld [vmem:[%s13824_s0 + $0x98] sm:$0xff] }
 0x28b   : > { %11393 = vmatmul.mubr.msk.f32.gmra.mrb[2].mxu1 %vm876_vm2, %v13270_v18  ;;  %v8662_v18 = vld [vmem:[%s13824_s0 + $0x18] sm:$0xff] }
 0x28c   : > { %11395 = vmatprep.mubr.msk.f32.mxu1 %vm876_vm2, %v13274_v20  ;;  %v8663_v20 = vld [vmem:[%s13824_s0 + $0x20] sm:$0xff]  ;;  %v8700_v51 = vmul.f32 %v13833_v15, %v8662_v18  ;;  %v8717_v18 = vmul.f32 %v13833_v15, %v8679_v16  ;;  %v3672_v16 = vld [vmem:[#allocation2 + $0x1b0] sm:$0xff] }
 0x28d   : > { %v8701_v59 = vmul.f32 %v13833_v15, %v8663_v20  ;;  %v3652_v20 = vld [vmem:[#allocation2 + $0x70] sm:$0xff] }
 0x28e   : > { %8736 = vperm.xlu1 %12596, %v8698_v2   ;;  %8741 = vperm.xlu0 %12595, %v8699_v54   ;;  %v8690_v2 = vld [vmem:[%s13824_s0 + $0xf8] sm:$0xff] }
 0x28f   : > { %11396 = vmatmul.mubr.msk.f32.gmra.mrb[4].mxu1 %vm876_vm2, %v15879_v55  ;;  %v13915_v54 = vmul.f32 %v13833_v15, %v8690_v2  ;;  %v8716_v55 = vmul.f32 %v13833_v15, %v8678_v25  ;;  %v3671_v25 = vld [vmem:[#allocation2 + $0x1a8] sm:$0xff]  ;;  %v3674_v2 = vld [vmem:[#allocation2 + $0x1d0] sm:$0xff] }
 0x290   : > { %11398 = vmatprep.mubr.msk.f32.mxu1 %vm876_vm2, %v13282_v22  ;;  %v8665_v22 = vld [vmem:[%s13824_s0 + $0x30] sm:$0xff] }
 0x291   : > { %v8703_v4 = vmul.f32 %v13833_v15, %v8665_v22  ;;  %v3654_v22 = vld [vmem:[#allocation2 + $0x90] sm:$0xff] }
 0x292   : > { %8746 = vperm.xlu1 %12596, %v8700_v51   ;;  %8751 = vperm.xlu0 %12595, %v8701_v59   ;;  %v8680_v51 = vld [vmem:[%s13824_s0 + $0xa8] sm:$0xff]  ;;  %v8681_v59 = vld [vmem:[%s13824_s0 + $0xb0] sm:$0xff] }
 0x293   : > { %11399 = vmatmul.mubr.msk.f32.gmra.mrb[6].mxu1 %vm876_vm2, %v13290_v26  ;;  %v8666_v26 = vld [vmem:[%s13824_s0 + $0x38] sm:$0xff]  ;;  %v8719_v27 = vmul.f32 %v13833_v15, %v8681_v59 }
 0x294   : > { %11401 = vmatprep.mubr.msk.f32.mxu1 %vm876_vm2, %v15880_v3  ;;  %v8704_v29 = vmul.f32 %v13833_v15, %v8666_v26  ;;  %v8718_v3 = vmul.f32 %v13833_v15, %v8680_v51  ;;  %v12602_v26 = vld [vmem:[#allocation2 + $0xa8] sm:$0xff]  ;;  %v4064_v59 = vld [vmem:[#allocation2 + $0x1d1] sm:$0xff] }
 0x295   : > { %v4063_v51 = vld [vmem:[#allocation2 + $0x1c9] sm:$0xff] }
 0x296   : > { %8756 = vperm.xlu1 %12596, %v8702_v5   ;;  %8761 = vperm.xlu0 %12595, %v8703_v4   ;;  %v8682_v5 = vld [vmem:[%s13824_s0 + $0xb8] sm:$0xff]  ;;  %v8683_v4 = vld [vmem:[%s13824_s0 + $0xc0] sm:$0xff] }
 0x297   : > { %11402 = vmatmul.mubr.msk.f32.gmra.mrb[8].mxu1 %vm876_vm2, %v13298_v28  ;;  %v8668_v28 = vld [vmem:[%s13824_s0 + $0x48] sm:$0xff]  ;;  %v8720_v57 = vmul.f32 %v13833_v15, %v8682_v5  ;;  %v15882_v5 = vmov 0.0  }
 0x298   : > { %11404 = vmatprep.mubr.msk.f32.mxu1 %vm876_vm2, %v13302_v33  ;;  %v8669_v33 = vld [vmem:[%s13824_s0 + $0x50] sm:$0xff]  ;;  %v8706_v30 = vmul.f32 %v13833_v15, %v8668_v28  ;;  %5028 = vst.msk [vmem:[#allocation3 + $0x30] sm:$0xff] %vm5021_vm4, %v15882_v5  ;;  %5022 = vst.msk [vmem:[#allocation3] sm:$0xff] %vm5021_vm4, %v15882_v5 }
 0x299   : > { %v8707_v61 = vmul.f32 %v13833_v15, %v8669_v33  ;;  %v8685_v28 = vld [vmem:[%s13824_s0 + $0xd0] sm:$0xff]  ;;  %5023 = vst.msk [vmem:[#allocation3 + $0x8] sm:$0xff] %vm5021_vm4, %v15882_v5  ;;  %5024 = vst.msk [vmem:[#allocation3 + $0x10] sm:$0xff] %vm5021_vm4, %v15882_v5 }
 0x29a   : > { %8766 = vperm.xlu1 %12596, %v8704_v29   ;;  %8771 = vperm.xlu0 %12595, %v8705_v23   ;;  %v8721_v29 = vmul.f32 %v13833_v15, %v8683_v4  ;;  %v8684_v23 = vld [vmem:[%s13824_s0 + $0xc8] sm:$0xff]  ;;  %v12603_v33 = vld [vmem:[#allocation2 + $0xb0] sm:$0xff]  ;;  %5025 = vst.msk [vmem:[#allocation3 + $0x18] sm:$0xff] %vm5021_vm4, %v15882_v5  ;;  %5026 = vst.msk [vmem:[#allocation3 + $0x20] sm:$0xff] %vm5021_vm4, %v15882_v5 }
 0x29b   : > { %11405 = vmatmul.mubr.msk.f32.gmra.mrb[10].mxu1 %vm876_vm2, %v13306_v50  ;;  %v8670_v50 = vld [vmem:[%s13824_s0 + $0x58] sm:$0xff]  ;;  %5027 = vst.msk [vmem:[#allocation3 + $0x28] sm:$0xff] %vm5021_vm4, %v15882_v5  ;;  %5029 = vst.msk [vmem:[#allocation3 + $0x38] sm:$0xff] %vm5021_vm4, %v15882_v5  ;;  %v10072_v4 = vld [vmem:[%s15677_s12 + $0x8] sm:$0xff] }
 0x29c   : > { %11407 = vmatprep.mubr.msk.f32.mxu1 %vm876_vm2, %v13310_v58  ;;  %v8671_v58 = vld [vmem:[%s13824_s0 + $0x60] sm:$0xff]  ;;  %v8708_v7 = vmul.f32 %v13833_v15, %v8670_v50  ;;  %v3658_v50 = vld [vmem:[#allocation2 + $0xd0] sm:$0xff]  ;;  %5030 = vst.msk [vmem:[#allocation3 + $0x40] sm:$0xff] %vm5021_vm4, %v15882_v5  ;;  %5031 = vst.msk [vmem:[#allocation3 + $0x48] sm:$0xff] %vm5021_vm4, %v15882_v5  ;;  %11535 = vmatprep.subr.mxu0 %v10072_v4 }
 0x29d   : > { %v8709_v36 = vmul.f32 %v13833_v15, %v8671_v58  ;;  %v8686_v58 = vld [vmem:[%s13824_s0 + $0xd8] sm:$0xff]  ;;  %5032 = vst.msk [vmem:[#allocation3 + $0x50] sm:$0xff] %vm5021_vm4, %v15882_v5  ;;  %5033 = vst.msk [vmem:[#allocation3 + $0x58] sm:$0xff] %vm5021_vm4, %v15882_v5  ;;  %11536 = vmatpush3.msra.mxu0 %v10072_v4 }
 0x29e   : > { %8776 = vperm.xlu1 %12596, %v8706_v30   ;;  %8781 = vperm.xlu0 %12595, %v8707_v61   ;;  %v3657_v30 = vld [vmem:[#allocation2 + $0xc8] sm:$0xff]  ;;  %v8722_v61 = vmul.f32 %v13833_v15, %v8684_v23  ;;  %v8724_v47 = vmul.f32 %v13833_v15, %v8686_v58  ;;  %5034 = vst.msk [vmem:[#allocation3 + $0x60] sm:$0xff] %vm5021_vm4, %v15882_v5  ;;  %5035 = vst.msk [vmem:[#allocation3 + $0x68] sm:$0xff] %vm5021_vm4, %v15882_v5  ;;  %v14174_v23 = vld [vmem:[%s15677_s12 + $0x10] sm:$0xff] }
 0x29f   : > { %11408 = vmatmul.mubr.msk.f32.gmra.mrb[12].mxu1 %vm876_vm2, %v15881_v6  ;;  %v8723_v6 = vmul.f32 %v13833_v15, %v8685_v28  ;;  %5036 = vst.msk [vmem:[#allocation3 + $0x70] sm:$0xff] %vm5021_vm4, %v15882_v5  ;;  %5037 = vst.msk [vmem:[#allocation3 + $0x78] sm:$0xff] %vm5021_vm4, %v15882_v5 }
 0x2a0   : > { %11410 = vmatprep.mubr.msk.f32.mxu1 %vm876_vm2, %v13318_v8  ;;  %v3289_v8 = vld [vmem:[#allocation2 + $0x227] sm:$0xff]  ;;  %5038 = vst.msk [vmem:[#allocation3 + $0x80] sm:$0xff] %vm5021_vm4, %v15882_v5  ;;  %5039 = vst.msk [vmem:[#allocation3 + $0x88] sm:$0xff] %vm5021_vm4, %v15882_v5 }
 0x2a1   : > { %5040 = vst.msk [vmem:[#allocation3 + $0x90] sm:$0xff] %vm5021_vm4, %v15882_v5  ;;  %5041 = vst.msk [vmem:[#allocation3 + $0x98] sm:$0xff] %vm5021_vm4, %v15882_v5 }
 0x2a2   : > { %8786 = vperm.xlu1 %12596, %v8708_v7   ;;  %8791 = vperm.xlu0 %12595, %v8709_v36   ;;  %v8687_v7 = vld [vmem:[%s13824_s0 + $0xe0] sm:$0xff]  ;;  %v3659_v36 = vld [vmem:[#allocation2 + $0xe8] sm:$0xff]  ;;  %5042 = vst.msk [vmem:[#allocation3 + $0xa0] sm:$0xff] %vm5021_vm4, %v15882_v5  ;;  %5043 = vst.msk [vmem:[#allocation3 + $0xa8] sm:$0xff] %vm5021_vm4, %v15882_v5  ;;  %v4628_v28 = vpop.permute.xlu1 %4627 }
 0x2a3   : > { %11411 = vmatmul.mubr.msk.f32.gmra.mrb[14].mxu1 %vm876_vm2, %v13322_v24  ;;  %v8712_v24 = vmul.f32 %v13833_v15, %v8674_v0  ;;  %v8725_v9 = vmul.f32 %v13833_v15, %v8687_v7  ;;  %v3661_v0 = vld [vmem:[#allocation2 + $0x108] sm:$0xff]  ;;  %5044 = vst.msk [vmem:[#allocation3 + $0xb0] sm:$0xff] %vm5021_vm4, %v15882_v5  ;;  %5045 = vst.msk [vmem:[#allocation3 + $0xb8] sm:$0xff] %vm5021_vm4, %v15882_v5 }
 0x2a4   : > { %11413 = vmatprep.mubr.msk.f32.mxu1 %vm876_vm2, %v13539_v21  ;;  %v3290_v21 = vld [vmem:[#allocation2 + $0x22f] sm:$0xff]  ;;  %5046 = vst.msk [vmem:[#allocation3 + $0xc0] sm:$0xff] %vm5021_vm4, %v15882_v5  ;;  %5047 = vst.msk [vmem:[#allocation3 + $0xc8] sm:$0xff] %vm5021_vm4, %v15882_v5 }
 0x2a5   : > { %5048 = vst.msk [vmem:[#allocation3 + $0xd0] sm:$0xff] %vm5021_vm4, %v15882_v5  ;;  %5049 = vst.msk [vmem:[#allocation3 + $0xd8] sm:$0xff] %vm5021_vm4, %v15882_v5 }
 0x2a6   : > { %8796 = vperm.xlu1 %12596, %v8710_v10   ;;  %8801 = vperm.xlu0 %12595, %v8711_v48   ;;  %v8688_v10 = vld [vmem:[%s13824_s0 + $0xe8] sm:$0xff]  ;;  %v8689_v48 = vld [vmem:[%s13824_s0 + $0xf0] sm:$0xff]  ;;  %5050 = vst.msk [vmem:[#allocation3 + $0xe0] sm:$0xff] %vm5021_vm4, %v15882_v5  ;;  %5051 = vst.msk [vmem:[#allocation3 + $0xe8] sm:$0xff] %vm5021_vm4, %v15882_v5 }
 0x2a7   : > { %11414 = vmatmul.mubr.msk.f32.gmra.mrb[16].mxu1 %vm876_vm2, %v13545_v19  ;;  %v8714_v19 = vmul.f32 %v13833_v15, %v8676_v53  ;;  %v8726_v11 = vmul.f32 %v13833_v15, %v8688_v10  ;;  %v3665_v53 = vld [vmem:[#allocation2 + $0x148] sm:$0xff]  ;;  %5052 = vst.msk [vmem:[#allocation3 + $0xf0] sm:$0xff] %vm5021_vm4, %v15882_v5  ;;  %5053 = vst.msk [vmem:[#allocation3 + $0xf8] sm:$0xff] %vm5021_vm4, %v15882_v5 }
 0x2a8   : > { %11416 = vmatprep.mubr.msk.f32.mxu1 %vm876_vm2, %v3289_v8  ;;  %v3660_v8 = vld [vmem:[#allocation2 + $0xf0] sm:$0xff]  ;;  %5054 = vst.msk [vmem:[#allocation3 + $0x100] sm:$0xff] %vm5021_vm4, %v15882_v5  ;;  %5055 = vst.msk [vmem:[#allocation3 + $0x108] sm:$0xff] %vm5021_vm4, %v15882_v5 }
 0x2a9   : > { %5056 = vst.msk [vmem:[#allocation3 + $0x110] sm:$0xff] %vm5021_vm4, %v15882_v5  ;;  %5057 = vst.msk [vmem:[#allocation3 + $0x118] sm:$0xff] %vm5021_vm4, %v15882_v5 }
 0x2aa   : > { %8806 = vperm.xlu1 %12596, %v8712_v24   ;;  %8811 = vperm.xlu0 %12595, %v8713_v52   ;;  %v3662_v24 = vld [vmem:[#allocation2 + $0x110] sm:$0xff]  ;;  %v3663_v52 = vld [vmem:[#allocation2 + $0x128] sm:$0xff]  ;;  %5058 = vst.msk [vmem:[#allocation3 + $0x120] sm:$0xff] %vm5021_vm4, %v15882_v5  ;;  %5059 = vst.msk [vmem:[#allocation3 + $0x128] sm:$0xff] %vm5021_vm4, %v15882_v5 }
 0x2ab   : > { %11417 = vmatmul.mubr.msk.f32.gmra.mrb[18].mxu1 %vm876_vm2, %v3290_v21  ;;  %v8727_v21 = vmul.f32 %v13833_v15, %v8689_v48  ;;  %v3667_v15 = vld [vmem:[#allocation2 + $0x168] sm:$0xff]  ;;  %5060 = vst.msk [vmem:[#allocation3 + $0x130] sm:$0xff] %vm5021_vm4, %v15882_v5  ;;  %5061 = vst.msk [vmem:[#allocation3 + $0x138] sm:$0xff] %vm5021_vm4, %v15882_v5 }
 0x2ac   : > { %11421 = vmatprep.mubr.msk.f32.mxu1 %vm876_vm2, %v3649_v12  ;;  %v3664_v12 = vld [vmem:[#allocation2 + $0x130] sm:$0xff]  ;;  %5062 = vst.msk [vmem:[#allocation3 + $0x140] sm:$0xff] %vm5021_vm4, %v15882_v5  ;;  %5063 = vst.msk [vmem:[#allocation3 + $0x148] sm:$0xff] %vm5021_vm4, %v15882_v5  ;;  %v15883_v48 = vld [vmem:[#allocation6_spill] sm:$0xff] }
 0x2ad   : > { %5064 = vst.msk [vmem:[#allocation3 + $0x150] sm:$0xff] %vm5021_vm4, %v15882_v5  ;;  %5065 = vst.msk [vmem:[#allocation3 + $0x158] sm:$0xff] %vm5021_vm4, %v15882_v5 }
 0x2ae   : > { %8816 = vperm.xlu1 %12596, %v8714_v19   ;;  %8821 = vperm.xlu0 %12595, %v8715_v1   ;;  %v3668_v19 = vld [vmem:[#allocation2 + $0x170] sm:$0xff]  ;;  %v3669_v1 = vld [vmem:[#allocation2 + $0x188] sm:$0xff]  ;;  %5066 = vst.msk [vmem:[#allocation3 + $0x160] sm:$0xff] %vm5021_vm4, %v15882_v5  ;;  %5067 = vst.msk [vmem:[#allocation3 + $0x168] sm:$0xff] %vm5021_vm4, %v15882_v5 }
 0x2af   : > { %11422 = vmatmul.mubr.msk.f32.vlgmr.msra.gmra.mrb[20].mxu1 %vm876_vm2, %v3650_v35  ;;  %v3670_v35 = vld [vmem:[#allocation2 + $0x190] sm:$0xff]  ;;  %5068 = vst.msk [vmem:[#allocation3 + $0x170] sm:$0xff] %vm5021_vm4, %v15882_v5  ;;  %5069 = vst.msk [vmem:[#allocation3 + $0x178] sm:$0xff] %vm5021_vm4, %v15882_v5 }
 0x2b0   : > { %11470 = vmatpush3.msk.msra.mxu1 %vm1145_vm3, %v13753_v49  ;;  %11424 = vmatprep.mubr.msk.f32.mxu1 %vm876_vm2, %v3651_v17  ;;  %v3653_v49 = vld [vmem:[#allocation2 + $0x88] sm:$0xff]  ;;  %5070 = vst.msk [vmem:[#allocation3 + $0x180] sm:$0xff] %vm5021_vm4, %v15882_v5  ;;  %5071 = vst.msk [vmem:[#allocation3 + $0x188] sm:$0xff] %vm5021_vm4, %v15882_v5 }
 0x2b1   : > { %12063 = vmatprep.subr.bf16.mxu1 %v15877_v56  ;;  %v3673_v17 = vld [vmem:[#allocation2 + $0x1c8] sm:$0xff]  ;;  %5072 = vst.msk [vmem:[#allocation3 + $0x190] sm:$0xff] %vm5021_vm4, %v15882_v5  ;;  %5073 = vst.msk [vmem:[#allocation3 + $0x198] sm:$0xff] %vm5021_vm4, %v15882_v5  ;;  %v14633_v56 = vld [vmem:[%s15677_s12 + $0x20] sm:$0xff] }
 0x2b2   : > { %8826 = vperm.xlu1 %12596, %v8716_v55   ;;  %8831 = vperm.xlu0 %12595, %v8717_v18   ;;  %v3676_v55 = vld [vmem:[#allocation2 + $0x1f0] sm:$0xff]  ;;  %v3679_v18 = vld [vmem:[#allocation2 + $0x228] sm:$0xff]  ;;  %5074 = vst.msk [vmem:[#allocation3 + $0x1a0] sm:$0xff] %vm5021_vm4, %v15882_v5  ;;  %5075 = vst.msk [vmem:[#allocation3 + $0x1a8] sm:$0xff] %vm5021_vm4, %v15882_v5 }
 0x2b3   : > { %11425 = vmatmul.mubr.msk.f32.gmra.mrb[22].mxu1 %vm876_vm2, %v3652_v20  ;;  %v3680_v20 = vld [vmem:[#allocation2 + $0x230] sm:$0xff]  ;;  %5076 = vst.msk [vmem:[#allocation3 + $0x1b0] sm:$0xff] %vm5021_vm4, %v15882_v5  ;;  %5077 = vst.msk [vmem:[#allocation3 + $0x1b8] sm:$0xff] %vm5021_vm4, %v15882_v5 }
 0x2b4   : > { %11427 = vmatprep.mubr.msk.f32.mxu1 %vm876_vm2, %v3653_v49  ;;  %v4065_v49 = vld [vmem:[#allocation2 + $0x1e9] sm:$0xff]  ;;  %5078 = vst.msk [vmem:[#allocation3 + $0x1c0] sm:$0xff] %vm5021_vm4, %v15882_v5  ;;  %5079 = vst.msk [vmem:[#allocation3 + $0x1c8] sm:$0xff] %vm5021_vm4, %v15882_v5 }
 0x2b5   : > { %5080 = vst.msk [vmem:[#allocation3 + $0x1d0] sm:$0xff] %vm5021_vm4, %v15882_v5  ;;  %5081 = vst.msk [vmem:[#allocation3 + $0x1d8] sm:$0xff] %vm5021_vm4, %v15882_v5 }
 0x2b6   : > { %8836 = vperm.xlu1 %12596, %v8718_v3   ;;  %8841 = vperm.xlu0 %12595, %v8719_v27   ;;  %v4066_v3 = vld [vmem:[#allocation2 + $0x1f1] sm:$0xff]  ;;  %v4069_v27 = vld [vmem:[#allocation2 + $0x229] sm:$0xff]  ;;  %5082 = vst.msk [vmem:[#allocation3 + $0x1e0] sm:$0xff] %vm5021_vm4, %v15882_v5  ;;  %5083 = vst.msk [vmem:[#allocation3 + $0x1e8] sm:$0xff] %vm5021_vm4, %v15882_v5 }
 0x2b7   : > { %11428 = vmatmul.mubr.msk.f32.gmra.mrb[24].mxu1 %vm876_vm2, %v3654_v22  ;;  %v4070_v22 = vld [vmem:[#allocation2 + $0x231] sm:$0xff]  ;;  %5084 = vst.msk [vmem:[#allocation3 + $0x1f0] sm:$0xff] %vm5021_vm4, %v15882_v5  ;;  %5085 = vst.msk [vmem:[#allocation3 + $0x1f8] sm:$0xff] %vm5021_vm4, %v15882_v5 }
 0x2b8   : > { %11430 = vmatprep.mubr.msk.f32.mxu1 %vm876_vm2, %v12602_v26  ;;  %5086 = vst.msk [vmem:[#allocation3 + $0x200] sm:$0xff] %vm5021_vm4, %v15882_v5  ;;  %5087 = vst.msk [vmem:[#allocation3 + $0x208] sm:$0xff] %vm5021_vm4, %v15882_v5  ;;  %v5160_v26 = vld [vmem:[#allocation3 + $0x8] sm:$0xff] }
 0x2b9   : > { %5088 = vst.msk [vmem:[#allocation3 + $0x210] sm:$0xff] %vm5021_vm4, %v15882_v5  ;;  %5089 = vst.msk [vmem:[#allocation3 + $0x218] sm:$0xff] %vm5021_vm4, %v15882_v5  ;;  %11537 = vmatprep.mubr.msk.f32.mxu0 %vm5021_vm4, %v5160_v26 }
 0x2ba   : > { %8846 = vperm.xlu1 %12596, %v8720_v57   ;;  %8851 = vperm.xlu0 %12595, %v8721_v29   ;;  %5090 = vst.msk [vmem:[#allocation3 + $0x220] sm:$0xff] %vm5021_vm4, %v15882_v5  ;;  %5091 = vst.msk [vmem:[#allocation3 + $0x228] sm:$0xff] %vm5021_vm4, %v15882_v5  ;;  %v5159_v57 = vld [vmem:[%s15677_s12] sm:$0xff]  ;;  %v5161_v29 = vld [vmem:[#allocation3 + $0x10] sm:$0xff] }
 0x2bb   : > { %11431 = vmatmul.mubr.msk.f32.gmra.mrb[26].mxu1 %vm876_vm2, %v12603_v33  ;;  %5092 = vst.msk [vmem:[#allocation3 + $0x230] sm:$0xff] %vm5021_vm4, %v15882_v5  ;;  %5093 = vst.msk [vmem:[#allocation3 + $0x238] sm:$0xff] %vm5021_vm4, %v15882_v5  ;;  %11585 = vmatprep.subr.mxu0 %v5159_v57  ;;  %v4618_v33 = vpop.permute.xlu0 %4617 }
 0x2bc   : > { %11433 = vmatprep.mubr.msk.f32.mxu1 %vm876_vm2, %v3657_v30  ;;  %11538 = vmatmul.mubr.msk.f32.vlgmr.msra.gmra.mrb[18].mxu0 %vm5021_vm4, %v5161_v29  ;;  %v4633_v30 = vpop.permute.xlu1 %4632 }
 0x2bd   : > { %11586 = vmatpush3.msra.mxu0 %v5159_v57 }
 0x2be   : > { %8856 = vperm.xlu1 %12596, %v8722_v61   ;;  %8861 = vperm.xlu0 %12595, %v8723_v6   ;;  %v4504_v6 = vadd.f32 1e-08, %v13553_v63 }
 0x2bf   : > { %11434 = vmatmul.mubr.msk.f32.gmra.mrb[28].mxu1 %vm876_vm2, %v3658_v50  ;;  %11635 = vmatprep.subr.mxu0 %v14174_v23  ;;  %v4623_v61 = vpop.permute.xlu0 %4622 }
 0x2c0   : > { %11436 = vmatprep.mubr.msk.f32.mxu1 %vm876_vm2, %v3659_v36  ;;  %12597 = vrsqrt.f32 %v4504_v6 }
 0x2c2   : > { %8866 = vperm.xlu1 %12596, %v8724_v47   ;;  %8871 = vperm.xlu0 %12595, %v8725_v9  }
 0x2c3   : > { %11437 = vmatmul.mubr.msk.f32.gmra.mrb[30].mxu1 %vm876_vm2, %v3660_v8 }
 0x2c4   : > { %11439 = vmatprep.mubr.msk.f32.mxu1 %vm876_vm2, %v3661_v0 }
 0x2c6   : > { %8876 = vperm.xlu1 %12596, %v8726_v11   ;;  %8881 = vperm.xlu0 %12595, %v8727_v21   ;;  %v15884_v11 = vld [vmem:[#allocation10_spill] sm:$0xff] }
 0x2c7   : > { %11440 = vmatmul.mubr.msk.f32.gmra.mrb[0].mxu1 %vm876_vm2, %v3662_v24 }
 0x2c8   : > { %11442 = vmatprep.mubr.msk.f32.mxu1 %vm876_vm2, %v3663_v52  ;;  %v4638_v58 = vpop.permute.xlu0 %4637  ;;  %v15885_v52 = vld [vmem:[#allocation11_spill] sm:$0xff] }
 0x2ca   : > { %8886 = vperm.xlu1 %12596, %v13915_v54   ;;  %v3675_v54 = vld [vmem:[#allocation2 + $0x1e8] sm:$0xff]  ;;  %v12598_v8 = vpop.eup %12597 }
 0x2cb   : > { %11443 = vmatmul.mubr.msk.f32.gmra.mrb[2].mxu1 %vm876_vm2, %v3664_v12  ;;  %v14187_v0 = vrot.slane %v12598_v8, %v15883_v48 }
 0x2cc   : > { %11445 = vmatprep.mubr.msk.f32.mxu1 %vm876_vm2, %v3665_v53  ;;  %v4643_v50 = vpop.permute.xlu1 %4642  ;;  %v4914_v53 = vld [vmem:[%s15676_s11] sm:$0x1] }
 0x2cd   : > { %v14180_v36 = vpop.permute.xlu0 %4647 }
 0x2cf   : > { %11446 = vmatmul.mubr.msk.f32.gmra.mrb[4].mxu1 %vm876_vm2, %v3666_v13 }
 0x2d0   : > { %11448 = vmatprep.mubr.msk.f32.mxu1 %vm876_vm2, %v3667_v15  ;;  %v14178_v7 = vpop.permute.xlu1 %4652 }
 0x2d1   : > { %v14184_v9 = vpop.permute.xlu0 %4657 }
 0x2d3   : > { %11449 = vmatmul.mubr.msk.f32.gmra.mrb[6].mxu1 %vm876_vm2, %v3668_v19  ;;  %v14202_v19 = vld [vmem:[%s15674_s9] ss:$0 sm:$0xff] }
 0x2d4   : > { %11451 = vmatprep.mubr.msk.f32.mxu1 %vm876_vm2, %v3669_v1  ;;  %v14182_v47 = vpop.permute.xlu1 %4662 }
 0x2d5   : > { %v14196_v13 = vpop.permute.xlu0 %4667 }
 0x2d7   : > { %11452 = vmatmul.mubr.msk.f32.gmra.mrb[8].mxu1 %vm876_vm2, %v3670_v35 }
 0x2d8   : > { %11454 = vmatprep.mubr.msk.f32.mxu1 %vm876_vm2, %v3671_v25  ;;  %v14190_v63 = vpop.permute.xlu1 %4672 }
 0x2db   : > { %11455 = vmatmul.mubr.msk.f32.gmra.mrb[10].mxu1 %vm876_vm2, %v3672_v16  ;;  %v15886_v16 = vld [vmem:[#allocation40_spill] sm:$0xff] }
 0x2dc   : > { %11457 = vmatprep.mubr.msk.f32.mxu1 %vm876_vm2, %v3673_v17 }
 0x2df   : > { %11458 = vmatmul.mubr.msk.f32.gmra.mrb[12].mxu1 %vm876_vm2, %v3674_v2 }
 0x2e0   : > { %11460 = vmatprep.mubr.msk.f32.mxu1 %vm876_vm2, %v3675_v54 }
 0x2e3   : > { %11461 = vmatmul.mubr.msk.f32.gmra.mrb[14].mxu1 %vm876_vm2, %v3676_v55 }
 0x2e4   : > { %11463 = vmatprep.mubr.msk.f32.mxu1 %vm876_vm2, %v13618_v31  ;;  %v4050_v31 = vld [vmem:[#allocation2 + $0xf1] sm:$0xff] }
 0x2e7   : > { %11464 = vmatmul.mubr.msk.f32.gmra.mrb[16].mxu1 %vm876_vm2, %v13622_v32  ;;  %v4051_v32 = vld [vmem:[#allocation2 + $0x109] sm:$0xff] }
 0x2e8   : > { %11466 = vmatprep.mubr.msk.f32.mxu1 %vm876_vm2, %v3679_v18  ;;  %v15888_v18 = vld [vmem:[#allocation41_spill] sm:$0xff] }
 0x2eb   : > { %11467 = vmatmul.mubr.msk.f32.gmra.mrb[18].mxu1 %vm876_vm2, %v3680_v20 }
 0x2ec   : > { %11471 = vmatprep.mubr.msk.f32.mxu1 %vm876_vm2, %v15852_v37  ;;  %v4052_v37 = vld [vmem:[#allocation2 + $0x111] sm:$0xff] }
 0x2ef   : > { %11472 = vmatmul.mubr.msk.f32.vlgmr.msra.gmra.mrb[20].mxu1 %vm876_vm2, %v15853_v14  ;;  %v4053_v14 = vld [vmem:[#allocation2 + $0x129] sm:$0xff] }
 0x2f0   : > { %11474 = vmatprep.mubr.msk.f32.mxu1 %vm876_vm2, %v15854_v38  ;;  %v4054_v38 = vld [vmem:[#allocation2 + $0x131] sm:$0xff] }
 0x2f3   : > { %11475 = vmatmul.mubr.msk.f32.gmra.mrb[22].mxu1 %vm876_vm2, %v15855_v39  ;;  %v4055_v39 = vld [vmem:[#allocation2 + $0x149] sm:$0xff] }
 0x2f4   : > { %11477 = vmatprep.mubr.msk.f32.mxu1 %vm876_vm2, %v15856_v40  ;;  %v4056_v40 = vld [vmem:[#allocation2 + $0x151] sm:$0xff] }
 0x2f7   : > { %11478 = vmatmul.mubr.msk.f32.gmra.mrb[24].mxu1 %vm876_vm2, %v15857_v41  ;;  %v4057_v41 = vld [vmem:[#allocation2 + $0x169] sm:$0xff] }
 0x2f8   : > { %11480 = vmatprep.mubr.msk.f32.mxu1 %vm876_vm2, %v15858_v42  ;;  %v4058_v42 = vld [vmem:[#allocation2 + $0x171] sm:$0xff] }
 0x2fb   : > { %11481 = vmatmul.mubr.msk.f32.gmra.mrb[26].mxu1 %vm876_vm2, %v15859_v43  ;;  %v4059_v43 = vld [vmem:[#allocation2 + $0x189] sm:$0xff] }
 0x2fc   : > { %11483 = vmatprep.mubr.msk.f32.mxu1 %vm876_vm2, %v15860_v44  ;;  %v4060_v44 = vld [vmem:[#allocation2 + $0x191] sm:$0xff] }
 0x2ff   : > { %11484 = vmatmul.mubr.msk.f32.gmra.mrb[28].mxu1 %vm876_vm2, %v15861_v45  ;;  %v4061_v45 = vld [vmem:[#allocation2 + $0x1a9] sm:$0xff] }
 0x300   : > { %11486 = vmatprep.mubr.msk.f32.mxu1 %vm876_vm2, %v15862_v46  ;;  %v4062_v46 = vld [vmem:[#allocation2 + $0x1b1] sm:$0xff] }
 0x303   : > { %11487 = vmatmul.mubr.msk.f32.gmra.mrb[30].mxu1 %vm876_vm2, %v4050_v31 }
 0x304   : > { %11489 = vmatprep.mubr.msk.f32.mxu1 %vm876_vm2, %v4051_v32 }
 0x307   : > { %11490 = vmatmul.mubr.msk.f32.gmra.mrb[0].mxu1 %vm876_vm2, %v4052_v37  ;;  %v14211_v37 = vpop.permute.xlu1 %4682 }
 0x308   : > { %11492 = vmatprep.mubr.msk.f32.mxu1 %vm876_vm2, %v4053_v14 }
 0x30b   : > { %11493 = vmatmul.mubr.msk.f32.gmra.mrb[2].mxu1 %vm876_vm2, %v4054_v38  ;;  %v14229_v8 = vpop.permute.xlu1 %4692 }
 0x30c   : > { %11495 = vmatprep.mubr.msk.f32.mxu1 %vm876_vm2, %v4055_v39 }
 0x30f   : > { %11496 = vmatmul.mubr.msk.f32.gmra.mrb[4].mxu1 %vm876_vm2, %v4056_v40  ;;  %v14215_v40 = vpop.permute.xlu0 %4677 }
 0x310   : > { %11498 = vmatprep.mubr.msk.f32.mxu1 %vm876_vm2, %v4057_v41 }
 0x313   : > { %11499 = vmatmul.mubr.msk.f32.gmra.mrb[6].mxu1 %vm876_vm2, %v4058_v42 }
 0x314   : > { %11501 = vmatprep.mubr.msk.f32.mxu1 %vm876_vm2, %v4059_v43  ;;  %v15889_v43 = vld [vmem:[#allocation42_spill] sm:$0xff] }
 0x317   : > { %11502 = vmatmul.mubr.msk.f32.gmra.mrb[8].mxu1 %vm876_vm2, %v4060_v44 }
 0x318   : > { %11504 = vmatprep.mubr.msk.f32.mxu1 %vm876_vm2, %v4061_v45 }
 0x31b   : > { %11505 = vmatmul.mubr.msk.f32.gmra.mrb[10].mxu1 %vm876_vm2, %v4062_v46 }
 0x31c   : > { %11507 = vmatprep.mubr.msk.f32.mxu1 %vm876_vm2, %v4063_v51 }
 0x31f   : > { %11508 = vmatmul.mubr.msk.f32.gmra.mrb[12].mxu1 %vm876_vm2, %v4064_v59 }
 0x320   : > { %11510 = vmatprep.mubr.msk.f32.mxu1 %vm876_vm2, %v4065_v49  ;;  %v15890_v49 = vld [vmem:[#allocation43_spill] sm:$0xff] }
 0x323   : > { %11511 = vmatmul.mubr.msk.f32.gmra.mrb[14].mxu1 %vm876_vm2, %v4066_v3 }
 0x324   : > { %11513 = vmatprep.mubr.msk.f32.mxu1 %vm876_vm2, %v13732_v62 }
 0x327   : > { %11514 = vmatmul.mubr.msk.f32.gmra.mrb[16].mxu1 %vm876_vm2, %v13740_v34 }
 0x328   : > { %11516 = vmatprep.mubr.msk.f32.mxu1 %vm876_vm2, %v4069_v27 }
 0x32b   : > { %11517 = vmatmul.mubr.msk.f32.gmra.mrb[18].mxu1 %vm876_vm2, %v4070_v22 }
 0x32c   : > { %11998 = vmatprep.mubr.msk.f32.mxu1 %vm12614_vm0, %v15882_v5  ;;  %v5837_v5 = vld [vmem:[#allocation3 + $0x11] sm:$0xff] }
 0x34b   : > { %v4981_v62 = vpop.f32.mrb[16].mxu0 }
 0x34c   : > { %v11534_v34 = vpop.f32.mrb[17].mxu0  ;;  %v14206_v54 = vadd.f32 %v4981_v62, %v4914_v53 }
 0x34e   : > { %15887 = vst [vmem:[#allocation7_spill] sm:$0xff] %v14206_v54  ;;  %v14220_v45 = vrot.slane %v14206_v54, %v15883_v48  ;;  %v5836_v48 = vld [vmem:[#allocation3 + $0x9] sm:$0xff] }
 0x3c2   : > { %v11473_v10 = vpop.f32.mrb[20].mxu1 }
 0x3c3   : > { %v12071_v21 = vadd.f32 %v11473_v10, %v15884_v11  ;;  %v4238_v24 = vpop.f32.mrb[21].mxu1 }
 0x3c4   : > { %v12072_v12 = vadd.f32 %v4238_v24, %v15885_v52  ;;  %v15892_v24 = vld [vmem:[#allocation45_spill] sm:$0xff] }
 0x3c5   : > { %v4513_v15 = vmul.f32 %v12071_v21, %v14187_v0 }
 0x3c6   : > { %v4512_v1 = vmul.f32 %v12072_v12, %v14187_v0  ;;  %v11476_v35 = vpop.f32.mrb[22].mxu1  ;;  %v14233_v12 = vpop.permute.xlu0 %4687 }
 0x3c7   : > { %v4776_v25 = vadd.f32 %v4623_v61, %v4513_v15  ;;  %v12073_v17 = vadd.f32 %v11476_v35, %v15886_v16  ;;  %v4248_v2 = vpop.f32.mrb[23].mxu1  ;;  %v15891_v61 = vld [vmem:[#allocation44_spill] sm:$0xff] }
 0x3c8   : > { %v4775_v55 = vadd.f32 %v4618_v33, %v4512_v1  ;;  %v12074_v20 = vadd.f32 %v4248_v2, %v15888_v18 }
 0x3c9   : > { %v4815_v31 = vadd.f32 %v14202_v19, %v4776_v25  ;;  %v4515_v32 = vmul.f32 %v12073_v17, %v14187_v0 }
 0x3ca   : > { %v4814_v14 = vadd.f32 %v14202_v19, %v4775_v55  ;;  %v4514_v38 = vmul.f32 %v12074_v20, %v14187_v0  ;;  %v11479_v39 = vpop.f32.mrb[24].mxu1  ;;  %v15893_v55 = vld [vmem:[#allocation46_spill] sm:$0xff] }
 0x3cb   : > { %v4847_v41 = vmul.f32 0.2, %v4815_v31  ;;  %v4778_v42 = vadd.f32 %v4633_v30, %v4515_v32  ;;  %v12075_v44 = vadd.f32 %v11479_v39, %v15889_v43  ;;  %v4258_v46 = vpop.f32.mrb[25].mxu1 }
 0x3cc   : > { %v4846_v51 = vmul.f32 0.2, %v4814_v14  ;;  %v4777_v59 = vadd.f32 %v4628_v28, %v4514_v38  ;;  %v12076_v3 = vadd.f32 %v4258_v46, %v15890_v49  ;;  %v15894_v38 = vld [vmem:[#allocation47_spill] sm:$0xff] }
 0x3cd   : > { %v4879_v27 = vmax.f32 %v4815_v31, %v4847_v41  ;;  %v4817_v22 = vadd.f32 %v14202_v19, %v4778_v42  ;;  %v4517_v62 = vmul.f32 %v12075_v44, %v14187_v0  ;;  %v14250_v44 = vpop.permute.xlu1 %4702 }
 0x3ce   : > { %v4878_v34 = vmax.f32 %v4814_v14, %v4846_v51  ;;  %v4816_v4 = vadd.f32 %v14202_v19, %v4777_v59  ;;  %v4516_v26 = vmul.f32 %v12076_v3, %v14187_v0  ;;  %v11482_v57 = vpop.f32.mrb[26].mxu1 }
 0x3cf   : > { %v4849_v29 = vmul.f32 0.2, %v4817_v22  ;;  %v4780_v33 = vadd.f32 %v4643_v50, %v4517_v62  ;;  %v4990_v30 = vmul.f32 %v14220_v45, %v4879_v27  ;;  %v12077_v6 = vadd.f32 %v11482_v57, %v15891_v61  ;;  %v4268_v28 = vpop.f32.mrb[27].mxu1 }
 0x3d0   : > { %v4848_v10 = vmul.f32 0.2, %v4816_v4  ;;  %v4989_v11 = vmul.f32 %v14220_v45, %v4878_v34  ;;  %v4779_v21 = vadd.f32 %v4638_v58, %v4516_v26  ;;  %v12078_v52 = vadd.f32 %v4268_v28, %v15892_v24 }
 0x3d1   : > { %v4881_v53 = vmax.f32 %v4817_v22, %v4849_v29  ;;  %v4819_v15 = vadd.f32 %v14202_v19, %v4780_v33  ;;  %5096 = vst.msk [vmem:[#allocation3 + $0x30] sm:$0xff] %vm5021_vm4, %v4990_v30  ;;  %v4519_v50 = vmul.f32 %v12077_v6, %v14187_v0  ;;  %v15895_v22 = vld [vmem:[#allocation48_spill] sm:$0xff] }
 0x3d2   : > { %v4880_v1 = vmax.f32 %v4816_v4, %v4848_v10  ;;  %v4818_v35 = vadd.f32 %v14202_v19, %v4779_v21  ;;  %5095 = vst.msk [vmem:[#allocation3 + $0x28] sm:$0xff] %vm5021_vm4, %v4989_v11  ;;  %v4518_v25 = vmul.f32 %v12078_v52, %v14187_v0  ;;  %v11485_v16 = vpop.f32.mrb[28].mxu1 }
 0x3d3   : > { %v4851_v58 = vmul.f32 0.2, %v4819_v15  ;;  %v4992_v17 = vmul.f32 %v14220_v45, %v4881_v53  ;;  %v4782_v2 = vadd.f32 %v14178_v7, %v4519_v50  ;;  %v12079_v18 = vadd.f32 %v11485_v16, %v15893_v55  ;;  %v4278_v20 = vpop.f32.mrb[29].mxu1 }
 0x3d4   : > { %v4991_v31 = vmul.f32 %v14220_v45, %v4880_v1  ;;  %v4850_v32 = vmul.f32 0.2, %v4818_v35  ;;  %v4781_v14 = vadd.f32 %v14180_v36, %v4518_v25  ;;  %v12080_v39 = vadd.f32 %v4278_v20, %v15894_v38  ;;  %v14255_v36 = vpop.permute.xlu0 %4697 }
 0x3d5   : > { %v4883_v41 = vmax.f32 %v4819_v15, %v4851_v58  ;;  %5098 = vst.msk [vmem:[#allocation3 + $0x50] sm:$0xff] %vm5021_vm4, %v4992_v17  ;;  %v4821_v42 = vadd.f32 %v14202_v19, %v4782_v2  ;;  %v4521_v43 = vmul.f32 %v12079_v18, %v14187_v0  ;;  %v14280_v15 = vpop.permute.xlu1 %4712 }
 0x3d6   : > { %v4882_v7 = vmax.f32 %v4818_v35, %v4850_v32  ;;  %5097 = vst.msk [vmem:[#allocation3 + $0x48] sm:$0xff] %vm5021_vm4, %v4991_v31  ;;  %v4820_v46 = vadd.f32 %v14202_v19, %v4781_v14  ;;  %v4520_v51 = vmul.f32 %v12080_v39, %v14187_v0  ;;  %v11488_v59 = vpop.f32.mrb[30].mxu1 }
 0x3d7   : > { %v4994_v49 = vmul.f32 %v14220_v45, %v4883_v41  ;;  %v4853_v3 = vmul.f32 0.2, %v4821_v42  ;;  %v4784_v27 = vadd.f32 %v14182_v47, %v4521_v43  ;;  %v12081_v62 = vadd.f32 %v11488_v59, %v15895_v22  ;;  %v4288_v34 = vpop.f32.mrb[31].mxu1 }
 0x3d8   : > { %v4993_v4 = vmul.f32 %v14220_v45, %v4882_v7  ;;  %v4852_v26 = vmul.f32 0.2, %v4820_v46  ;;  %v4783_v57 = vadd.f32 %v14184_v9, %v4520_v51  ;;  %v12082_v29 = vadd.f32 %v4288_v34, %v13547_v60  ;;  %v14273_v60 = vld [vmem:[#allocation3 + $0x30] sm:$0xff]  ;;  %v14285_v16 = vpop.permute.xlu0 %4707 }
 0x3d9   : > { %5100 = vst.msk [vmem:[#allocation3 + $0x70] sm:$0xff] %vm5021_vm4, %v4994_v49  ;;  %v4885_v33 = vmax.f32 %v4821_v42, %v4853_v3  ;;  %v4823_v30 = vadd.f32 %v14202_v19, %v4784_v27  ;;  %v4523_v61 = vmul.f32 %v12081_v62, %v14187_v0  ;;  %v14266_v6 = vld [vmem:[#allocation3 + $0x28] sm:$0xff]  ;;  %v14311_v49 = vpop.permute.xlu1 %4722 }
 0x3da   : > { %5099 = vst.msk [vmem:[#allocation3 + $0x68] sm:$0xff] %vm5021_vm4, %v4993_v4  ;;  %v4884_v47 = vmax.f32 %v4820_v46, %v4852_v26  ;;  %v4822_v28 = vadd.f32 %v14202_v19, %v4783_v57  ;;  %v4522_v10 = vmul.f32 %v12082_v29, %v14187_v0  ;;  %v11491_v11 = vpop.f32.mrb[0].mxu1  ;;  %11540 = vmatprep.mubr.msk.f32.mxu0 %vm5021_vm4, %v14266_v6 }
 0x3db   : > { %v4996_v9 = vmul.f32 %v14220_v45, %v4885_v33  ;;  %v4855_v21 = vmul.f32 0.2, %v4823_v30  ;;  %v4786_v24 = vadd.f32 %v14190_v63, %v4523_v61  ;;  %v4525_v52 = vmul.f32 %v11491_v11, %v14187_v0  ;;  %v4298_v53 = vpop.f32.mrb[1].mxu1  ;;  %11541 = vmatmul.mubr.msk.f32.gmra.mrb[20].mxu0 %vm5021_vm4, %v14273_v60 }
 0x3dc   : > { %v4995_v50 = vmul.f32 %v14220_v45, %v4884_v47  ;;  %v4854_v1 = vmul.f32 0.2, %v4822_v28  ;;  %v4785_v35 = vadd.f32 %v14196_v13, %v4522_v10  ;;  %v4524_v25 = vmul.f32 %v14187_v0, %v4298_v53  ;;  %v14297_v31 = vld [vmem:[#allocation3 + $0x50] sm:$0xff]  ;;  %v4718_v4 = vpop.permute.xlu0 %4717 }
 0x3dd   : > { %5102 = vst.msk [vmem:[#allocation3 + $0x90] sm:$0xff] %vm5021_vm4, %v4996_v9  ;;  %v4887_v63 = vmax.f32 %v4823_v30, %v4855_v21  ;;  %v4825_v58 = vadd.f32 %v14202_v19, %v4786_v24  ;;  %v4788_v17 = vadd.f32 %v14211_v37, %v4525_v52  ;;  %v14290_v2 = vld [vmem:[#allocation3 + $0x48] sm:$0xff] }
 0x3de   : > { %5101 = vst.msk [vmem:[#allocation3 + $0x88] sm:$0xff] %vm5021_vm4, %v4995_v50  ;;  %v4886_v55 = vmax.f32 %v4822_v28, %v4854_v1  ;;  %v4824_v18 = vadd.f32 %v14202_v19, %v4785_v35  ;;  %v4787_v13 = vadd.f32 %v14215_v40, %v4524_v25  ;;  %v11494_v20 = vpop.f32.mrb[2].mxu1  ;;  %11543 = vmatprep.mubr.msk.f32.mxu0 %vm5021_vm4, %v14290_v2 }
 0x3df   : > { %v4998_v32 = vmul.f32 %v14220_v45, %v4887_v63  ;;  %v4857_v14 = vmul.f32 0.2, %v4825_v58  ;;  %v4827_v37 = vadd.f32 %v14202_v19, %v4788_v17  ;;  %v4527_v38 = vmul.f32 %v11494_v20, %v14187_v0  ;;  %v4308_v39 = vpop.f32.mrb[3].mxu1  ;;  %11544 = vmatmul.mubr.msk.f32.gmra.mrb[22].mxu0 %vm5021_vm4, %v14297_v31  ;;  %v4733_v63 = vpop.permute.xlu1 %4732 }
 0x3e0   : > { %v4997_v41 = vmul.f32 %v14220_v45, %v4886_v55  ;;  %v4856_v40 = vmul.f32 0.2, %v4824_v18  ;;  %v4826_v42 = vadd.f32 %v14202_v19, %v4787_v13  ;;  %v4526_v43 = vmul.f32 %v14187_v0, %v4308_v39  ;;  %v14317_v34 = vld [vmem:[#allocation3 + $0x70] sm:$0xff]  ;;  %v4728_v55 = vpop.permute.xlu0 %4727 }
 0x3e1   : > { %5104 = vst.msk [vmem:[#allocation3 + $0xb0] sm:$0xff] %vm5021_vm4, %v4998_v32  ;;  %v4889_v7 = vmax.f32 %v4825_v58, %v4857_v14  ;;  %v4859_v46 = vmul.f32 0.2, %v4827_v37  ;;  %v4790_v51 = vadd.f32 %v14229_v8, %v4527_v38  ;;  %v14309_v59 = vld [vmem:[#allocation3 + $0x68] sm:$0xff] }
 0x3e2   : > { %5103 = vst.msk [vmem:[#allocation3 + $0xa8] sm:$0xff] %vm5021_vm4, %v4997_v41  ;;  %v4888_v3 = vmax.f32 %v4824_v18, %v4856_v40  ;;  %v4858_v27 = vmul.f32 0.2, %v4826_v42  ;;  %v4789_v22 = vadd.f32 %v14233_v12, %v4526_v43  ;;  %v11497_v62 = vpop.f32.mrb[4].mxu1  ;;  %11546 = vmatprep.mubr.msk.f32.mxu0 %vm5021_vm4, %v14309_v59 }
 0x3e3   : > { %v5000_v26 = vmul.f32 %v14220_v45, %v4889_v7  ;;  %v4891_v8 = vmax.f32 %v4827_v37, %v4859_v46  ;;  %v4829_v57 = vadd.f32 %v14202_v19, %v4790_v51  ;;  %v4529_v29 = vmul.f32 %v11497_v62, %v14187_v0  ;;  %v4318_v33 = vpop.f32.mrb[5].mxu1  ;;  %11547 = vmatmul.mubr.msk.f32.gmra.mrb[24].mxu0 %vm5021_vm4, %v14317_v34  ;;  %v4743_v62 = vpop.permute.xlu1 %4742 }
 0x3e4   : > { %v4999_v12 = vmul.f32 %v14220_v45, %v4888_v3  ;;  %v4890_v30 = vmax.f32 %v4826_v42, %v4858_v27  ;;  %v4828_v61 = vadd.f32 %v14202_v19, %v4789_v22  ;;  %v4528_v47 = vmul.f32 %v14187_v0, %v4318_v33  ;;  %v14337_v50 = vld [vmem:[#allocation3 + $0x90] sm:$0xff] }
 0x3e5   : > { %5106 = vst.msk [vmem:[#allocation3 + $0xd0] sm:$0xff] %vm5021_vm4, %v5000_v26  ;;  %v5002_v28 = vmul.f32 %v14220_v45, %v4891_v8  ;;  %v4861_v10 = vmul.f32 0.2, %v4829_v57  ;;  %v4792_v11 = vadd.f32 %v14250_v44, %v4529_v29  ;;  %v14330_v9 = vld [vmem:[#allocation3 + $0x88] sm:$0xff] }
 0x3e6   : > { %5105 = vst.msk [vmem:[#allocation3 + $0xc8] sm:$0xff] %vm5021_vm4, %v4999_v12  ;;  %v5001_v21 = vmul.f32 %v14220_v45, %v4890_v30  ;;  %v4860_v24 = vmul.f32 0.2, %v4828_v61  ;;  %v4791_v52 = vadd.f32 %v14255_v36, %v4528_v47  ;;  %v11500_v53 = vpop.f32.mrb[6].mxu1  ;;  %11549 = vmatprep.mubr.msk.f32.mxu0 %vm5021_vm4, %v14330_v9  ;;  %v4738_v12 = vpop.permute.xlu0 %4737 }
 0x3e7   : > { %5108 = vst.msk [vmem:[#allocation3 + $0xf0] sm:$0xff] %vm5021_vm4, %v5002_v28  ;;  %v4893_v1 = vmax.f32 %v4829_v57, %v4861_v10  ;;  %v4831_v44 = vadd.f32 %v14202_v19, %v4792_v11  ;;  %v4531_v35 = vmul.f32 %v11500_v53, %v14187_v0  ;;  %v4328_v25 = vpop.f32.mrb[7].mxu1  ;;  %11550 = vmatmul.mubr.msk.f32.gmra.mrb[26].mxu0 %vm5021_vm4, %v14337_v50 }
 0x3e8   : > { %5107 = vst.msk [vmem:[#allocation3 + $0xe8] sm:$0xff] %vm5021_vm4, %v5001_v21  ;;  %v4892_v36 = vmax.f32 %v4828_v61, %v4860_v24  ;;  %v4830_v58 = vadd.f32 %v14202_v19, %v4791_v52  ;;  %v4530_v17 = vmul.f32 %v14187_v0, %v4328_v25  ;;  %v14355_v41 = vld [vmem:[#allocation3 + $0xb0] sm:$0xff] }
 0x3e9   : > { %v5004_v18 = vmul.f32 %v14220_v45, %v4893_v1  ;;  %v4863_v13 = vmul.f32 0.2, %v4831_v44  ;;  %v4794_v20 = vadd.f32 %v14280_v15, %v4531_v35  ;;  %v14349_v32 = vld [vmem:[#allocation3 + $0xa8] sm:$0xff] }
 0x3ea   : > { %v5003_v14 = vmul.f32 %v14220_v45, %v4892_v36  ;;  %v4862_v37 = vmul.f32 0.2, %v4830_v58  ;;  %v4793_v38 = vadd.f32 %v14285_v16, %v4530_v17  ;;  %v11503_v39 = vpop.f32.mrb[8].mxu1  ;;  %11552 = vmatprep.mubr.msk.f32.mxu0 %vm5021_vm4, %v14349_v32 }
 0x3eb   : > { %5110 = vst.msk [vmem:[#allocation3 + $0x110] sm:$0xff] %vm5021_vm4, %v5004_v18  ;;  %v4895_v40 = vmax.f32 %v4831_v44, %v4863_v13  ;;  %v4833_v42 = vadd.f32 %v14202_v19, %v4794_v20  ;;  %v4533_v15 = vmul.f32 %v11503_v39, %v14187_v0  ;;  %v4338_v43 = vpop.f32.mrb[9].mxu1  ;;  %11553 = vmatmul.mubr.msk.f32.gmra.mrb[28].mxu0 %vm5021_vm4, %v14355_v41 }
 0x3ec   : > { %5109 = vst.msk [vmem:[#allocation3 + $0x108] sm:$0xff] %vm5021_vm4, %v5003_v14  ;;  %v4894_v16 = vmax.f32 %v4830_v58, %v4862_v37  ;;  %v4832_v7 = vadd.f32 %v14202_v19, %v4793_v38  ;;  %v4532_v46 = vmul.f32 %v14187_v0, %v4338_v43  ;;  %v14372_v33 = vld [vmem:[#allocation3 + $0xd0] sm:$0xff]  ;;  %v4748_v37 = vpop.permute.xlu0 %4747 }
 0x3ed   : > { %v5006_v51 = vmul.f32 %v14220_v45, %v4895_v40  ;;  %v4865_v3 = vmul.f32 0.2, %v4833_v42  ;;  %v4796_v27 = vadd.f32 %v14311_v49, %v4533_v15  ;;  %v14367_v22 = vld [vmem:[#allocation3 + $0xc8] sm:$0xff] }
 0x3ee   : > { %v5005_v26 = vmul.f32 %v14220_v45, %v4894_v16  ;;  %v4864_v8 = vmul.f32 0.2, %v4832_v7  ;;  %v4795_v57 = vadd.f32 %v4718_v4, %v4532_v46  ;;  %v11506_v29 = vpop.f32.mrb[10].mxu1  ;;  %11555 = vmatprep.mubr.msk.f32.mxu0 %vm5021_vm4, %v14367_v22  ;;  %v14388_v25 = vld [vmem:[#allocation3 + $0xf0] sm:$0xff] }
 0x3ef   : > { %5112 = vst.msk [vmem:[#allocation3 + $0x130] sm:$0xff] %vm5021_vm4, %v5006_v51  ;;  %v4897_v30 = vmax.f32 %v4833_v42, %v4865_v3  ;;  %v4835_v61 = vadd.f32 %v14202_v19, %v4796_v27  ;;  %v4535_v49 = vmul.f32 %v11506_v29, %v14187_v0  ;;  %v4348_v47 = vpop.f32.mrb[11].mxu1  ;;  %11556 = vmatmul.mubr.msk.f32.gmra.mrb[30].mxu0 %vm5021_vm4, %v14372_v33  ;;  %v14379_v28 = vld [vmem:[#allocation3 + $0xe8] sm:$0xff] }
 0x3f0   : > { %5111 = vst.msk [vmem:[#allocation3 + $0x128] sm:$0xff] %vm5021_vm4, %v5005_v26  ;;  %v4896_v4 = vmax.f32 %v4832_v7, %v4864_v8  ;;  %v4834_v10 = vadd.f32 %v14202_v19, %v4795_v57  ;;  %v4534_v11 = vmul.f32 %v14187_v0, %v4348_v47  ;;  %11558 = vmatprep.mubr.msk.f32.mxu0 %vm5021_vm4, %v14379_v28 }
 0x3f1   : > { %v5008_v21 = vmul.f32 %v14220_v45, %v4897_v30  ;;  %v4867_v24 = vmul.f32 0.2, %v4835_v61  ;;  %v4798_v52 = vadd.f32 %v4733_v63, %v4535_v49  ;;  %v4753_v63 = vpop.permute.xlu1 %4752 }
 0x3f2   : > { %v5007_v53 = vmul.f32 %v14220_v45, %v4896_v4  ;;  %v4866_v1 = vmul.f32 0.2, %v4834_v10  ;;  %v4797_v44 = vadd.f32 %v4728_v55, %v4534_v11  ;;  %v11509_v35 = vpop.f32.mrb[12].mxu1  ;;  %v14404_v7 = vld [vmem:[#allocation3 + $0x110] sm:$0xff] }
 0x3f3   : > { %5114 = vst.msk [vmem:[#allocation3 + $0x150] sm:$0xff] %vm5021_vm4, %v5008_v21  ;;  %v4899_v36 = vmax.f32 %v4835_v61, %v4867_v24  ;;  %v4837_v58 = vadd.f32 %v14202_v19, %v4798_v52  ;;  %v4537_v17 = vmul.f32 %v11509_v35, %v14187_v0  ;;  %v4358_v18 = vpop.f32.mrb[13].mxu1  ;;  %11559 = vmatmul.mubr.msk.f32.gmra.mrb[32].mxu0 %vm5021_vm4, %v14388_v25  ;;  %v14395_v13 = vld [vmem:[#allocation3 + $0x108] sm:$0xff]  ;;  %v4758_v21 = vpop.permute.xlu0 %4757 }
 0x3f4   : > { %5113 = vst.msk [vmem:[#allocation3 + $0x148] sm:$0xff] %vm5021_vm4, %v5007_v53  ;;  %v4898_v55 = vmax.f32 %v4834_v10, %v4866_v1  ;;  %v4836_v20 = vadd.f32 %v14202_v19, %v4797_v44  ;;  %v4536_v14 = vmul.f32 %v14187_v0, %v4358_v18  ;;  %11561 = vmatprep.mubr.msk.f32.mxu0 %vm5021_vm4, %v14395_v13 }
 0x3f5   : > { %v5010_v38 = vmul.f32 %v14220_v45, %v4899_v36  ;;  %v4869_v39 = vmul.f32 0.2, %v4837_v58  ;;  %v4800_v40 = vadd.f32 %v4743_v62, %v4537_v17  ;;  %v4763_v61 = vpop.permute.xlu1 %4762 }
 0x3f6   : > { %v5009_v42 = vmul.f32 %v14220_v45, %v4898_v55  ;;  %v4868_v15 = vmul.f32 0.2, %v4836_v20  ;;  %v4799_v43 = vadd.f32 %v4738_v12, %v4536_v14  ;;  %v11512_v16 = vpop.f32.mrb[14].mxu1  ;;  %v14420_v11 = vld [vmem:[#allocation3 + $0x130] sm:$0xff] }
 0x3f7   : > { %5116 = vst.msk [vmem:[#allocation3 + $0x170] sm:$0xff] %vm5021_vm4, %v5010_v38  ;;  %v4901_v46 = vmax.f32 %v4837_v58, %v4869_v39  ;;  %v4839_v51 = vadd.f32 %v14202_v19, %v4800_v40  ;;  %v4539_v3 = vmul.f32 %v11512_v16, %v14187_v0  ;;  %v4368_v27 = vpop.f32.mrb[15].mxu1  ;;  %11562 = vmatmul.mubr.msk.f32.gmra.mrb[34].mxu0 %vm5021_vm4, %v14404_v7  ;;  %v14411_v26 = vld [vmem:[#allocation3 + $0x128] sm:$0xff] }
 0x3f8   : > { %5115 = vst.msk [vmem:[#allocation3 + $0x168] sm:$0xff] %vm5021_vm4, %v5009_v42  ;;  %v4900_v62 = vmax.f32 %v4836_v20, %v4868_v15  ;;  %v4838_v8 = vadd.f32 %v14202_v19, %v4799_v43  ;;  %v4538_v57 = vmul.f32 %v14187_v0, %v4368_v27  ;;  %11564 = vmatprep.mubr.msk.f32.mxu0 %vm5021_vm4, %v14411_v26  ;;  %v4768_v27 = vpop.permute.xlu0 %4767 }
 0x3f9   : > { %v5012_v29 = vmul.f32 %v14220_v45, %v4901_v46  ;;  %v4871_v12 = vmul.f32 0.2, %v4839_v51  ;;  %v4802_v30 = vadd.f32 %v4753_v63, %v4539_v3  ;;  %v4773_v16 = vpop.permute.xlu1 %4772 }
 0x3fa   : > { %v5011_v49 = vmul.f32 %v14220_v45, %v4900_v62  ;;  %v4870_v47 = vmul.f32 0.2, %v4838_v8  ;;  %v4801_v4 = vadd.f32 %v4748_v37, %v4538_v57  ;;  %v11515_v10 = vpop.f32.mrb[16].mxu1  ;;  %v14436_v38 = vld [vmem:[#allocation3 + $0x150] sm:$0xff] }
 0x3fb   : > { %5118 = vst.msk [vmem:[#allocation3 + $0x190] sm:$0xff] %vm5021_vm4, %v5012_v29  ;;  %v4903_v24 = vmax.f32 %v4839_v51, %v4871_v12  ;;  %v4841_v52 = vadd.f32 %v14202_v19, %v4802_v30  ;;  %v4541_v53 = vmul.f32 %v11515_v10, %v14187_v0  ;;  %v4378_v1 = vpop.f32.mrb[17].mxu1  ;;  %11565 = vmatmul.mubr.msk.f32.gmra.mrb[36].mxu0 %vm5021_vm4, %v14420_v11  ;;  %v14427_v44 = vld [vmem:[#allocation3 + $0x148] sm:$0xff] }
 0x3fc   : > { %5117 = vst.msk [vmem:[#allocation3 + $0x188] sm:$0xff] %vm5021_vm4, %v5011_v49  ;;  %v4902_v35 = vmax.f32 %v4838_v8, %v4870_v47  ;;  %v4840_v36 = vadd.f32 %v14202_v19, %v4801_v4  ;;  %v4540_v58 = vmul.f32 %v14187_v0, %v4378_v1  ;;  %11567 = vmatprep.mubr.msk.f32.mxu0 %vm5021_vm4, %v14427_v44 }
 0x3fd   : > { %v5014_v17 = vmul.f32 %v14220_v45, %v4903_v24  ;;  %v4873_v18 = vmul.f32 0.2, %v4841_v52  ;;  %v4804_v63 = vadd.f32 %v4763_v61, %v4541_v53 }
 0x3fe   : > { %v5013_v55 = vmul.f32 %v14220_v45, %v4902_v35  ;;  %v4872_v20 = vmul.f32 0.2, %v4840_v36  ;;  %v4803_v14 = vadd.f32 %v4758_v21, %v4540_v58  ;;  %v11518_v37 = vpop.f32.mrb[18].mxu1  ;;  %v14452_v61 = vld [vmem:[#allocation3 + $0x170] sm:$0xff] }
 0x3ff   : > { %5120 = vst.msk [vmem:[#allocation3 + $0x1b0] sm:$0xff] %vm5021_vm4, %v5014_v17  ;;  %v4905_v39 = vmax.f32 %v4841_v52, %v4873_v18  ;;  %v4843_v40 = vadd.f32 %v14202_v19, %v4804_v63  ;;  %v4543_v42 = vmul.f32 %v11518_v37, %v14187_v0  ;;  %v4388_v15 = vpop.f32.mrb[19].mxu1  ;;  %11568 = vmatmul.mubr.msk.f32.gmra.mrb[38].mxu0 %vm5021_vm4, %v14436_v38  ;;  %v14443_v43 = vld [vmem:[#allocation3 + $0x168] sm:$0xff] }
 0x400   : > { %5119 = vst.msk [vmem:[#allocation3 + $0x1a8] sm:$0xff] %vm5021_vm4, %v5013_v55  ;;  %v4904_v46 = vmax.f32 %v4840_v36, %v4872_v20  ;;  %v4842_v51 = vadd.f32 %v14202_v19, %v4803_v14  ;;  %v4542_v3 = vmul.f32 %v14187_v0, %v4388_v15  ;;  %11570 = vmatprep.mubr.msk.f32.mxu0 %vm5021_vm4, %v14443_v43  ;;  %v5127_v20 = vld [vmem:[#allocation3 + $0x7] sm:$0xff]  ;;  %v5128_v37 = vld [vmem:[#allocation3 + $0xf] sm:$0xff] }
 0x401   : > { %v5016_v62 = vmul.f32 %v14220_v45, %v4905_v39  ;;  %v4875_v8 = vmul.f32 0.2, %v4843_v40  ;;  %v4806_v57 = vadd.f32 %v4773_v16, %v4543_v42  ;;  %v14504_v39 = vld [vmem:[%s15677_s12 + $0x18] sm:$0xff]  ;;  %v14513_v42 = vld [vmem:[#allocation3 + $0x2f] sm:$0xff]  ;;  %v14517_v15 = vld [vmem:[#allocation3 + $0x47] sm:$0xff] }
 0x402   : > { %v5015_v29 = vmul.f32 %v14220_v45, %v4904_v46  ;;  %v4874_v12 = vmul.f32 0.2, %v4842_v51  ;;  %v4805_v30 = vadd.f32 %v4768_v27, %v4542_v3  ;;  %v14466_v1 = vld [vmem:[#allocation3 + $0x190] sm:$0xff]  ;;  %v14541_v27 = vld [vmem:[#allocation3 + $0xa7] sm:$0xff] }
 0x403   : > { %5122 = vst.msk [vmem:[#allocation3 + $0x1d0] sm:$0xff] %vm5021_vm4, %v5016_v62  ;;  %v4907_v49 = vmax.f32 %v4843_v40, %v4875_v8  ;;  %v4845_v47 = vadd.f32 %v14202_v19, %v4806_v57  ;;  %11571 = vmatmul.mubr.msk.f32.gmra.mrb[40].mxu0 %vm5021_vm4, %v14452_v61  ;;  %v14458_v0 = vld [vmem:[#allocation3 + $0x188] sm:$0xff] }
 0x404   : > { %5121 = vst.msk [vmem:[#allocation3 + $0x1c8] sm:$0xff] %vm5021_vm4, %v5015_v29  ;;  %v4906_v4 = vmax.f32 %v4842_v51, %v4874_v12  ;;  %v4844_v10 = vadd.f32 %v14202_v19, %v4805_v30  ;;  %11573 = vmatprep.mubr.msk.f32.mxu0 %vm5021_vm4, %v14458_v0  ;;  %v14507_v40 = vld [vmem:[#allocation3 + $0x27] sm:$0xff]  ;;  %v14521_v16 = vld [vmem:[#allocation3 + $0x4f] sm:$0xff] }
 0x405   : > { %v5018_v21 = vmul.f32 %v14220_v45, %v4907_v49  ;;  %v4877_v24 = vmul.f32 0.2, %v4845_v47  ;;  %v14529_v46 = vld [vmem:[#allocation3 + $0x6f] sm:$0xff]  ;;  %v14533_v51 = vld [vmem:[#allocation3 + $0x87] sm:$0xff] }
 0x406   : > { %v5017_v52 = vmul.f32 %v14220_v45, %v4906_v4  ;;  %v4876_v53 = vmul.f32 0.2, %v4844_v10  ;;  %v14478_v18 = vld [vmem:[#allocation3 + $0x1b0] sm:$0xff]  ;;  %v14549_v8 = vld [vmem:[#allocation3 + $0xc7] sm:$0xff] }
 0x407   : > { %5124 = vst.msk [vmem:[#allocation3 + $0x1f0] sm:$0xff] %vm5021_vm4, %v5018_v21  ;;  %v4909_v35 = vmax.f32 %v4845_v47, %v4877_v24  ;;  %11574 = vmatmul.mubr.msk.f32.gmra.mrb[42].mxu0 %vm5021_vm4, %v14466_v1  ;;  %v14471_v36 = vld [vmem:[#allocation3 + $0x1a8] sm:$0xff] }
 0x408   : > { %5123 = vst.msk [vmem:[#allocation3 + $0x1e8] sm:$0xff] %vm5021_vm4, %v5017_v52  ;;  %v4908_v19 = vmax.f32 %v4844_v10, %v4876_v53  ;;  %11576 = vmatprep.mubr.msk.f32.mxu0 %vm5021_vm4, %v14471_v36  ;;  %v14537_v3 = vld [vmem:[#allocation3 + $0x8f] sm:$0xff]  ;;  %v14557_v29 = vld [vmem:[#allocation3 + $0xe7] sm:$0xff] }
 0x409   : > { %v5020_v58 = vmul.f32 %v14220_v45, %v4909_v35  ;;  %v14545_v62 = vld [vmem:[#allocation3 + $0xaf] sm:$0xff]  ;;  %v14565_v30 = vld [vmem:[#allocation3 + $0x107] sm:$0xff] }
 0x40a   : > { %v5019_v17 = vmul.f32 %v14220_v45, %v4908_v19  ;;  %v14488_v55 = vld [vmem:[#allocation3 + $0x1d0] sm:$0xff]  ;;  %v14573_v47 = vld [vmem:[#allocation3 + $0x127] sm:$0xff] }
 0x40b   : > { %5126 = vst.msk [vmem:[#allocation3 + $0x210] sm:$0xff] %vm5021_vm4, %v5020_v58  ;;  %11577 = vmatmul.mubr.msk.f32.gmra.mrb[44].mxu0 %vm5021_vm4, %v14478_v18  ;;  %v14483_v63 = vld [vmem:[#allocation3 + $0x1c8] sm:$0xff] }
 0x40c   : > { %5125 = vst.msk [vmem:[#allocation3 + $0x208] sm:$0xff] %vm5021_vm4, %v5019_v17  ;;  %11579 = vmatprep.mubr.msk.f32.mxu0 %vm5021_vm4, %v14483_v63  ;;  %v14553_v57 = vld [vmem:[#allocation3 + $0xcf] sm:$0xff]  ;;  %v14581_v10 = vld [vmem:[#allocation3 + $0x147] sm:$0xff] }
 0x40d   : > { %v14561_v12 = vld [vmem:[#allocation3 + $0xef] sm:$0xff]  ;;  %v14589_v24 = vld [vmem:[#allocation3 + $0x167] sm:$0xff] }
 0x40e   : > { %v14496_v14 = vld [vmem:[#allocation3 + $0x1f0] sm:$0xff]  ;;  %v14597_v53 = vld [vmem:[#allocation3 + $0x187] sm:$0xff] }
 0x40f   : > { %11580 = vmatmul.mubr.msk.f32.gmra.mrb[46].mxu0 %vm5021_vm4, %v14488_v55  ;;  %v14492_v45 = vld [vmem:[#allocation3 + $0x1e8] sm:$0xff]  ;;  %15897 = vst [vmem:[#allocation14_spill] sm:$0xff] %v14496_v14 }
 0x410   : > { %15896 = vst [vmem:[#allocation8_spill] sm:$0xff] %v14492_v45  ;;  %11582 = vmatprep.mubr.msk.f32.mxu0 %vm5021_vm4, %v14492_v45  ;;  %v14569_v49 = vld [vmem:[#allocation3 + $0x10f] sm:$0xff]  ;;  %v14605_v19 = vld [vmem:[#allocation3 + $0x1a7] sm:$0xff] }
 0x411   : > { %v14577_v4 = vld [vmem:[#allocation3 + $0x12f] sm:$0xff]  ;;  %v14613_v17 = vld [vmem:[#allocation3 + $0x1c7] sm:$0xff] }
 0x412   : > { %v14585_v21 = vld [vmem:[#allocation3 + $0x14f] sm:$0xff] }
 0x413   : > { %11583 = vmatmul.mubr.msk.f32.gmra.mrb[48].mxu0 %vm5021_vm4, %v14496_v14  ;;  %v14593_v52 = vld [vmem:[#allocation3 + $0x16f] sm:$0xff] }
 0x414   : > { %11587 = vmatprep.mubr.msk.f32.mxu0 %vm5021_vm4, %v5127_v20  ;;  %v14601_v35 = vld [vmem:[#allocation3 + $0x18f] sm:$0xff] }
 0x415   : > { %v14609_v58 = vld [vmem:[#allocation3 + $0x1af] sm:$0xff] }
 0x416   : > { %v14617_v20 = vld [vmem:[#allocation3 + $0x1cf] sm:$0xff] }
 0x417   : > { %11588 = vmatmul.mubr.msk.f32.vlgmr.msra.gmra.mrb[18].mxu0 %vm5021_vm4, %v5128_v37  ;;  %v14621_v37 = vld [vmem:[#allocation3 + $0x1e7] sm:$0xff]  ;;  %v14625_v54 = vld [vmem:[#allocation3 + $0x1ef] sm:$0xff] }
 0x418   : > { %11636 = vmatpush3.msra.mxu0 %v14174_v23  ;;  %11590 = vmatprep.mubr.msk.f32.mxu0 %vm5021_vm4, %v14507_v40  ;;  %v14525_v23 = vld [vmem:[#allocation3 + $0x67] sm:$0xff]  ;;  %v14642_v45 = vld [vmem:[#allocation3 + $0x31] sm:$0xff] }
 0x419   : > { %11685 = vmatprep.subr.mxu0 %v14504_v39  ;;  %v14636_v14 = vld [vmem:[#allocation3 + $0x29] sm:$0xff]  ;;  %15899 = vst [vmem:[#allocation16_spill] sm:$0xff] %v14642_v45 }
 0x41a   : > { %15898 = vst [vmem:[#allocation15_spill] sm:$0xff] %v14636_v14 }
 0x41b   : > { %11591 = vmatmul.mubr.msk.f32.gmra.mrb[20].mxu0 %vm5021_vm4, %v14513_v42 }
 0x41c   : > { %11593 = vmatprep.mubr.msk.f32.mxu0 %vm5021_vm4, %v14517_v15 }
 0x41f   : > { %11594 = vmatmul.mubr.msk.f32.gmra.mrb[22].mxu0 %vm5021_vm4, %v14521_v16 }
 0x420   : > { %11596 = vmatprep.mubr.msk.f32.mxu0 %vm5021_vm4, %v14525_v23 }
 0x423   : > { %11597 = vmatmul.mubr.msk.f32.gmra.mrb[24].mxu0 %vm5021_vm4, %v14529_v46 }
 0x424   : > { %11599 = vmatprep.mubr.msk.f32.mxu0 %vm5021_vm4, %v14533_v51 }
 0x427   : > { %11600 = vmatmul.mubr.msk.f32.gmra.mrb[26].mxu0 %vm5021_vm4, %v14537_v3 }
 0x428   : > { %11602 = vmatprep.mubr.msk.f32.mxu0 %vm5021_vm4, %v14541_v27 }
 0x42b   : > { %11603 = vmatmul.mubr.msk.f32.gmra.mrb[28].mxu0 %vm5021_vm4, %v14545_v62 }
 0x42c   : > { %11605 = vmatprep.mubr.msk.f32.mxu0 %vm5021_vm4, %v14549_v8 }
 0x42f   : > { %11606 = vmatmul.mubr.msk.f32.gmra.mrb[30].mxu0 %vm5021_vm4, %v14553_v57 }
 0x430   : > { %11608 = vmatprep.mubr.msk.f32.mxu0 %vm5021_vm4, %v14557_v29 }
 0x433   : > { %11609 = vmatmul.mubr.msk.f32.gmra.mrb[32].mxu0 %vm5021_vm4, %v14561_v12 }
 0x434   : > { %11611 = vmatprep.mubr.msk.f32.mxu0 %vm5021_vm4, %v14565_v30 }
 0x437   : > { %11612 = vmatmul.mubr.msk.f32.gmra.mrb[34].mxu0 %vm5021_vm4, %v14569_v49 }
 0x438   : > { %11614 = vmatprep.mubr.msk.f32.mxu0 %vm5021_vm4, %v14573_v47 }
 0x43b   : > { %11615 = vmatmul.mubr.msk.f32.gmra.mrb[36].mxu0 %vm5021_vm4, %v14577_v4 }
 0x43c   : > { %11617 = vmatprep.mubr.msk.f32.mxu0 %vm5021_vm4, %v14581_v10 }
 0x43f   : > { %11618 = vmatmul.mubr.msk.f32.gmra.mrb[38].mxu0 %vm5021_vm4, %v14585_v21 }
 0x440   : > { %11620 = vmatprep.mubr.msk.f32.mxu0 %vm5021_vm4, %v14589_v24 }
 0x443   : > { %11621 = vmatmul.mubr.msk.f32.gmra.mrb[40].mxu0 %vm5021_vm4, %v14593_v52 }
 0x444   : > { %11623 = vmatprep.mubr.msk.f32.mxu0 %vm5021_vm4, %v14597_v53 }
 0x447   : > { %11624 = vmatmul.mubr.msk.f32.gmra.mrb[42].mxu0 %vm5021_vm4, %v14601_v35 }
 0x448   : > { %11626 = vmatprep.mubr.msk.f32.mxu0 %vm5021_vm4, %v14605_v19 }
 0x44b   : > { %11627 = vmatmul.mubr.msk.f32.gmra.mrb[44].mxu0 %vm5021_vm4, %v14609_v58 }
 0x44c   : > { %11629 = vmatprep.mubr.msk.f32.mxu0 %vm5021_vm4, %v14613_v17 }
 0x44f   : > { %11630 = vmatmul.mubr.msk.f32.gmra.mrb[46].mxu0 %vm5021_vm4, %v14617_v20 }
 0x450   : > { %11632 = vmatprep.mubr.msk.f32.mxu0 %vm5021_vm4, %v14621_v37 }
 0x453   : > { %11633 = vmatmul.mubr.msk.f32.gmra.mrb[48].mxu0 %vm5021_vm4, %v14625_v54 }
 0x454   : > { %11637 = vmatprep.mubr.msk.f32.mxu0 %vm5021_vm4, %v5836_v48  ;;  %v14646_v48 = vld [vmem:[#allocation3 + $0x49] sm:$0xff] }
 0x455   : > { %15900 = vst [vmem:[#allocation17_spill] sm:$0xff] %v14646_v48 }
 0x457   : > { %11638 = vmatmul.mubr.msk.f32.vlgmr.msra.gmra.mrb[18].mxu0 %vm5021_vm4, %v5837_v5  ;;  %v14650_v5 = vld [vmem:[#allocation3 + $0x51] sm:$0xff] }
 0x458   : > { %11686 = vmatpush3.msra.mxu0 %v14504_v39  ;;  %11640 = vmatprep.mubr.msk.f32.mxu0 %vm5021_vm4, %v14636_v14  ;;  %15901 = vst [vmem:[#allocation18_spill] sm:$0xff] %v14650_v5  ;;  %v14654_v39 = vld [vmem:[#allocation3 + $0x69] sm:$0xff]  ;;  %v14658_v14 = vld [vmem:[#allocation3 + $0x71] sm:$0xff] }
 0x459   : > { %11735 = vmatprep.subr.mxu0 %v14633_v56  ;;  %15902 = vst [vmem:[#allocation19_spill] sm:$0xff] %v14654_v39  ;;  %15903 = vst [vmem:[#allocation20_spill] sm:$0xff] %v14658_v14 }
 0x45b   : > { %11641 = vmatmul.mubr.msk.f32.gmra.mrb[20].mxu0 %vm5021_vm4, %v14642_v45  ;;  %v14662_v45 = vld [vmem:[#allocation3 + $0x89] sm:$0xff] }
 0x45c   : > { %11643 = vmatprep.mubr.msk.f32.mxu0 %vm5021_vm4, %v14646_v48  ;;  %15904 = vst [vmem:[#allocation21_spill] sm:$0xff] %v14662_v45  ;;  %v14666_v48 = vld [vmem:[#allocation3 + $0x91] sm:$0xff] }
 0x45d   : > { %15905 = vst [vmem:[#allocation22_spill] sm:$0xff] %v14666_v48 }
 0x45f   : > { %11644 = vmatmul.mubr.msk.f32.gmra.mrb[22].mxu0 %vm5021_vm4, %v14650_v5  ;;  %v14670_v5 = vld [vmem:[#allocation3 + $0xa9] sm:$0xff] }
 0x460   : > { %11646 = vmatprep.mubr.msk.f32.mxu0 %vm5021_vm4, %v14654_v39  ;;  %15906 = vst [vmem:[#allocation23_spill] sm:$0xff] %v14670_v5  ;;  %v14674_v39 = vld [vmem:[#allocation3 + $0xb1] sm:$0xff] }
 0x461   : > { %15907 = vst [vmem:[#allocation24_spill] sm:$0xff] %v14674_v39 }
 0x463   : > { %11647 = vmatmul.mubr.msk.f32.gmra.mrb[24].mxu0 %vm5021_vm4, %v14658_v14  ;;  %v14678_v14 = vld [vmem:[#allocation3 + $0xc9] sm:$0xff] }
 0x464   : > { %11649 = vmatprep.mubr.msk.f32.mxu0 %vm5021_vm4, %v14662_v45  ;;  %15908 = vst [vmem:[#allocation25_spill] sm:$0xff] %v14678_v14  ;;  %v14682_v45 = vld [vmem:[#allocation3 + $0xd1] sm:$0xff] }
 0x465   : > { %15909 = vst [vmem:[#allocation26_spill] sm:$0xff] %v14682_v45 }
 0x467   : > { %11650 = vmatmul.mubr.msk.f32.gmra.mrb[26].mxu0 %vm5021_vm4, %v14666_v48  ;;  %v14686_v48 = vld [vmem:[#allocation3 + $0xe9] sm:$0xff] }
 0x468   : > { %11652 = vmatprep.mubr.msk.f32.mxu0 %vm5021_vm4, %v14670_v5  ;;  %15910 = vst [vmem:[#allocation27_spill] sm:$0xff] %v14686_v48  ;;  %v14690_v5 = vld [vmem:[#allocation3 + $0xf1] sm:$0xff] }
 0x469   : > { %15911 = vst [vmem:[#allocation28_spill] sm:$0xff] %v14690_v5 }
 0x46b   : > { %11653 = vmatmul.mubr.msk.f32.gmra.mrb[28].mxu0 %vm5021_vm4, %v14674_v39  ;;  %v14694_v39 = vld [vmem:[#allocation3 + $0x109] sm:$0xff] }
 0x46c   : > { %11655 = vmatprep.mubr.msk.f32.mxu0 %vm5021_vm4, %v14678_v14  ;;  %15912 = vst [vmem:[#allocation29_spill] sm:$0xff] %v14694_v39  ;;  %v14698_v14 = vld [vmem:[#allocation3 + $0x111] sm:$0xff] }
 0x46d   : > { %15913 = vst [vmem:[#allocation30_spill] sm:$0xff] %v14698_v14 }
 0x46f   : > { %11656 = vmatmul.mubr.msk.f32.gmra.mrb[30].mxu0 %vm5021_vm4, %v14682_v45  ;;  %v14702_v45 = vld [vmem:[#allocation3 + $0x129] sm:$0xff] }
 0x470   : > { %11658 = vmatprep.mubr.msk.f32.mxu0 %vm5021_vm4, %v14686_v48  ;;  %15914 = vst [vmem:[#allocation31_spill] sm:$0xff] %v14702_v45  ;;  %v14706_v48 = vld [vmem:[#allocation3 + $0x131] sm:$0xff] }
 0x471   : > { %15915 = vst [vmem:[#allocation32_spill] sm:$0xff] %v14706_v48 }
 0x473   : > { %11659 = vmatmul.mubr.msk.f32.gmra.mrb[32].mxu0 %vm5021_vm4, %v14690_v5  ;;  %v14710_v5 = vld [vmem:[#allocation3 + $0x149] sm:$0xff] }
 0x474   : > { %11661 = vmatprep.mubr.msk.f32.mxu0 %vm5021_vm4, %v14694_v39  ;;  %15916 = vst [vmem:[#allocation33_spill] sm:$0xff] %v14710_v5  ;;  %v14714_v39 = vld [vmem:[#allocation3 + $0x151] sm:$0xff] }
 0x475   : > { %15917 = vst [vmem:[#allocation34_spill] sm:$0xff] %v14714_v39 }
 0x477   : > { %11662 = vmatmul.mubr.msk.f32.gmra.mrb[34].mxu0 %vm5021_vm4, %v14698_v14  ;;  %v14718_v14 = vld [vmem:[#allocation3 + $0x169] sm:$0xff] }
 0x478   : > { %11664 = vmatprep.mubr.msk.f32.mxu0 %vm5021_vm4, %v14702_v45  ;;  %15918 = vst [vmem:[#allocation35_spill] sm:$0xff] %v14718_v14  ;;  %v14722_v45 = vld [vmem:[#allocation3 + $0x171] sm:$0xff] }
 0x479   : > { %15919 = vst [vmem:[#allocation36_spill] sm:$0xff] %v14722_v45 }
 0x47b   : > { %11665 = vmatmul.mubr.msk.f32.gmra.mrb[36].mxu0 %vm5021_vm4, %v14706_v48  ;;  %v14726_v48 = vld [vmem:[#allocation3 + $0x189] sm:$0xff] }
 0x47c   : > { %11667 = vmatprep.mubr.msk.f32.mxu0 %vm5021_vm4, %v14710_v5  ;;  %15920 = vst [vmem:[#allocation37_spill] sm:$0xff] %v14726_v48  ;;  %v14730_v5 = vld [vmem:[#allocation3 + $0x191] sm:$0xff] }
 0x47d   : > { %15921 = vst [vmem:[#allocation38_spill] sm:$0xff] %v14730_v5 }
 0x47f   : > { %11668 = vmatmul.mubr.msk.f32.gmra.mrb[38].mxu0 %vm5021_vm4, %v14714_v39  ;;  %v14734_v39 = vld [vmem:[#allocation3 + $0x1a9] sm:$0xff] }
 0x480   : > { %11670 = vmatprep.mubr.msk.f32.mxu0 %vm5021_vm4, %v14718_v14  ;;  %15922 = vst [vmem:[#allocation39_spill] sm:$0xff] %v14734_v39  ;;  %v14738_v14 = vld [vmem:[#allocation3 + $0x1b1] sm:$0xff] }
 0x483   : > { %11671 = vmatmul.mubr.msk.f32.gmra.mrb[40].mxu0 %vm5021_vm4, %v14722_v45  ;;  %v14742_v45 = vld [vmem:[#allocation3 + $0x1c9] sm:$0xff] }
 0x484   : > { %11673 = vmatprep.mubr.msk.f32.mxu0 %vm5021_vm4, %v14726_v48  ;;  %15923 = vst [vmem:[#allocation9_spill] sm:$0xff] %v14742_v45  ;;  %v14746_v48 = vld [vmem:[#allocation3 + $0x1d1] sm:$0xff] }
 0x487   : > { %11674 = vmatmul.mubr.msk.f32.gmra.mrb[42].mxu0 %vm5021_vm4, %v14730_v5  ;;  %v14750_v5 = vld [vmem:[#allocation3 + $0x1e9] sm:$0xff] }
 0x488   : > { %11676 = vmatprep.mubr.msk.f32.mxu0 %vm5021_vm4, %v14734_v39  ;;  %15924 = vst [vmem:[#allocation12_spill] sm:$0xff] %v14750_v5  ;;  %v14754_v39 = vld [vmem:[#allocation3 + $0x1f1] sm:$0xff] }
 0x48b   : > { %11677 = vmatmul.mubr.msk.f32.gmra.mrb[44].mxu0 %vm5021_vm4, %v14738_v14 }
 0x48c   : > { %11679 = vmatprep.mubr.msk.f32.mxu0 %vm5021_vm4, %v14742_v45  ;;  %v10236_v45 = vld [vmem:[%s15677_s12 + $0x28] sm:$0xff] }
 0x48f   : > { %11680 = vmatmul.mubr.msk.f32.gmra.mrb[46].mxu0 %vm5021_vm4, %v14746_v48 }
 0x490   : > { %11682 = vmatprep.mubr.msk.f32.mxu0 %vm5021_vm4, %v14750_v5 }
 0x493   : > { %11683 = vmatmul.mubr.msk.f32.gmra.mrb[48].mxu0 %vm5021_vm4, %v14754_v39 }
 0x494   : > { %11687 = vmatprep.mubr.msk.f32.mxu0 %vm5021_vm4, %v14507_v40  ;;  %v14826_v40 = vld [vmem:[#allocation3 + $0x20f] sm:$0xff] }
 0x497   : > { %11688 = vmatmul.mubr.msk.f32.vlgmr.msra.gmra.mrb[18].mxu0 %vm5021_vm4, %v14513_v42  ;;  %v10269_v42 = vld [vmem:[%s15677_s12 + $0x30] sm:$0xff] }
 0x498   : > { %11736 = vmatpush3.msra.mxu0 %v14633_v56  ;;  %11690 = vmatprep.mubr.msk.f32.mxu0 %vm5021_vm4, %v14517_v15  ;;  %v14822_v56 = vld [vmem:[#allocation3 + $0x207] sm:$0xff] }
 0x499   : > { %11785 = vmatprep.subr.mxu0 %v10236_v45 }
 0x49b   : > { %11691 = vmatmul.mubr.msk.f32.gmra.mrb[20].mxu0 %vm5021_vm4, %v14521_v16 }
 0x49c   : > { %11693 = vmatprep.mubr.msk.f32.mxu0 %vm5021_vm4, %v14525_v23 }
 0x49f   : > { %11694 = vmatmul.mubr.msk.f32.gmra.mrb[22].mxu0 %vm5021_vm4, %v14529_v46 }
 0x4a0   : > { %11696 = vmatprep.mubr.msk.f32.mxu0 %vm5021_vm4, %v14533_v51 }
 0x4a3   : > { %11697 = vmatmul.mubr.msk.f32.gmra.mrb[24].mxu0 %vm5021_vm4, %v14537_v3 }
 0x4a4   : > { %11699 = vmatprep.mubr.msk.f32.mxu0 %vm5021_vm4, %v14541_v27 }
 0x4a7   : > { %11700 = vmatmul.mubr.msk.f32.gmra.mrb[26].mxu0 %vm5021_vm4, %v14545_v62 }
 0x4a8   : > { %11702 = vmatprep.mubr.msk.f32.mxu0 %vm5021_vm4, %v14549_v8 }
 0x4ab   : > { %11703 = vmatmul.mubr.msk.f32.gmra.mrb[28].mxu0 %vm5021_vm4, %v14553_v57 }
 0x4ac   : > { %11705 = vmatprep.mubr.msk.f32.mxu0 %vm5021_vm4, %v14557_v29 }
 0x4af   : > { %11706 = vmatmul.mubr.msk.f32.gmra.mrb[30].mxu0 %vm5021_vm4, %v14561_v12 }
 0x4b0   : > { %11708 = vmatprep.mubr.msk.f32.mxu0 %vm5021_vm4, %v14565_v30 }
 0x4b3   : > { %11709 = vmatmul.mubr.msk.f32.gmra.mrb[32].mxu0 %vm5021_vm4, %v14569_v49 }
 0x4b4   : > { %11711 = vmatprep.mubr.msk.f32.mxu0 %vm5021_vm4, %v14573_v47 }
 0x4b7   : > { %11712 = vmatmul.mubr.msk.f32.gmra.mrb[34].mxu0 %vm5021_vm4, %v14577_v4 }
 0x4b8   : > { %11714 = vmatprep.mubr.msk.f32.mxu0 %vm5021_vm4, %v14581_v10 }
 0x4bb   : > { %11715 = vmatmul.mubr.msk.f32.gmra.mrb[36].mxu0 %vm5021_vm4, %v14585_v21 }
 0x4bc   : > { %11717 = vmatprep.mubr.msk.f32.mxu0 %vm5021_vm4, %v14589_v24 }
 0x4bf   : > { %11718 = vmatmul.mubr.msk.f32.gmra.mrb[38].mxu0 %vm5021_vm4, %v14593_v52 }
 0x4c0   : > { %11720 = vmatprep.mubr.msk.f32.mxu0 %vm5021_vm4, %v14597_v53 }
 0x4c3   : > { %11721 = vmatmul.mubr.msk.f32.gmra.mrb[40].mxu0 %vm5021_vm4, %v14601_v35 }
 0x4c4   : > { %11723 = vmatprep.mubr.msk.f32.mxu0 %vm5021_vm4, %v14605_v19 }
 0x4c7   : > { %11724 = vmatmul.mubr.msk.f32.gmra.mrb[42].mxu0 %vm5021_vm4, %v14609_v58 }
 0x4c8   : > { %11726 = vmatprep.mubr.msk.f32.mxu0 %vm5021_vm4, %v14613_v17 }
 0x4cb   : > { %11727 = vmatmul.mubr.msk.f32.gmra.mrb[44].mxu0 %vm5021_vm4, %v14617_v20 }
 0x4cc   : > { %11729 = vmatprep.mubr.msk.f32.mxu0 %vm5021_vm4, %v14621_v37 }
 0x4cf   : > { %11730 = vmatmul.mubr.msk.f32.gmra.mrb[46].mxu0 %vm5021_vm4, %v14625_v54 }
 0x4d0   : > { %11732 = vmatprep.mubr.msk.f32.mxu0 %vm5021_vm4, %v14822_v56 }
 0x4d3   : > { %11733 = vmatmul.mubr.msk.f32.gmra.mrb[48].mxu0 %vm5021_vm4, %v14826_v40 }
 0x4d4   : > { %11737 = vmatprep.mubr.msk.f32.mxu0 %vm5021_vm4, %v14266_v6  ;;  %v15925_v6 = vld [vmem:[#allocation8_spill] sm:$0xff] }
 0x4d7   : > { %11738 = vmatmul.mubr.msk.f32.vlgmr.msra.gmra.mrb[18].mxu0 %vm5021_vm4, %v14273_v60  ;;  %v15926_v60 = vld [vmem:[#allocation14_spill] sm:$0xff] }
 0x4d8   : > { %11786 = vmatpush3.msra.mxu0 %v10236_v45  ;;  %11740 = vmatprep.mubr.msk.f32.mxu0 %vm5021_vm4, %v14290_v2  ;;  %v14893_v2 = vld [vmem:[#allocation3 + $0x208] sm:$0xff] }
 0x4d9   : > { %11835 = vmatprep.subr.mxu0 %v10269_v42  ;;  %v15935_v45 = vld [vmem:[#allocation23_spill] sm:$0xff] }
 0x4db   : > { %11741 = vmatmul.mubr.msk.f32.gmra.mrb[20].mxu0 %vm5021_vm4, %v14297_v31  ;;  %v14897_v31 = vld [vmem:[#allocation3 + $0x210] sm:$0xff] }
 0x4dc   : > { %11743 = vmatprep.mubr.msk.f32.mxu0 %vm5021_vm4, %v14309_v59  ;;  %v15927_v59 = vld [vmem:[#allocation15_spill] sm:$0xff] }
 0x4df   : > { %11744 = vmatmul.mubr.msk.f32.gmra.mrb[22].mxu0 %vm5021_vm4, %v14317_v34  ;;  %v10302_v34 = vld [vmem:[%s15677_s12 + $0x38] sm:$0xff] }
 0x4e0   : > { %11746 = vmatprep.mubr.msk.f32.mxu0 %vm5021_vm4, %v14330_v9  ;;  %v15928_v9 = vld [vmem:[#allocation16_spill] sm:$0xff] }
 0x4e3   : > { %11747 = vmatmul.mubr.msk.f32.gmra.mrb[24].mxu0 %vm5021_vm4, %v14337_v50  ;;  %v15929_v50 = vld [vmem:[#allocation17_spill] sm:$0xff] }
 0x4e4   : > { %11749 = vmatprep.mubr.msk.f32.mxu0 %vm5021_vm4, %v14349_v32  ;;  %v15930_v32 = vld [vmem:[#allocation18_spill] sm:$0xff] }
 0x4e7   : > { %11750 = vmatmul.mubr.msk.f32.gmra.mrb[26].mxu0 %vm5021_vm4, %v14355_v41  ;;  %v15931_v41 = vld [vmem:[#allocation19_spill] sm:$0xff] }
 0x4e8   : > { %11752 = vmatprep.mubr.msk.f32.mxu0 %vm5021_vm4, %v14367_v22  ;;  %v15932_v22 = vld [vmem:[#allocation20_spill] sm:$0xff] }
 0x4eb   : > { %11753 = vmatmul.mubr.msk.f32.gmra.mrb[28].mxu0 %vm5021_vm4, %v14372_v33  ;;  %v15933_v33 = vld [vmem:[#allocation21_spill] sm:$0xff] }
 0x4ec   : > { %11755 = vmatprep.mubr.msk.f32.mxu0 %vm5021_vm4, %v14379_v28  ;;  %v15934_v28 = vld [vmem:[#allocation22_spill] sm:$0xff] }
 0x4ef   : > { %11756 = vmatmul.mubr.msk.f32.gmra.mrb[30].mxu0 %vm5021_vm4, %v14388_v25 }
 0x4f0   : > { %11758 = vmatprep.mubr.msk.f32.mxu0 %vm5021_vm4, %v14395_v13 }
 0x4f3   : > { %11759 = vmatmul.mubr.msk.f32.gmra.mrb[32].mxu0 %vm5021_vm4, %v14404_v7 }
 0x4f4   : > { %11761 = vmatprep.mubr.msk.f32.mxu0 %vm5021_vm4, %v14411_v26 }
 0x4f7   : > { %11762 = vmatmul.mubr.msk.f32.gmra.mrb[34].mxu0 %vm5021_vm4, %v14420_v11 }
 0x4f8   : > { %11764 = vmatprep.mubr.msk.f32.mxu0 %vm5021_vm4, %v14427_v44 }
 0x4fb   : > { %11765 = vmatmul.mubr.msk.f32.gmra.mrb[36].mxu0 %vm5021_vm4, %v14436_v38 }
 0x4fc   : > { %11767 = vmatprep.mubr.msk.f32.mxu0 %vm5021_vm4, %v14443_v43 }
 0x4ff   : > { %11768 = vmatmul.mubr.msk.f32.gmra.mrb[38].mxu0 %vm5021_vm4, %v14452_v61 }
 0x500   : > { %11770 = vmatprep.mubr.msk.f32.mxu0 %vm5021_vm4, %v14458_v0 }
 0x503   : > { %11771 = vmatmul.mubr.msk.f32.gmra.mrb[40].mxu0 %vm5021_vm4, %v14466_v1 }
 0x504   : > { %11773 = vmatprep.mubr.msk.f32.mxu0 %vm5021_vm4, %v14471_v36 }
 0x507   : > { %11774 = vmatmul.mubr.msk.f32.gmra.mrb[42].mxu0 %vm5021_vm4, %v14478_v18 }
 0x508   : > { %11776 = vmatprep.mubr.msk.f32.mxu0 %vm5021_vm4, %v14483_v63 }
 0x50b   : > { %11777 = vmatmul.mubr.msk.f32.gmra.mrb[44].mxu0 %vm5021_vm4, %v14488_v55 }
 0x50c   : > { %11779 = vmatprep.mubr.msk.f32.mxu0 %vm5021_vm4, %v15925_v6 }
 0x50f   : > { %11780 = vmatmul.mubr.msk.f32.gmra.mrb[46].mxu0 %vm5021_vm4, %v15926_v60 }
 0x510   : > { %11782 = vmatprep.mubr.msk.f32.mxu0 %vm5021_vm4, %v14893_v2 }
 0x513   : > { %11783 = vmatmul.mubr.msk.f32.gmra.mrb[48].mxu0 %vm5021_vm4, %v14897_v31 }
 0x514   : > { %11787 = vmatprep.mubr.msk.f32.mxu0 %vm5021_vm4, %v15927_v59  ;;  %v15937_v59 = vld [vmem:[#allocation25_spill] sm:$0xff] }
 0x517   : > { %11788 = vmatmul.mubr.msk.f32.vlgmr.msra.gmra.mrb[18].mxu0 %vm5021_vm4, %v15928_v9  ;;  %v15938_v9 = vld [vmem:[#allocation26_spill] sm:$0xff] }
 0x518   : > { %11836 = vmatpush3.msra.mxu0 %v10269_v42  ;;  %11790 = vmatprep.mubr.msk.f32.mxu0 %vm5021_vm4, %v15929_v50  ;;  %v15936_v42 = vld [vmem:[#allocation24_spill] sm:$0xff] }
 0x519   : > { %11885 = vmatprep.subr.mxu0 %v10302_v34 }
 0x51b   : > { %11791 = vmatmul.mubr.msk.f32.gmra.mrb[20].mxu0 %vm5021_vm4, %v15930_v32 }
 0x51c   : > { %11793 = vmatprep.mubr.msk.f32.mxu0 %vm5021_vm4, %v15931_v41  ;;  %v15939_v41 = vld [vmem:[#allocation27_spill] sm:$0xff] }
 0x51f   : > { %11794 = vmatmul.mubr.msk.f32.gmra.mrb[22].mxu0 %vm5021_vm4, %v15932_v22  ;;  %v15940_v22 = vld [vmem:[#allocation28_spill] sm:$0xff] }
 0x520   : > { %11796 = vmatprep.mubr.msk.f32.mxu0 %vm5021_vm4, %v15933_v33  ;;  %v15941_v33 = vld [vmem:[#allocation29_spill] sm:$0xff] }
 0x523   : > { %11797 = vmatmul.mubr.msk.f32.gmra.mrb[24].mxu0 %vm5021_vm4, %v15934_v28  ;;  %v15942_v28 = vld [vmem:[#allocation30_spill] sm:$0xff] }
 0x524   : > { %11799 = vmatprep.mubr.msk.f32.mxu0 %vm5021_vm4, %v15935_v45  ;;  %v15943_v45 = vld [vmem:[#allocation31_spill] sm:$0xff] }
 0x527   : > { %11800 = vmatmul.mubr.msk.f32.gmra.mrb[26].mxu0 %vm5021_vm4, %v15936_v42  ;;  %v15944_v42 = vld [vmem:[#allocation32_spill] sm:$0xff] }
 0x528   : > { %11802 = vmatprep.mubr.msk.f32.mxu0 %vm5021_vm4, %v15937_v59  ;;  %v15945_v59 = vld [vmem:[#allocation33_spill] sm:$0xff] }
 0x52b   : > { %11803 = vmatmul.mubr.msk.f32.gmra.mrb[28].mxu0 %vm5021_vm4, %v15938_v9  ;;  %v15946_v9 = vld [vmem:[#allocation34_spill] sm:$0xff] }
 0x52c   : > { %11805 = vmatprep.mubr.msk.f32.mxu0 %vm5021_vm4, %v15939_v41  ;;  %v15947_v41 = vld [vmem:[#allocation35_spill] sm:$0xff] }
 0x52f   : > { %11806 = vmatmul.mubr.msk.f32.gmra.mrb[30].mxu0 %vm5021_vm4, %v15940_v22  ;;  %v15948_v22 = vld [vmem:[#allocation36_spill] sm:$0xff] }
 0x530   : > { %11808 = vmatprep.mubr.msk.f32.mxu0 %vm5021_vm4, %v15941_v33  ;;  %v15949_v33 = vld [vmem:[#allocation37_spill] sm:$0xff] }
 0x533   : > { %11809 = vmatmul.mubr.msk.f32.gmra.mrb[32].mxu0 %vm5021_vm4, %v15942_v28  ;;  %v15950_v28 = vld [vmem:[#allocation38_spill] sm:$0xff] }
 0x534   : > { %11811 = vmatprep.mubr.msk.f32.mxu0 %vm5021_vm4, %v15943_v45  ;;  %v15951_v45 = vld [vmem:[#allocation39_spill] sm:$0xff] }
 0x537   : > { %11812 = vmatmul.mubr.msk.f32.gmra.mrb[34].mxu0 %vm5021_vm4, %v15944_v42 }
 0x538   : > { %11814 = vmatprep.mubr.msk.f32.mxu0 %vm5021_vm4, %v15945_v59  ;;  %v15952_v59 = vld [vmem:[#allocation9_spill] sm:$0xff] }
 0x53b   : > { %11815 = vmatmul.mubr.msk.f32.gmra.mrb[36].mxu0 %vm5021_vm4, %v15946_v9 }
 0x53c   : > { %11817 = vmatprep.mubr.msk.f32.mxu0 %vm5021_vm4, %v15947_v41 }
 0x53f   : > { %11818 = vmatmul.mubr.msk.f32.gmra.mrb[38].mxu0 %vm5021_vm4, %v15948_v22 }
 0x540   : > { %11820 = vmatprep.mubr.msk.f32.mxu0 %vm5021_vm4, %v15949_v33  ;;  %v14964_v33 = vld [vmem:[#allocation3 + $0x209] sm:$0xff] }
 0x543   : > { %11821 = vmatmul.mubr.msk.f32.gmra.mrb[40].mxu0 %vm5021_vm4, %v15950_v28 }
 0x544   : > { %11823 = vmatprep.mubr.msk.f32.mxu0 %vm5021_vm4, %v15951_v45  ;;  %v14968_v45 = vld [vmem:[#allocation3 + $0x211] sm:$0xff] }
 0x547   : > { %11824 = vmatmul.mubr.msk.f32.gmra.mrb[42].mxu0 %vm5021_vm4, %v14738_v14 }
 0x548   : > { %11826 = vmatprep.mubr.msk.f32.mxu0 %vm5021_vm4, %v15952_v59 }
 0x54b   : > { %11827 = vmatmul.mubr.msk.f32.gmra.mrb[44].mxu0 %vm5021_vm4, %v14746_v48 }
 0x54c   : > { %11829 = vmatprep.mubr.msk.f32.mxu0 %vm5021_vm4, %v14750_v5  ;;  %v10335_v5 = vld [vmem:[%s15677_s12 + $0x40] sm:$0xff] }
 0x54f   : > { %11830 = vmatmul.mubr.msk.f32.gmra.mrb[46].mxu0 %vm5021_vm4, %v14754_v39 }
 0x550   : > { %11832 = vmatprep.mubr.msk.f32.mxu0 %vm5021_vm4, %v14964_v33 }
 0x553   : > { %11833 = vmatmul.mubr.msk.f32.gmra.mrb[48].mxu0 %vm5021_vm4, %v14968_v45 }
 0x554   : > { %11837 = vmatprep.mubr.msk.f32.mxu0 %vm5021_vm4, %v14517_v15  ;;  %v9056_v15 = vld [vmem:[%s15680_s16] sm:$0xff] }
 0x557   : > { %11838 = vmatmul.mubr.msk.f32.vlgmr.msra.gmra.mrb[18].mxu0 %vm5021_vm4, %v14521_v16  ;;  %v9057_v16 = vld [vmem:[%s15680_s16 + $0x8] sm:$0xff] }
 0x558   : > { %11886 = vmatpush3.msra.mxu0 %v10302_v34  ;;  %11840 = vmatprep.mubr.msk.f32.mxu0 %vm5021_vm4, %v14525_v23  ;;  %v12064_v23 = vpack.c.bf16 %v9057_v16, %v9056_v15  ;;  %v15187_v34 = vpop.permute.xlu1 %8736 }
 0x559   : > { %11935 = vmatprep.subr.mxu0 %v10335_v5 }
 0x55a   : > { %12065 = vmatpush3.bf16.msra.mxu1 %v12064_v23 }
 0x55b   : > { %11841 = vmatmul.mubr.msk.f32.gmra.mrb[20].mxu0 %vm5021_vm4, %v14529_v46  ;;  %v15953_v46 = vmov 0.0|0.0  }
 0x55c   : > { %11843 = vmatprep.mubr.msk.f32.mxu0 %vm5021_vm4, %v14533_v51  ;;  %12066 = vmatprep.subr.bf16.mxu1 %v15953_v46  ;;  %v9058_v51 = vld [vmem:[%s15680_s16 + $0x10] sm:$0xff] }
 0x55f   : > { %11844 = vmatmul.mubr.msk.f32.gmra.mrb[22].mxu0 %vm5021_vm4, %v14537_v3  ;;  %v9059_v3 = vld [vmem:[%s15680_s16 + $0x18] sm:$0xff] }
 0x560   : > { %11846 = vmatprep.mubr.msk.f32.mxu0 %vm5021_vm4, %v14541_v27  ;;  %v7415_v27 = vld [vmem:[#allocation3 + $0x227] sm:$0xff] }
 0x563   : > { %11847 = vmatmul.mubr.msk.f32.gmra.mrb[24].mxu0 %vm5021_vm4, %v14545_v62  ;;  %v12067_v62 = vpack.c.bf16 %v9059_v3, %v9058_v51 }
 0x564   : > { %11849 = vmatprep.mubr.msk.f32.mxu0 %vm5021_vm4, %v14549_v8  ;;  %v12604_v8 = vld [vmem:[%s12763_s25] sm:$0x1] }
 0x565   : > { %12068 = vmatpush3.bf16.msra.mxu1 %v12067_v62 }
 0x567   : > { %11850 = vmatmul.mubr.msk.f32.gmra.mrb[26].mxu0 %vm5021_vm4, %v14553_v57  ;;  %v7772_v57 = vld [vmem:[#allocation3 + $0x48] sm:$0xff] }
 0x568   : > { %11852 = vmatprep.mubr.msk.f32.mxu0 %vm5021_vm4, %v14557_v29  ;;  %11999 = vmatmul.mubr.msk.f32.vlgmr.msra.gmra.mrb[32].mxu1 %vm766_vm1, %v12604_v8  ;;  %v7773_v29 = vld [vmem:[#allocation3 + $0x50] sm:$0xff] }
 0x56b   : > { %11853 = vmatmul.mubr.msk.f32.gmra.mrb[28].mxu0 %vm5021_vm4, %v14561_v12  ;;  %v7774_v12 = vld [vmem:[#allocation3 + $0x68] sm:$0xff] }
 0x56c   : > { %11855 = vmatprep.mubr.msk.f32.mxu0 %vm5021_vm4, %v14565_v30  ;;  %v15954_v30 = vmov 0.0  }
 0x56f   : > { %11856 = vmatmul.mubr.msk.f32.gmra.mrb[30].mxu0 %vm5021_vm4, %v14569_v49  ;;  %v7775_v49 = vld [vmem:[#allocation3 + $0x70] sm:$0xff] }
 0x570   : > { %11858 = vmatprep.mubr.msk.f32.mxu0 %vm5021_vm4, %v14573_v47  ;;  %v7776_v47 = vld [vmem:[#allocation3 + $0x88] sm:$0xff] }
 0x573   : > { %11859 = vmatmul.mubr.msk.f32.gmra.mrb[32].mxu0 %vm5021_vm4, %v14577_v4  ;;  %v7777_v4 = vld [vmem:[#allocation3 + $0x90] sm:$0xff] }
 0x574   : > { %11861 = vmatprep.mubr.msk.f32.mxu0 %vm5021_vm4, %v14581_v10  ;;  %v7778_v10 = vld [vmem:[#allocation3 + $0xa8] sm:$0xff] }
 0x577   : > { %11862 = vmatmul.mubr.msk.f32.gmra.mrb[34].mxu0 %vm5021_vm4, %v14585_v21  ;;  %v7779_v21 = vld [vmem:[#allocation3 + $0xb0] sm:$0xff] }
 0x578   : > { %11864 = vmatprep.mubr.msk.f32.mxu0 %vm5021_vm4, %v14589_v24  ;;  %v7780_v24 = vld [vmem:[#allocation3 + $0xc8] sm:$0xff] }
 0x57b   : > { %11865 = vmatmul.mubr.msk.f32.gmra.mrb[36].mxu0 %vm5021_vm4, %v14593_v52  ;;  %v7781_v52 = vld [vmem:[#allocation3 + $0xd0] sm:$0xff] }
 0x57c   : > { %11867 = vmatprep.mubr.msk.f32.mxu0 %vm5021_vm4, %v14597_v53  ;;  %v7782_v53 = vld [vmem:[#allocation3 + $0xe8] sm:$0xff] }
 0x57f   : > { %11868 = vmatmul.mubr.msk.f32.gmra.mrb[38].mxu0 %vm5021_vm4, %v14601_v35  ;;  %v15967_v35 = vld [vmem:[#allocation31_spill] sm:$0xff] }
 0x580   : > { %11870 = vmatprep.mubr.msk.f32.mxu0 %vm5021_vm4, %v14605_v19  ;;  %v15968_v19 = vld [vmem:[#allocation33_spill] sm:$0xff] }
 0x583   : > { %11871 = vmatmul.mubr.msk.f32.gmra.mrb[40].mxu0 %vm5021_vm4, %v14609_v58  ;;  %v15969_v58 = vld [vmem:[#allocation37_spill] sm:$0xff] }
 0x584   : > { %11873 = vmatprep.mubr.msk.f32.mxu0 %vm5021_vm4, %v14613_v17  ;;  %v15970_v17 = vld [vmem:[#allocation39_spill] sm:$0xff] }
 0x587   : > { %11874 = vmatmul.mubr.msk.f32.gmra.mrb[42].mxu0 %vm5021_vm4, %v14617_v20  ;;  %v15971_v20 = vld [vmem:[#allocation12_spill] sm:$0xff] }
 0x588   : > { %11876 = vmatprep.mubr.msk.f32.mxu0 %vm5021_vm4, %v14621_v37  ;;  %v8189_v37 = vld [vmem:[#allocation3 + $0x229] sm:$0xff] }
 0x58b   : > { %11877 = vmatmul.mubr.msk.f32.gmra.mrb[44].mxu0 %vm5021_vm4, %v14625_v54  ;;  %v7416_v54 = vld [vmem:[#allocation3 + $0x22f] sm:$0xff] }
 0x58c   : > { %11879 = vmatprep.mubr.msk.f32.mxu0 %vm5021_vm4, %v14822_v56  ;;  %v9167_v56 = vld [vmem:[%s15682_s18] sm:$0xff] }
 0x58d   : > { %12001 = vmatprep.subr.mxu1 %v9167_v56 }
 0x58e   : > { %12002 = vmatpush3.msra.mxu1 %v9167_v56 }
 0x58f   : > { %11880 = vmatmul.mubr.msk.f32.gmra.mrb[46].mxu0 %vm5021_vm4, %v14826_v40 }
 0x590   : > { %11882 = vmatprep.mubr.msk.f32.mxu0 %vm5021_vm4, %v7415_v27 }
 0x593   : > { %11883 = vmatmul.mubr.msk.f32.gmra.mrb[48].mxu0 %vm5021_vm4, %v7416_v54 }
 0x594   : > { %11887 = vmatprep.mubr.msk.f32.mxu0 %vm5021_vm4, %v7772_v57 }
 0x597   : > { %11888 = vmatmul.mubr.msk.f32.vlgmr.msra.gmra.mrb[18].mxu0 %vm5021_vm4, %v7773_v29 }
 0x598   : > { %11936 = vmatpush3.msra.mxu0 %v10335_v5  ;;  %11890 = vmatprep.mubr.msk.f32.mxu0 %vm5021_vm4, %v7774_v12 }
 0x599   : > { %11985 = vmatprep.subr.mxu0 %v15954_v30 }
 0x59b   : > { %11891 = vmatmul.mubr.msk.f32.gmra.mrb[20].mxu0 %vm5021_vm4, %v7775_v49 }
 0x59c   : > { %11893 = vmatprep.mubr.msk.f32.mxu0 %vm5021_vm4, %v7776_v47 }
 0x59f   : > { %11894 = vmatmul.mubr.msk.f32.gmra.mrb[22].mxu0 %vm5021_vm4, %v7777_v4 }
 0x5a0   : > { %11896 = vmatprep.mubr.msk.f32.mxu0 %vm5021_vm4, %v7778_v10 }
 0x5a3   : > { %11897 = vmatmul.mubr.msk.f32.gmra.mrb[24].mxu0 %vm5021_vm4, %v7779_v21 }
 0x5a4   : > { %11899 = vmatprep.mubr.msk.f32.mxu0 %vm5021_vm4, %v7780_v24 }
 0x5a7   : > { %11900 = vmatmul.mubr.msk.f32.gmra.mrb[26].mxu0 %vm5021_vm4, %v7781_v52 }
 0x5a8   : > { %11902 = vmatprep.mubr.msk.f32.mxu0 %vm5021_vm4, %v7782_v53 }
 0x5ab   : > { %11903 = vmatmul.mubr.msk.f32.gmra.mrb[28].mxu0 %vm5021_vm4, %v14388_v25  ;;  %v7802_v25 = vld [vmem:[#allocation3 + $0x228] sm:$0xff] }
 0x5ac   : > { %11905 = vmatprep.mubr.msk.f32.mxu0 %vm5021_vm4, %v14395_v13  ;;  %v7803_v13 = vld [vmem:[#allocation3 + $0x230] sm:$0xff] }
 0x5af   : > { %11906 = vmatmul.mubr.msk.f32.gmra.mrb[30].mxu0 %vm5021_vm4, %v14404_v7  ;;  %v8547_v7 = vld [vmem:[%s15678_s13] sm:$0xff] }
 0x5b0   : > { %11908 = vmatprep.mubr.msk.f32.mxu0 %vm5021_vm4, %v14411_v26  ;;  %v15955_v26 = vld [vmem:[#allocation19_spill] sm:$0xff] }
 0x5b3   : > { %11909 = vmatmul.mubr.msk.f32.gmra.mrb[32].mxu0 %vm5021_vm4, %v14420_v11  ;;  %v15956_v11 = vld [vmem:[#allocation20_spill] sm:$0xff] }
 0x5b4   : > { %11911 = vmatprep.mubr.msk.f32.mxu0 %vm5021_vm4, %v14427_v44  ;;  %v15957_v44 = vld [vmem:[#allocation21_spill] sm:$0xff] }
 0x5b7   : > { %11912 = vmatmul.mubr.msk.f32.gmra.mrb[34].mxu0 %vm5021_vm4, %v14436_v38  ;;  %v15958_v38 = vld [vmem:[#allocation22_spill] sm:$0xff] }
 0x5b8   : > { %11914 = vmatprep.mubr.msk.f32.mxu0 %vm5021_vm4, %v14443_v43  ;;  %v15959_v43 = vld [vmem:[#allocation23_spill] sm:$0xff] }
 0x5bb   : > { %11915 = vmatmul.mubr.msk.f32.gmra.mrb[36].mxu0 %vm5021_vm4, %v14452_v61  ;;  %v15960_v61 = vld [vmem:[#allocation24_spill] sm:$0xff] }
 0x5bc   : > { %11917 = vmatprep.mubr.msk.f32.mxu0 %vm5021_vm4, %v14458_v0  ;;  %v15961_v0 = vld [vmem:[#allocation25_spill] sm:$0xff] }
 0x5bf   : > { %11918 = vmatmul.mubr.msk.f32.gmra.mrb[38].mxu0 %vm5021_vm4, %v14466_v1  ;;  %v15962_v1 = vld [vmem:[#allocation26_spill] sm:$0xff] }
 0x5c0   : > { %11920 = vmatprep.mubr.msk.f32.mxu0 %vm5021_vm4, %v14471_v36  ;;  %v15963_v36 = vld [vmem:[#allocation27_spill] sm:$0xff] }
 0x5c3   : > { %11921 = vmatmul.mubr.msk.f32.gmra.mrb[40].mxu0 %vm5021_vm4, %v14478_v18  ;;  %v15964_v18 = vld [vmem:[#allocation28_spill] sm:$0xff] }
 0x5c4   : > { %11923 = vmatprep.mubr.msk.f32.mxu0 %vm5021_vm4, %v14483_v63  ;;  %v15965_v63 = vld [vmem:[#allocation29_spill] sm:$0xff] }
 0x5c7   : > { %11924 = vmatmul.mubr.msk.f32.gmra.mrb[42].mxu0 %vm5021_vm4, %v14488_v55  ;;  %v15966_v55 = vld [vmem:[#allocation30_spill] sm:$0xff] }
 0x5c8   : > { %11926 = vmatprep.mubr.msk.f32.mxu0 %vm5021_vm4, %v15925_v6 }
 0x5cb   : > { %11927 = vmatmul.mubr.msk.f32.gmra.mrb[44].mxu0 %vm5021_vm4, %v15926_v60 }
 0x5cc   : > { %11929 = vmatprep.mubr.msk.f32.mxu0 %vm5021_vm4, %v14893_v2  ;;  %v15183_v2 = vpop.permute.xlu0 %8731 }
 0x5cf   : > { %11930 = vmatmul.mubr.msk.f32.gmra.mrb[46].mxu0 %vm5021_vm4, %v14897_v31 }
 0x5d0   : > { %11932 = vmatprep.mubr.msk.f32.mxu0 %vm5021_vm4, %v7802_v25 }
 0x5d3   : > { %11933 = vmatmul.mubr.msk.f32.gmra.mrb[48].mxu0 %vm5021_vm4, %v7803_v13 }
 0x5d4   : > { %11937 = vmatprep.mubr.msk.f32.mxu0 %vm5021_vm4, %v15929_v50 }
 0x5d7   : > { %11938 = vmatmul.mubr.msk.f32.vlgmr.msra.gmra.mrb[18].mxu0 %vm5021_vm4, %v15930_v32 }
 0x5d8   : > { %11986 = vmatpush3.msra.mxu0 %v8547_v7  ;;  %11940 = vmatprep.mubr.msk.f32.mxu0 %vm5021_vm4, %v15955_v26 }
 0x5db   : > { %11941 = vmatmul.mubr.msk.f32.gmra.mrb[20].mxu0 %vm5021_vm4, %v15956_v11 }
 0x5dc   : > { %11943 = vmatprep.mubr.msk.f32.mxu0 %vm5021_vm4, %v15957_v44 }
 0x5df   : > { %11944 = vmatmul.mubr.msk.f32.gmra.mrb[22].mxu0 %vm5021_vm4, %v15958_v38 }
 0x5e0   : > { %11946 = vmatprep.mubr.msk.f32.mxu0 %vm5021_vm4, %v15959_v43 }
 0x5e3   : > { %11947 = vmatmul.mubr.msk.f32.gmra.mrb[24].mxu0 %vm5021_vm4, %v15960_v61 }
 0x5e4   : > { %11949 = vmatprep.mubr.msk.f32.mxu0 %vm5021_vm4, %v15961_v0 }
 0x5e7   : > { %11950 = vmatmul.mubr.msk.f32.gmra.mrb[26].mxu0 %vm5021_vm4, %v15962_v1 }
 0x5e8   : > { %11952 = vmatprep.mubr.msk.f32.mxu0 %vm5021_vm4, %v15963_v36 }
 0x5eb   : > { %11953 = vmatmul.mubr.msk.f32.gmra.mrb[28].mxu0 %vm5021_vm4, %v15964_v18 }
 0x5ec   : > { %11955 = vmatprep.mubr.msk.f32.mxu0 %vm5021_vm4, %v15965_v63 }
 0x5ef   : > { %11956 = vmatmul.mubr.msk.f32.gmra.mrb[30].mxu0 %vm5021_vm4, %v15966_v55 }
 0x5f0   : > { %11958 = vmatprep.mubr.msk.f32.mxu0 %vm5021_vm4, %v15967_v35 }
 0x5f3   : > { %11959 = vmatmul.mubr.msk.f32.gmra.mrb[32].mxu0 %vm5021_vm4, %v15944_v42 }
 0x5f4   : > { %11961 = vmatprep.mubr.msk.f32.mxu0 %vm5021_vm4, %v15968_v19 }
 0x5f7   : > { %11962 = vmatmul.mubr.msk.f32.gmra.mrb[34].mxu0 %vm5021_vm4, %v15946_v9 }
 0x5f8   : > { %11964 = vmatprep.mubr.msk.f32.mxu0 %vm5021_vm4, %v15947_v41 }
 0x5fb   : > { %11965 = vmatmul.mubr.msk.f32.gmra.mrb[36].mxu0 %vm5021_vm4, %v15948_v22  ;;  %v15195_v22 = vpop.permute.xlu0 %8741 }
 0x5fc   : > { %11967 = vmatprep.mubr.msk.f32.mxu0 %vm5021_vm4, %v15969_v58 }
 0x5ff   : > { %11968 = vmatmul.mubr.msk.f32.gmra.mrb[38].mxu0 %vm5021_vm4, %v15950_v28  ;;  %v15201_v42 = vpop.permute.xlu0 %8751 }
 0x600   : > { %11970 = vmatprep.mubr.msk.f32.mxu0 %vm5021_vm4, %v15970_v17 }
 0x603   : > { %11971 = vmatmul.mubr.msk.f32.gmra.mrb[40].mxu0 %vm5021_vm4, %v14738_v14  ;;  %v8190_v14 = vld [vmem:[#allocation3 + $0x231] sm:$0xff]  ;;  %v15205_v46 = vpop.permute.xlu0 %8761 }
 0x604   : > { %11973 = vmatprep.mubr.msk.f32.mxu0 %vm5021_vm4, %v15952_v59 }
 0x607   : > { %11974 = vmatmul.mubr.msk.f32.gmra.mrb[42].mxu0 %vm5021_vm4, %v14746_v48  ;;  %v15972_v48 = vld [vmem:[#allocation7_spill] sm:$0xff]  ;;  %v15209_v62 = vpop.permute.xlu0 %8771 }
 0x608   : > { %11976 = vmatprep.mubr.msk.f32.mxu0 %vm5021_vm4, %v15971_v20  ;;  %v8546_v5 = vmul.f32 %v15972_v48, %v15972_v48  ;;  %15974 = vst [vmem:[#allocation10_spill] sm:$0xff] %v15209_v62  ;;  %v9060_v48 = vld [vmem:[%s15681_s17] sm:$0x1] }
 0x60b   : > { %11977 = vmatmul.mubr.msk.f32.gmra.mrb[44].mxu0 %vm5021_vm4, %v14754_v39 }
 0x60c   : > { %11979 = vmatprep.mubr.msk.f32.mxu0 %vm5021_vm4, %v14964_v33  ;;  %v15197_v33 = vpop.permute.xlu1 %8746 }
 0x60f   : > { %11980 = vmatmul.mubr.msk.f32.gmra.mrb[46].mxu0 %vm5021_vm4, %v14968_v45 }
 0x610   : > { %11982 = vmatprep.mubr.msk.f32.mxu0 %vm5021_vm4, %v8189_v37  ;;  %v15203_v9 = vpop.permute.xlu1 %8756 }
 0x613   : > { %11983 = vmatmul.mubr.msk.f32.gmra.mrb[48].mxu0 %vm5021_vm4, %v8190_v14 }
 0x614   : > { %11987 = vmatprep.mubr.msk.f32.mxu0 %vm12614_vm0, %v15954_v30  ;;  %v15207_v51 = vpop.permute.xlu1 %8766  ;;  %v15213_v30 = vpop.permute.xlu0 %8781 }
 0x615   : > { %15973 = vst [vmem:[#allocation13_spill] sm:$0xff] %v15207_v51  ;;  %15976 = vst [vmem:[#allocation40_spill] sm:$0xff] %v15213_v30 }
 0x617   : > { %11988 = vmatmul.mubr.msk.f32.vlgmr.msra.gmra.mrb[50].mxu0 %vm5021_vm4, %v8546_v5 }
 0x618   : > { %v15211_v8 = vpop.permute.xlu1 %8776  ;;  %v15217_v10 = vpop.permute.xlu0 %8791 }
 0x619   : > { %15975 = vst [vmem:[#allocation11_spill] sm:$0xff] %v15211_v8  ;;  %15978 = vst [vmem:[#allocation42_spill] sm:$0xff] %v15217_v10 }
 0x61c   : > { %v15215_v49 = vpop.permute.xlu1 %8786  ;;  %v15221_v13 = vpop.permute.xlu0 %8801 }
 0x61d   : > { %15977 = vst [vmem:[#allocation41_spill] sm:$0xff] %v15215_v49  ;;  %15980 = vst [vmem:[#allocation44_spill] sm:$0xff] %v15221_v13 }
 0x620   : > { %v15219_v24 = vpop.permute.xlu1 %8796  ;;  %v15225_v44 = vpop.permute.xlu0 %8811 }
 0x621   : > { %15979 = vst [vmem:[#allocation43_spill] sm:$0xff] %v15219_v24  ;;  %15982 = vst [vmem:[#allocation46_spill] sm:$0xff] %v15225_v44 }
 0x624   : > { %v15223_v7 = vpop.permute.xlu1 %8806  ;;  %v15229_v36 = vpop.permute.xlu0 %8821 }
 0x625   : > { %15981 = vst [vmem:[#allocation45_spill] sm:$0xff] %v15223_v7  ;;  %15984 = vst [vmem:[#allocation48_spill] sm:$0xff] %v15229_v36 }
 0x628   : > { %v15227_v43 = vpop.permute.xlu1 %8816  ;;  %v15233_v35 = vpop.permute.xlu0 %8831 }
 0x629   : > { %15983 = vst [vmem:[#allocation47_spill] sm:$0xff] %v15227_v43  ;;  %15986 = vst [vmem:[#allocation14_spill] sm:$0xff] %v15233_v35  ;;  %v15992_v35 = vld [vmem:[#allocation6_spill] sm:$0xff] }
 0x62c   : > { %v15231_v18 = vpop.permute.xlu1 %8826  ;;  %v15237_v37 = vpop.permute.xlu0 %8841 }
 0x62d   : > { %15985 = vst [vmem:[#allocation8_spill] sm:$0xff] %v15231_v18  ;;  %15988 = vst [vmem:[#allocation16_spill] sm:$0xff] %v15237_v37 }
 0x630   : > { %v15235_v58 = vpop.permute.xlu1 %8836  ;;  %v15244_v56 = vpop.permute.xlu0 %8851 }
 0x631   : > { %15987 = vst [vmem:[#allocation15_spill] sm:$0xff] %v15235_v58  ;;  %15990 = vst [vmem:[#allocation18_spill] sm:$0xff] %v15244_v56 }
 0x634   : > { %v15239_v14 = vpop.permute.xlu1 %8846 }
 0x635   : > { %15989 = vst [vmem:[#allocation17_spill] sm:$0xff] %v15239_v14 }
 0x63b   : > { %v15174_v39 = vpop.f32.mrb[32].mxu1 }
 0x63c   : > { %v12000_v40 = vpop.f32.mrb[33].mxu1  ;;  %v9128_v58 = vadd.f32 %v15174_v39, %v9060_v48  ;;  %v8862_v39 = vpop.permute.xlu0 %8861 }
 0x63d   : > { %v15246_v40 = vpop.permute.xlu1 %8856 }
 0x63e   : > { %15991 = vst [vmem:[#allocation32_spill] sm:$0xff] %v15246_v40 }
 0x641   : > { %v8867_v48 = vpop.permute.xlu1 %8866 }
 0x6aa   : > { %v15179_v6 = vpop.f32.mrb[18].mxu0 }
 0x6ab   : > { %v15181_v60 = vpop.f32.mrb[19].mxu0 }
 0x6ae   : > { %v15185_v31 = vpop.f32.mrb[20].mxu0 }
 0x6af   : > { %v15189_v50 = vpop.f32.mrb[21].mxu0 }
 0x6b2   : > { %v15191_v32 = vpop.f32.mrb[22].mxu0 }
 0x6b3   : > { %v15193_v41 = vpop.f32.mrb[23].mxu0 }
 0x6b6   : > { %v15199_v28 = vpop.f32.mrb[24].mxu0 }
 0x6b7   : > { %v8385_v45 = vpop.f32.mrb[25].mxu0 }
 0x6ba   : > { %v11951_v59 = vpop.f32.mrb[26].mxu0 }
 0x6bb   : > { %v8395_v15 = vpop.f32.mrb[27].mxu0 }
 0x6be   : > { %v11954_v16 = vpop.f32.mrb[28].mxu0 }
 0x6bf   : > { %v8405_v23 = vpop.f32.mrb[29].mxu0 }
 0x6c2   : > { %v11957_v3 = vpop.f32.mrb[30].mxu0 }
 0x6c3   : > { %v8415_v27 = vpop.f32.mrb[31].mxu0 }
 0x6c6   : > { %v11960_v54 = vpop.f32.mrb[32].mxu0 }
 0x6c7   : > { %v8425_v57 = vpop.f32.mrb[33].mxu0 }
 0x6ca   : > { %v11963_v29 = vpop.f32.mrb[34].mxu0 }
 0x6cb   : > { %v8435_v12 = vpop.f32.mrb[35].mxu0 }
 0x6ce   : > { %v11966_v47 = vpop.f32.mrb[36].mxu0 }
 0x6cf   : > { %v8445_v4 = vpop.f32.mrb[37].mxu0 }
 0x6d2   : > { %v11969_v21 = vpop.f32.mrb[38].mxu0 }
 0x6d3   : > { %v8455_v52 = vpop.f32.mrb[39].mxu0 }
 0x6d6   : > { %v11972_v53 = vpop.f32.mrb[40].mxu0 }
 0x6d7   : > { %v8465_v25 = vpop.f32.mrb[41].mxu0 }
 0x6da   : > { %v11975_v26 = vpop.f32.mrb[42].mxu0 }
 0x6db   : > { %v8475_v11 = vpop.f32.mrb[43].mxu0 }
 0x6de   : > { %v11978_v38 = vpop.f32.mrb[44].mxu0 }
 0x6df   : > { %v8485_v61 = vpop.f32.mrb[45].mxu0 }
 0x6e2   : > { %v11981_v0 = vpop.f32.mrb[46].mxu0 }
 0x6e3   : > { %v8495_v1 = vpop.f32.mrb[47].mxu0 }
 0x6e6   : > { %v11984_v63 = vpop.f32.mrb[48].mxu0 }
 0x6e7   : > { %v8505_v55 = vpop.f32.mrb[49].mxu0 }
 0x6ea   : > { %v8617_v19 = vpop.f32.mrb[50].mxu0 }
 0x6eb   : > { %v8618_v17 = vadd.f32 1e-08, %v8617_v19  ;;  %v11989_v20 = vpop.f32.mrb[51].mxu0 }
 0x6ed   : > { %12599 = vrsqrt.f32 %v8618_v17 }
 0x6f7   : > { %v12600_v5 = vpop.eup %12599 }
 0x6f8   : > { %v8625_v18 = vrot.slane %v12600_v5, %v15992_v35 }
 0x6fa   : > { %v8626_v19 = vmul.f32 %v8625_v18, %v15181_v60  ;;  %v8627_v17 = vmul.f32 %v15179_v6, %v8625_v18  ;;  %v8628_v20 = vmul.f32 %v8625_v18, %v15189_v50  ;;  %v8629_v14 = vmul.f32 %v15185_v31, %v8625_v18 }
 0x6fb   : > { %v8630_v37 = vmul.f32 %v8625_v18, %v15193_v41  ;;  %v8631_v36 = vmul.f32 %v15191_v32, %v8625_v18  ;;  %v8632_v43 = vmul.f32 %v8625_v18, %v8385_v45  ;;  %v8633_v56 = vmul.f32 %v15199_v28, %v8625_v18 }
 0x6fc   : > { %v8634_v40 = vmul.f32 %v8625_v18, %v8395_v15  ;;  %v8635_v44 = vmul.f32 %v11951_v59, %v8625_v18  ;;  %v8636_v5 = vmul.f32 %v8625_v18, %v8405_v23  ;;  %v8637_v7 = vmul.f32 %v11954_v16, %v8625_v18 }
 0x6fd   : > { %v8638_v60 = vmul.f32 %v8625_v18, %v8415_v27  ;;  %v8639_v13 = vmul.f32 %v11957_v3, %v8625_v18  ;;  %v8640_v6 = vmul.f32 %v8625_v18, %v8425_v57  ;;  %v8641_v24 = vmul.f32 %v11960_v54, %v8625_v18  ;;  %v8872_v57 = vpop.permute.xlu0 %8871 }
 0x6fe   : > { %v8642_v50 = vmul.f32 %v8625_v18, %v8435_v12  ;;  %v8643_v10 = vmul.f32 %v11963_v29, %v8625_v18  ;;  %v8644_v31 = vmul.f32 %v8625_v18, %v8445_v4  ;;  %v8645_v49 = vmul.f32 %v11966_v47, %v8625_v18  ;;  %v8877_v29 = vpop.permute.xlu1 %8876 }
 0x6ff   : > { %v8646_v41 = vmul.f32 %v8625_v18, %v8455_v52  ;;  %v8647_v30 = vmul.f32 %v11969_v21, %v8625_v18  ;;  %v8648_v32 = vmul.f32 %v8625_v18, %v8465_v25  ;;  %v8649_v45 = vmul.f32 %v11972_v53, %v8625_v18  ;;  %v15993_v53 = vld [vmem:[#allocation13_spill] sm:$0xff] }
 0x700   : > { %v8650_v8 = vmul.f32 %v8625_v18, %v8475_v11  ;;  %v8651_v28 = vmul.f32 %v11975_v26, %v8625_v18  ;;  %v8652_v15 = vmul.f32 %v8625_v18, %v8485_v61  ;;  %v8653_v59 = vmul.f32 %v11978_v38, %v8625_v18  ;;  %v15996_v38 = vld [vmem:[#allocation40_spill] sm:$0xff] }
 0x701   : > { %v8654_v23 = vmul.f32 %v8625_v18, %v8495_v1  ;;  %v8655_v16 = vmul.f32 %v11981_v0, %v8625_v18  ;;  %v8656_v62 = vmul.f32 %v8625_v18, %v8505_v55  ;;  %v8657_v51 = vmul.f32 %v11984_v63, %v8625_v18  ;;  %v15997_v0 = vld [vmem:[#allocation41_spill] sm:$0xff]  ;;  %v15998_v18 = vld [vmem:[#allocation42_spill] sm:$0xff]  ;;  %v15999_v63 = vld [vmem:[#allocation43_spill] sm:$0xff] }
 0x702   : > { %v8889_v3 = vadd.f32 %v15183_v2, %v8626_v19  ;;  %v8890_v27 = vadd.f32 %v15187_v34, %v8627_v17  ;;  %v15260_v54 = vrot.slane %v9128_v58, %v15992_v35  ;;  %v8891_v12 = vadd.f32 %v15195_v22, %v8628_v20  ;;  %v15994_v2 = vld [vmem:[#allocation10_spill] sm:$0xff]  ;;  %v15995_v34 = vld [vmem:[#allocation11_spill] sm:$0xff]  ;;  %v16000_v55 = vld [vmem:[#allocation44_spill] sm:$0xff] }
 0x703   : > { %v8892_v47 = vadd.f32 %v15197_v33, %v8629_v14  ;;  %v8893_v4 = vadd.f32 %v15201_v42, %v8630_v37  ;;  %v8894_v21 = vadd.f32 %v15203_v9, %v8631_v36  ;;  %v8895_v52 = vadd.f32 %v15205_v46, %v8632_v43  ;;  %v16001_v35 = vld [vmem:[#allocation45_spill] sm:$0xff]  ;;  %v16002_v36 = vld [vmem:[#allocation46_spill] sm:$0xff]  ;;  %v16003_v43 = vld [vmem:[#allocation47_spill] sm:$0xff] }
 0x704   : > { %v8896_v25 = vadd.f32 %v15993_v53, %v8633_v56  ;;  %v8897_v26 = vadd.f32 %v15994_v2, %v8634_v40  ;;  %v8898_v11 = vadd.f32 %v15995_v34, %v8635_v44  ;;  %v8899_v61 = vadd.f32 %v15996_v38, %v8636_v5  ;;  %v10370_v44 = vld [vmem:[%s15679_s15] ss:$0 sm:$0xff]  ;;  %v16004_v37 = vld [vmem:[#allocation48_spill] sm:$0xff]  ;;  %v16006_v40 = vld [vmem:[#allocation14_spill] sm:$0xff]  ;;  %v8882_v2 = vpop.permute.xlu0 %8881  ;;  %v8887_v34 = vpop.permute.xlu1 %8886 }
 0x705   : > { %v8900_v1 = vadd.f32 %v15997_v0, %v8637_v7  ;;  %v8901_v22 = vadd.f32 %v15998_v18, %v8638_v60  ;;  %v8902_v33 = vadd.f32 %v15999_v63, %v8639_v13  ;;  %v8903_v42 = vadd.f32 %v16000_v55, %v8640_v6  ;;  %v16005_v56 = vld [vmem:[#allocation8_spill] sm:$0xff]  ;;  %v16007_v17 = vld [vmem:[#allocation15_spill] sm:$0xff]  ;;  %v16009_v60 = vld [vmem:[#allocation17_spill] sm:$0xff] }
 0x706   : > { %v8904_v9 = vadd.f32 %v16001_v35, %v8641_v24  ;;  %v8905_v46 = vadd.f32 %v16002_v36, %v8642_v50  ;;  %v8906_v58 = vadd.f32 %v16003_v43, %v8643_v10  ;;  %v8907_v14 = vadd.f32 %v16004_v37, %v8644_v31  ;;  %v16008_v20 = vld [vmem:[#allocation16_spill] sm:$0xff]  ;;  %v16010_v6 = vld [vmem:[#allocation18_spill] sm:$0xff] }
 0x707   : > { %v8908_v7 = vadd.f32 %v16005_v56, %v8645_v49  ;;  %v8909_v19 = vadd.f32 %v16006_v40, %v8646_v41  ;;  %v8910_v13 = vadd.f32 %v16007_v17, %v8647_v30  ;;  %v8911_v5 = vadd.f32 %v16008_v20, %v8648_v32  ;;  %v16011_v53 = vld [vmem:[#allocation32_spill] sm:$0xff] }
 0x708   : > { %v8912_v24 = vadd.f32 %v16009_v60, %v8649_v45  ;;  %v8913_v50 = vadd.f32 %v16010_v6, %v8650_v8  ;;  %v8914_v10 = vadd.f32 %v16011_v53, %v8651_v28  ;;  %v8915_v38 = vadd.f32 %v8862_v39, %v8652_v15 }
 0x709   : > { %v8916_v0 = vadd.f32 %v8867_v48, %v8653_v59  ;;  %v8917_v18 = vadd.f32 %v8872_v57, %v8654_v23  ;;  %v8918_v31 = vadd.f32 %v8877_v29, %v8655_v16  ;;  %v8919_v63 = vadd.f32 %v8882_v2, %v8656_v62 }
 0x70a   : > { %v8920_v49 = vadd.f32 %v8887_v34, %v8657_v51  ;;  %v8928_v55 = vadd.f32 %v10370_v44, %v8889_v3  ;;  %v8929_v41 = vadd.f32 %v10370_v44, %v8890_v27  ;;  %v8930_v35 = vadd.f32 %v10370_v44, %v8891_v12 }
 0x70b   : > { %v8931_v30 = vadd.f32 %v10370_v44, %v8892_v47  ;;  %v8932_v36 = vadd.f32 %v10370_v44, %v8893_v4  ;;  %v8933_v32 = vadd.f32 %v10370_v44, %v8894_v21  ;;  %v15289_v43 = vadd.f32 %v10370_v44, %v8895_v52 }
 0x70c   : > { %v15291_v45 = vadd.f32 %v10370_v44, %v8896_v25  ;;  %v15293_v8 = vadd.f32 %v10370_v44, %v8897_v26  ;;  %v15295_v28 = vadd.f32 %v10370_v44, %v8898_v11  ;;  %v15297_v39 = vadd.f32 %v10370_v44, %v8899_v61 }
 0x70d   : > { %v15299_v48 = vadd.f32 %v10370_v44, %v8900_v1  ;;  %v15301_v62 = vadd.f32 %v10370_v44, %v8901_v22  ;;  %v15303_v51 = vadd.f32 %v10370_v44, %v8902_v33  ;;  %v15305_v15 = vadd.f32 %v10370_v44, %v8903_v42 }
 0x70e   : > { %v15307_v59 = vadd.f32 %v10370_v44, %v8904_v9  ;;  %v15309_v23 = vadd.f32 %v10370_v44, %v8905_v46  ;;  %v15311_v16 = vadd.f32 %v10370_v44, %v8906_v58  ;;  %v15313_v3 = vadd.f32 %v10370_v44, %v8907_v14 }
 0x70f   : > { %v15315_v27 = vadd.f32 %v10370_v44, %v8908_v7  ;;  %v15317_v57 = vadd.f32 %v10370_v44, %v8909_v19  ;;  %v15319_v29 = vadd.f32 %v10370_v44, %v8910_v13  ;;  %v15321_v12 = vadd.f32 %v10370_v44, %v8911_v5 }
 0x710   : > { %v15323_v47 = vadd.f32 %v10370_v44, %v8912_v24  ;;  %v15325_v4 = vadd.f32 %v10370_v44, %v8913_v50  ;;  %v15327_v21 = vadd.f32 %v10370_v44, %v8914_v10  ;;  %v15329_v52 = vadd.f32 %v10370_v44, %v8915_v38 }
 0x711   : > { %v15331_v25 = vadd.f32 %v10370_v44, %v8916_v0  ;;  %v15333_v26 = vadd.f32 %v10370_v44, %v8917_v18  ;;  %v15335_v11 = vadd.f32 %v10370_v44, %v8918_v31  ;;  %v15337_v61 = vadd.f32 %v10370_v44, %v8919_v63 }
 0x712   : > { %v8960_v1 = vmul.f32 0.2, %v8928_v55  ;;  %v8961_v22 = vmul.f32 0.2, %v8929_v41  ;;  %v8962_v33 = vmul.f32 0.2, %v8930_v35  ;;  %v15345_v42 = vadd.f32 %v10370_v44, %v8920_v49 }
 0x713   : > { %v8963_v9 = vmul.f32 0.2, %v8931_v30  ;;  %v8964_v46 = vmul.f32 0.2, %v8932_v36  ;;  %v8965_v58 = vmul.f32 0.2, %v8933_v32 }
 0x714   : > { %v8966_v37 = vmul.f32 0.2, %v15289_v43  ;;  %v8967_v14 = vmul.f32 0.2, %v15291_v45  ;;  %v8968_v56 = vmul.f32 0.2, %v15293_v8  ;;  %v15350_v7 = vmax.f32 %v8928_v55, %v8960_v1 }
 0x715   : > { %v8969_v40 = vmul.f32 0.2, %v15295_v28  ;;  %v8970_v19 = vmul.f32 0.2, %v15297_v39  ;;  %v8971_v44 = vmul.f32 0.2, %v15299_v48  ;;  %v15355_v17 = vmax.f32 %v8929_v41, %v8961_v22 }
 0x716   : > { %v8972_v13 = vmul.f32 0.2, %v15301_v62  ;;  %v8973_v20 = vmul.f32 0.2, %v15303_v51  ;;  %v8974_v5 = vmul.f32 0.2, %v15305_v15  ;;  %v15360_v60 = vmax.f32 %v8930_v35, %v8962_v33 }
 0x717   : > { %9024 = vst.msk [vmem:[%s15343_s8] sm:$0xff] %vm5021_vm4, %v15350_v7  ;;  %v8975_v24 = vmul.f32 0.2, %v15307_v59  ;;  %v8976_v6 = vmul.f32 0.2, %v15309_v23  ;;  %v15368_v53 = vmax.f32 %v8931_v30, %v8963_v9  ;;  %9025 = vst.msk [vmem:[%s15343_s8 + $0x8] sm:$0xff] %vm5021_vm4, %v15355_v17  ;;  %v15376_v38 = vmax.f32 %v8932_v36, %v8964_v46 }
 0x718   : > { %v8977_v50 = vmul.f32 0.2, %v15311_v16  ;;  %v8978_v10 = vmul.f32 0.2, %v15313_v3  ;;  %v8979_v2 = vmul.f32 0.2, %v15315_v27  ;;  %v15384_v63 = vmax.f32 %v8933_v32, %v8965_v58 }
 0x719   : > { %v8980_v34 = vmul.f32 0.2, %v15317_v57  ;;  %9026 = vst.msk [vmem:[%s15343_s8 + $0x10] sm:$0xff] %vm5021_vm4, %v15360_v60  ;;  %v8981_v0 = vmul.f32 0.2, %v15319_v29  ;;  %9027 = vst.msk [vmem:[%s15343_s8 + $0x18] sm:$0xff] %vm5021_vm4, %v15368_v53  ;;  %v15393_v35 = vmax.f32 %v15289_v43, %v8966_v37  ;;  %v8999_v1 = vmax.f32 %v15291_v45, %v8967_v14 }
 0x71a   : > { %v8982_v18 = vmul.f32 0.2, %v15321_v12  ;;  %v8983_v31 = vmul.f32 0.2, %v15323_v47  ;;  %v8984_v49 = vmul.f32 0.2, %v15325_v4  ;;  %v9000_v33 = vmax.f32 %v15293_v8, %v8968_v56 }
 0x71b   : > { %v8985_v55 = vmul.f32 0.2, %v15327_v21  ;;  %v8986_v41 = vmul.f32 0.2, %v15329_v52  ;;  %9028 = vst.msk [vmem:[%s15343_s8 + $0x20] sm:$0xff] %vm5021_vm4, %v15376_v38  ;;  %9029 = vst.msk [vmem:[%s15343_s8 + $0x28] sm:$0xff] %vm5021_vm4, %v15384_v63  ;;  %v9001_v9 = vmax.f32 %v15295_v28, %v8969_v40  ;;  %v9002_v46 = vmax.f32 %v15297_v39, %v8970_v19 }
 0x71c   : > { %v8987_v30 = vmul.f32 0.2, %v15331_v25  ;;  %v8988_v36 = vmul.f32 0.2, %v15333_v26  ;;  %v8989_v32 = vmul.f32 0.2, %v15335_v11  ;;  %v9003_v45 = vmax.f32 %v15299_v48, %v8971_v44 }
 0x71d   : > { %v8990_v43 = vmul.f32 0.2, %v15337_v61  ;;  %v8991_v22 = vmul.f32 0.2, %v15345_v42  ;;  %9030 = vst.msk [vmem:[%s15343_s8 + $0x30] sm:$0xff] %vm5021_vm4, %v15393_v35  ;;  %v9004_v58 = vmax.f32 %v15301_v62, %v8972_v13  ;;  %v9005_v37 = vmax.f32 %v15303_v51, %v8973_v20  ;;  %9031 = vst.msk [vmem:[%s15343_s8 + $0x38] sm:$0xff] %vm5021_vm4, %v8999_v1 }
 0x71e   : > { %v9006_v8 = vmax.f32 %v15305_v15, %v8974_v5  ;;  %v9007_v28 = vmax.f32 %v15307_v59, %v8975_v24  ;;  %v9008_v14 = vmax.f32 %v15309_v23, %v8976_v6  ;;  %v9009_v39 = vmax.f32 %v15311_v16, %v8977_v50  ;;  %9032 = vst.msk [vmem:[%s15343_s8 + $0x40] sm:$0xff] %vm5021_vm4, %v9000_v33 }
 0x71f   : > { %9033 = vst.msk [vmem:[%s15343_s8 + $0x48] sm:$0xff] %vm5021_vm4, %v9001_v9  ;;  %v9010_v48 = vmax.f32 %v15313_v3, %v8978_v10  ;;  %v9011_v62 = vmax.f32 %v15315_v27, %v8979_v2  ;;  %v9012_v51 = vmax.f32 %v15317_v57, %v8980_v34  ;;  %v9013_v15 = vmax.f32 %v15319_v29, %v8981_v0 }
 0x720   : > { %9034 = vst.msk [vmem:[%s15343_s8 + $0x50] sm:$0xff] %vm5021_vm4, %v9002_v46  ;;  %9035 = vst.msk [vmem:[%s15343_s8 + $0x58] sm:$0xff] %vm5021_vm4, %v9003_v45  ;;  %v9014_v59 = vmax.f32 %v15321_v12, %v8982_v18  ;;  %v9015_v23 = vmax.f32 %v15323_v47, %v8983_v31  ;;  %v9016_v16 = vmax.f32 %v15325_v4, %v8984_v49 }
 0x721   : > { %9036 = vst.msk [vmem:[%s15343_s8 + $0x60] sm:$0xff] %vm5021_vm4, %v9004_v58  ;;  %9037 = vst.msk [vmem:[%s15343_s8 + $0x68] sm:$0xff] %vm5021_vm4, %v9005_v37  ;;  %v9017_v3 = vmax.f32 %v15327_v21, %v8985_v55  ;;  %v9018_v27 = vmax.f32 %v15329_v52, %v8986_v41  ;;  %v9019_v57 = vmax.f32 %v15331_v25, %v8987_v30 }
 0x722   : > { %9038 = vst.msk [vmem:[%s15343_s8 + $0x70] sm:$0xff] %vm5021_vm4, %v9006_v8  ;;  %9039 = vst.msk [vmem:[%s15343_s8 + $0x78] sm:$0xff] %vm5021_vm4, %v9007_v28  ;;  %v9020_v29 = vmax.f32 %v15333_v26, %v8988_v36  ;;  %v9021_v12 = vmax.f32 %v15335_v11, %v8989_v32  ;;  %v9022_v47 = vmax.f32 %v15337_v61, %v8990_v43 }
 0x723   : > { %9040 = vst.msk [vmem:[%s15343_s8 + $0x80] sm:$0xff] %vm5021_vm4, %v9008_v14  ;;  %9041 = vst.msk [vmem:[%s15343_s8 + $0x88] sm:$0xff] %vm5021_vm4, %v9009_v39  ;;  %v9023_v4 = vmax.f32 %v15345_v42, %v8991_v22  ;;  %v9136_v21 = vmul.f32 %v15260_v54, %v15355_v17  ;;  %v9135_v52 = vmul.f32 %v15260_v54, %v15350_v7 }
 0x724   : > { %9042 = vst.msk [vmem:[%s15343_s8 + $0x90] sm:$0xff] %vm5021_vm4, %v9010_v48  ;;  %9043 = vst.msk [vmem:[%s15343_s8 + $0x98] sm:$0xff] %vm5021_vm4, %v9011_v62  ;;  %v9137_v25 = vmul.f32 %v15260_v54, %v15360_v60  ;;  %v9138_v26 = vmul.f32 %v15260_v54, %v15368_v53  ;;  %v9139_v11 = vmul.f32 %v15260_v54, %v15376_v38 }
 0x725   : > { %9044 = vst.msk [vmem:[%s15343_s8 + $0xa0] sm:$0xff] %vm5021_vm4, %v9012_v51  ;;  %9045 = vst.msk [vmem:[%s15343_s8 + $0xa8] sm:$0xff] %vm5021_vm4, %v9013_v15  ;;  %v9140_v61 = vmul.f32 %v15260_v54, %v15384_v63  ;;  %12003 = vmatprep.mubr.msk.f32.mxu1 %vm5021_vm4, %v9135_v52  ;;  %v9141_v42 = vmul.f32 %v15260_v54, %v15393_v35  ;;  %v9142_v56 = vmul.f32 %v15260_v54, %v8999_v1 }
 0x726   : > { %9046 = vst.msk [vmem:[%s15343_s8 + $0xb0] sm:$0xff] %vm5021_vm4, %v9014_v59  ;;  %9047 = vst.msk [vmem:[%s15343_s8 + $0xb8] sm:$0xff] %vm5021_vm4, %v9015_v23  ;;  %v9143_v7 = vmul.f32 %v15260_v54, %v9000_v33  ;;  %v9144_v40 = vmul.f32 %v15260_v54, %v9001_v9  ;;  %12004 = vmatmul.mubr.msk.f32.vlgmr.msra.gmra.mrb[34].mxu1 %vm5021_vm4, %v9136_v21  ;;  %v9145_v19 = vmul.f32 %v15260_v54, %v9002_v46 }
 0x727   : > { %9048 = vst.msk [vmem:[%s15343_s8 + $0xc0] sm:$0xff] %vm5021_vm4, %v9016_v16  ;;  %9049 = vst.msk [vmem:[%s15343_s8 + $0xc8] sm:$0xff] %vm5021_vm4, %v9017_v3  ;;  %v9146_v44 = vmul.f32 %v15260_v54, %v9003_v45  ;;  %v9147_v17 = vmul.f32 %v15260_v54, %v9004_v58  ;;  %v9148_v13 = vmul.f32 %v15260_v54, %v9005_v37  ;;  %12006 = vmatprep.mubr.msk.f32.mxu1 %vm5021_vm4, %v9137_v25 }
 0x728   : > { %9050 = vst.msk [vmem:[%s15343_s8 + $0xd0] sm:$0xff] %vm5021_vm4, %v9018_v27  ;;  %9051 = vst.msk [vmem:[%s15343_s8 + $0xd8] sm:$0xff] %vm5021_vm4, %v9019_v57  ;;  %v9149_v20 = vmul.f32 %v15260_v54, %v9006_v8  ;;  %v9150_v5 = vmul.f32 %v15260_v54, %v9007_v28  ;;  %v9151_v60 = vmul.f32 %v15260_v54, %v9008_v14 }
 0x729   : > { %9052 = vst.msk [vmem:[%s15343_s8 + $0xe0] sm:$0xff] %vm5021_vm4, %v9020_v29  ;;  %9053 = vst.msk [vmem:[%s15343_s8 + $0xe8] sm:$0xff] %vm5021_vm4, %v9021_v12  ;;  %v9152_v24 = vmul.f32 %v15260_v54, %v9009_v39  ;;  %v9153_v6 = vmul.f32 %v15260_v54, %v9010_v48  ;;  %v9154_v50 = vmul.f32 %v15260_v54, %v9011_v62 }
 0x72a   : > { %9054 = vst.msk [vmem:[%s15343_s8 + $0xf0] sm:$0xff] %vm5021_vm4, %v9022_v47  ;;  %9055 = vst.msk [vmem:[%s15343_s8 + $0xf8] sm:$0xff] %vm5021_vm4, %v9023_v4  ;;  %v9155_v53 = vmul.f32 %v15260_v54, %v9012_v51  ;;  %v9156_v10 = vmul.f32 %v15260_v54, %v9013_v15  ;;  %v9157_v2 = vmul.f32 %v15260_v54, %v9014_v59  ;;  %12007 = vmatmul.mubr.msk.f32.gmra.mrb[36].mxu1 %vm5021_vm4, %v9138_v26 }
 0x72b   : > { %v9158_v34 = vmul.f32 %v15260_v54, %v9015_v23  ;;  %v9159_v38 = vmul.f32 %v15260_v54, %v9016_v16  ;;  %v9160_v0 = vmul.f32 %v15260_v54, %v9017_v3  ;;  %v9161_v18 = vmul.f32 %v15260_v54, %v9018_v27  ;;  %12009 = vmatprep.mubr.msk.f32.mxu1 %vm5021_vm4, %v9139_v11 }
 0x72c   : > { %v9162_v31 = vmul.f32 %v15260_v54, %v9019_v57  ;;  %v9163_v63 = vmul.f32 %v15260_v54, %v9020_v29  ;;  %v9164_v49 = vmul.f32 %v15260_v54, %v9021_v12  ;;  %v9165_v55 = vmul.f32 %v15260_v54, %v9022_v47 }
 0x72d   : > { %v9166_v41 = vmul.f32 %v15260_v54, %v9023_v4  ;;  %v15558_v54 = vld [vmem:[%s15683_s19] ss:$0 sm:$0xff] }
 0x72e   : > { %12010 = vmatmul.mubr.msk.f32.gmra.mrb[38].mxu1 %vm5021_vm4, %v9140_v61 }
 0x72f   : > { %12012 = vmatprep.mubr.msk.f32.mxu1 %vm5021_vm4, %v9141_v42 }
 0x732   : > { %12013 = vmatmul.mubr.msk.f32.gmra.mrb[40].mxu1 %vm5021_vm4, %v9142_v56 }
 0x733   : > { %12015 = vmatprep.mubr.msk.f32.mxu1 %vm5021_vm4, %v9143_v7 }
 0x736   : > { %12016 = vmatmul.mubr.msk.f32.gmra.mrb[42].mxu1 %vm5021_vm4, %v9144_v40 }
 0x737   : > { %12018 = vmatprep.mubr.msk.f32.mxu1 %vm5021_vm4, %v9145_v19 }
 0x73a   : > { %12019 = vmatmul.mubr.msk.f32.gmra.mrb[44].mxu1 %vm5021_vm4, %v9146_v44 }
 0x73b   : > { %12021 = vmatprep.mubr.msk.f32.mxu1 %vm5021_vm4, %v9147_v17 }
 0x73e   : > { %12022 = vmatmul.mubr.msk.f32.gmra.mrb[46].mxu1 %vm5021_vm4, %v9148_v13 }
 0x73f   : > { %12024 = vmatprep.mubr.msk.f32.mxu1 %vm5021_vm4, %v9149_v20 }
 0x742   : > { %12025 = vmatmul.mubr.msk.f32.gmra.mrb[48].mxu1 %vm5021_vm4, %v9150_v5 }
 0x743   : > { %12027 = vmatprep.mubr.msk.f32.mxu1 %vm5021_vm4, %v9151_v60 }
 0x746   : > { %12028 = vmatmul.mubr.msk.f32.gmra.mrb[50].mxu1 %vm5021_vm4, %v9152_v24 }
 0x747   : > { %12030 = vmatprep.mubr.msk.f32.mxu1 %vm5021_vm4, %v9153_v6 }
 0x74a   : > { %12031 = vmatmul.mubr.msk.f32.gmra.mrb[52].mxu1 %vm5021_vm4, %v9154_v50 }
 0x74b   : > { %12033 = vmatprep.mubr.msk.f32.mxu1 %vm5021_vm4, %v9155_v53 }
 0x74e   : > { %12034 = vmatmul.mubr.msk.f32.gmra.mrb[54].mxu1 %vm5021_vm4, %v9156_v10 }
 0x74f   : > { %12036 = vmatprep.mubr.msk.f32.mxu1 %vm5021_vm4, %v9157_v2 }
 0x752   : > { %12037 = vmatmul.mubr.msk.f32.gmra.mrb[56].mxu1 %vm5021_vm4, %v9158_v34 }
 0x753   : > { %12039 = vmatprep.mubr.msk.f32.mxu1 %vm5021_vm4, %v9159_v38 }
 0x756   : > { %12040 = vmatmul.mubr.msk.f32.gmra.mrb[58].mxu1 %vm5021_vm4, %v9160_v0 }
 0x757   : > { %12042 = vmatprep.mubr.msk.f32.mxu1 %vm5021_vm4, %v9161_v18 }
 0x75a   : > { %12043 = vmatmul.mubr.msk.f32.gmra.mrb[60].mxu1 %vm5021_vm4, %v9162_v31 }
 0x75b   : > { %12045 = vmatprep.mubr.msk.f32.mxu1 %vm5021_vm4, %v9163_v63 }
 0x75e   : > { %12046 = vmatmul.mubr.msk.f32.gmra.mrb[62].mxu1 %vm5021_vm4, %v9164_v49 }
 0x75f   : > { %12048 = vmatprep.mubr.msk.f32.mxu1 %vm5021_vm4, %v9165_v55 }
 0x762   : > { %12049 = vmatmul.mubr.msk.f32.gmra.mrb[64].mxu1 %vm5021_vm4, %v9166_v41 }
 0x7f9   : > { %v12005_v35 = vpop.f32.mrb[34].mxu1 }
 0x7fa   : > { %v9497_v30 = vadd.f32 %v12005_v35, %v15558_v54  ;;  %v9330_v36 = vpop.f32.mrb[35].mxu1 }
 0x7fb   : > { %v9496_v32 = vadd.f32 %v15558_v54, %v9330_v36 }
 0x7fc   : > { %v9529_v1 = vmul.f32 0.2, %v9497_v30 }
 0x7fd   : > { %v9528_v43 = vmul.f32 0.2, %v9496_v32  ;;  %v12008_v22 = vpop.f32.mrb[36].mxu1 }
 0x7fe   : > { %v9561_v33 = vmax.f32 %v9497_v30, %v9529_v1  ;;  %v9499_v9 = vadd.f32 %v12008_v22, %v15558_v54  ;;  %v9340_v46 = vpop.f32.mrb[37].mxu1 }
 0x7ff   : > { %v9560_v45 = vmax.f32 %v9496_v32, %v9528_v43  ;;  %v9498_v58 = vadd.f32 %v15558_v54, %v9340_v46 }
 0x800   : > { %9594 = vst.msk [vmem:[%s15566_s23 + $0x8] sm:$0xff] %vm9592_vm5, %v9561_v33  ;;  %v9531_v37 = vmul.f32 0.2, %v9499_v9 }
 0x801   : > { %9593 = vst.msk [vmem:[%s15566_s23] sm:$0xff] %vm9592_vm5, %v9560_v45  ;;  %v9530_v8 = vmul.f32 0.2, %v9498_v58  ;;  %v12011_v28 = vpop.f32.mrb[38].mxu1 }
 0x802   : > { %v9563_v14 = vmax.f32 %v9499_v9, %v9531_v37  ;;  %v9501_v39 = vadd.f32 %v12011_v28, %v15558_v54  ;;  %v9350_v48 = vpop.f32.mrb[39].mxu1 }
 0x803   : > { %v9562_v62 = vmax.f32 %v9498_v58, %v9530_v8  ;;  %v9500_v51 = vadd.f32 %v15558_v54, %v9350_v48 }
 0x804   : > { %9596 = vst.msk [vmem:[%s15566_s23 + $0x18] sm:$0xff] %vm9592_vm5, %v9563_v14  ;;  %v9533_v15 = vmul.f32 0.2, %v9501_v39 }
 0x805   : > { %9595 = vst.msk [vmem:[%s15566_s23 + $0x10] sm:$0xff] %vm9592_vm5, %v9562_v62  ;;  %v9532_v59 = vmul.f32 0.2, %v9500_v51  ;;  %v12014_v23 = vpop.f32.mrb[40].mxu1 }
 0x806   : > { %v9565_v16 = vmax.f32 %v9501_v39, %v9533_v15  ;;  %v9503_v3 = vadd.f32 %v12014_v23, %v15558_v54  ;;  %v9360_v27 = vpop.f32.mrb[41].mxu1 }
 0x807   : > { %v9564_v57 = vmax.f32 %v9500_v51, %v9532_v59  ;;  %v9502_v29 = vadd.f32 %v15558_v54, %v9360_v27 }
 0x808   : > { %9598 = vst.msk [vmem:[%s15566_s23 + $0x28] sm:$0xff] %vm9592_vm5, %v9565_v16  ;;  %v9535_v12 = vmul.f32 0.2, %v9503_v3 }
 0x809   : > { %9597 = vst.msk [vmem:[%s15566_s23 + $0x20] sm:$0xff] %vm9592_vm5, %v9564_v57  ;;  %v9534_v47 = vmul.f32 0.2, %v9502_v29  ;;  %v12017_v4 = vpop.f32.mrb[42].mxu1 }
 0x80a   : > { %v9567_v21 = vmax.f32 %v9503_v3, %v9535_v12  ;;  %v9505_v52 = vadd.f32 %v12017_v4, %v15558_v54  ;;  %v9370_v25 = vpop.f32.mrb[43].mxu1 }
 0x80b   : > { %v9566_v26 = vmax.f32 %v9502_v29, %v9534_v47  ;;  %v9504_v11 = vadd.f32 %v15558_v54, %v9370_v25 }
 0x80c   : > { %9600 = vst.msk [vmem:[%s15566_s23 + $0x38] sm:$0xff] %vm9592_vm5, %v9567_v21  ;;  %v9537_v61 = vmul.f32 0.2, %v9505_v52 }
 0x80d   : > { %9599 = vst.msk [vmem:[%s15566_s23 + $0x30] sm:$0xff] %vm9592_vm5, %v9566_v26  ;;  %v9536_v42 = vmul.f32 0.2, %v9504_v11  ;;  %v12020_v56 = vpop.f32.mrb[44].mxu1 }
 0x80e   : > { %v9569_v7 = vmax.f32 %v9505_v52, %v9537_v61  ;;  %v9507_v40 = vadd.f32 %v12020_v56, %v15558_v54  ;;  %v9380_v19 = vpop.f32.mrb[45].mxu1 }
 0x80f   : > { %v9568_v44 = vmax.f32 %v9504_v11, %v9536_v42  ;;  %v9506_v17 = vadd.f32 %v15558_v54, %v9380_v19 }
 0x810   : > { %9602 = vst.msk [vmem:[%s15566_s23 + $0x48] sm:$0xff] %vm9592_vm5, %v9569_v7  ;;  %v9539_v13 = vmul.f32 0.2, %v9507_v40 }
 0x811   : > { %9601 = vst.msk [vmem:[%s15566_s23 + $0x40] sm:$0xff] %vm9592_vm5, %v9568_v44  ;;  %v9538_v20 = vmul.f32 0.2, %v9506_v17  ;;  %v12023_v5 = vpop.f32.mrb[46].mxu1 }
 0x812   : > { %v9571_v60 = vmax.f32 %v9507_v40, %v9539_v13  ;;  %v9509_v24 = vadd.f32 %v12023_v5, %v15558_v54  ;;  %v9390_v6 = vpop.f32.mrb[47].mxu1 }
 0x813   : > { %v9570_v50 = vmax.f32 %v9506_v17, %v9538_v20  ;;  %v9508_v53 = vadd.f32 %v15558_v54, %v9390_v6 }
 0x814   : > { %9604 = vst.msk [vmem:[%s15566_s23 + $0x58] sm:$0xff] %vm9592_vm5, %v9571_v60  ;;  %v9541_v10 = vmul.f32 0.2, %v9509_v24 }
 0x815   : > { %9603 = vst.msk [vmem:[%s15566_s23 + $0x50] sm:$0xff] %vm9592_vm5, %v9570_v50  ;;  %v9540_v2 = vmul.f32 0.2, %v9508_v53  ;;  %v12026_v34 = vpop.f32.mrb[48].mxu1 }
 0x816   : > { %v9573_v38 = vmax.f32 %v9509_v24, %v9541_v10  ;;  %v9511_v0 = vadd.f32 %v12026_v34, %v15558_v54  ;;  %v9400_v18 = vpop.f32.mrb[49].mxu1 }
 0x817   : > { %v9572_v31 = vmax.f32 %v9508_v53, %v9540_v2  ;;  %v9510_v63 = vadd.f32 %v15558_v54, %v9400_v18 }
 0x818   : > { %9606 = vst.msk [vmem:[%s15566_s23 + $0x68] sm:$0xff] %vm9592_vm5, %v9573_v38  ;;  %v9543_v49 = vmul.f32 0.2, %v9511_v0 }
 0x819   : > { %9605 = vst.msk [vmem:[%s15566_s23 + $0x60] sm:$0xff] %vm9592_vm5, %v9572_v31  ;;  %v9542_v55 = vmul.f32 0.2, %v9510_v63  ;;  %v12029_v41 = vpop.f32.mrb[50].mxu1 }
 0x81a   : > { %v9575_v35 = vmax.f32 %v9511_v0, %v9543_v49  ;;  %v9513_v30 = vadd.f32 %v12029_v41, %v15558_v54  ;;  %v9410_v36 = vpop.f32.mrb[51].mxu1 }
 0x81b   : > { %v9574_v32 = vmax.f32 %v9510_v63, %v9542_v55  ;;  %v9512_v1 = vadd.f32 %v15558_v54, %v9410_v36 }
 0x81c   : > { %9608 = vst.msk [vmem:[%s15566_s23 + $0x78] sm:$0xff] %vm9592_vm5, %v9575_v35  ;;  %v9545_v43 = vmul.f32 0.2, %v9513_v30 }
 0x81d   : > { %9607 = vst.msk [vmem:[%s15566_s23 + $0x70] sm:$0xff] %vm9592_vm5, %v9574_v32  ;;  %v9544_v22 = vmul.f32 0.2, %v9512_v1  ;;  %v12032_v33 = vpop.f32.mrb[52].mxu1 }
 0x81e   : > { %v9577_v9 = vmax.f32 %v9513_v30, %v9545_v43  ;;  %v9515_v46 = vadd.f32 %v12032_v33, %v15558_v54  ;;  %v9420_v45 = vpop.f32.mrb[53].mxu1 }
 0x81f   : > { %v9576_v58 = vmax.f32 %v9512_v1, %v9544_v22  ;;  %v9514_v37 = vadd.f32 %v15558_v54, %v9420_v45 }
 0x820   : > { %9610 = vst.msk [vmem:[%s15566_s23 + $0x88] sm:$0xff] %vm9592_vm5, %v9577_v9  ;;  %v9547_v8 = vmul.f32 0.2, %v9515_v46 }
 0x821   : > { %9609 = vst.msk [vmem:[%s15566_s23 + $0x80] sm:$0xff] %vm9592_vm5, %v9576_v58  ;;  %v9546_v28 = vmul.f32 0.2, %v9514_v37  ;;  %v12035_v14 = vpop.f32.mrb[54].mxu1 }
 0x822   : > { %v9579_v39 = vmax.f32 %v9515_v46, %v9547_v8  ;;  %v9517_v48 = vadd.f32 %v12035_v14, %v15558_v54  ;;  %v9430_v62 = vpop.f32.mrb[55].mxu1 }
 0x823   : > { %v9578_v51 = vmax.f32 %v9514_v37, %v9546_v28  ;;  %v9516_v15 = vadd.f32 %v15558_v54, %v9430_v62 }
 0x824   : > { %9612 = vst.msk [vmem:[%s15566_s23 + $0x98] sm:$0xff] %vm9592_vm5, %v9579_v39  ;;  %v9549_v59 = vmul.f32 0.2, %v9517_v48 }
 0x825   : > { %9611 = vst.msk [vmem:[%s15566_s23 + $0x90] sm:$0xff] %vm9592_vm5, %v9578_v51  ;;  %v9548_v23 = vmul.f32 0.2, %v9516_v15  ;;  %v12038_v16 = vpop.f32.mrb[56].mxu1 }
 0x826   : > { %v9581_v3 = vmax.f32 %v9517_v48, %v9549_v59  ;;  %v9519_v27 = vadd.f32 %v12038_v16, %v15558_v54  ;;  %v9440_v57 = vpop.f32.mrb[57].mxu1 }
 0x827   : > { %v9580_v29 = vmax.f32 %v9516_v15, %v9548_v23  ;;  %v9518_v12 = vadd.f32 %v15558_v54, %v9440_v57 }
 0x828   : > { %9614 = vst.msk [vmem:[%s15566_s23 + $0xa8] sm:$0xff] %vm9592_vm5, %v9581_v3  ;;  %v9551_v47 = vmul.f32 0.2, %v9519_v27 }
 0x829   : > { %9613 = vst.msk [vmem:[%s15566_s23 + $0xa0] sm:$0xff] %vm9592_vm5, %v9580_v29  ;;  %v9550_v4 = vmul.f32 0.2, %v9518_v12  ;;  %v12041_v21 = vpop.f32.mrb[58].mxu1 }
 0x82a   : > { %v9583_v52 = vmax.f32 %v9519_v27, %v9551_v47  ;;  %v9521_v25 = vadd.f32 %v12041_v21, %v15558_v54  ;;  %v9450_v26 = vpop.f32.mrb[59].mxu1 }
 0x82b   : > { %v9582_v11 = vmax.f32 %v9518_v12, %v9550_v4  ;;  %v9520_v61 = vadd.f32 %v15558_v54, %v9450_v26 }
 0x82c   : > { %9616 = vst.msk [vmem:[%s15566_s23 + $0xb8] sm:$0xff] %vm9592_vm5, %v9583_v52  ;;  %v9553_v42 = vmul.f32 0.2, %v9521_v25 }
 0x82d   : > { %9615 = vst.msk [vmem:[%s15566_s23 + $0xb0] sm:$0xff] %vm9592_vm5, %v9582_v11  ;;  %v9552_v56 = vmul.f32 0.2, %v9520_v61  ;;  %v12044_v7 = vpop.f32.mrb[60].mxu1 }
 0x82e   : > { %v9585_v40 = vmax.f32 %v9521_v25, %v9553_v42  ;;  %v9523_v19 = vadd.f32 %v12044_v7, %v15558_v54  ;;  %v9460_v44 = vpop.f32.mrb[61].mxu1 }
 0x82f   : > { %v9584_v17 = vmax.f32 %v9520_v61, %v9552_v56  ;;  %v9522_v13 = vadd.f32 %v15558_v54, %v9460_v44 }
 0x830   : > { %9618 = vst.msk [vmem:[%s15566_s23 + $0xc8] sm:$0xff] %vm9592_vm5, %v9585_v40  ;;  %v9555_v20 = vmul.f32 0.2, %v9523_v19 }
 0x831   : > { %9617 = vst.msk [vmem:[%s15566_s23 + $0xc0] sm:$0xff] %vm9592_vm5, %v9584_v17  ;;  %v9554_v5 = vmul.f32 0.2, %v9522_v13  ;;  %v12047_v60 = vpop.f32.mrb[62].mxu1 }
 0x832   : > { %v9587_v24 = vmax.f32 %v9523_v19, %v9555_v20  ;;  %v9525_v6 = vadd.f32 %v12047_v60, %v15558_v54  ;;  %v9470_v50 = vpop.f32.mrb[63].mxu1 }
 0x833   : > { %v9586_v53 = vmax.f32 %v9522_v13, %v9554_v5  ;;  %v9524_v10 = vadd.f32 %v15558_v54, %v9470_v50 }
 0x834   : > { %9620 = vst.msk [vmem:[%s15566_s23 + $0xd8] sm:$0xff] %vm9592_vm5, %v9587_v24  ;;  %v9557_v2 = vmul.f32 0.2, %v9525_v6 }
 0x835   : > { %9619 = vst.msk [vmem:[%s15566_s23 + $0xd0] sm:$0xff] %vm9592_vm5, %v9586_v53  ;;  %v9556_v34 = vmul.f32 0.2, %v9524_v10  ;;  %v12050_v38 = vpop.f32.mrb[64].mxu1 }
 0x836   : > { %v9589_v0 = vmax.f32 %v9525_v6, %v9557_v2  ;;  %v9527_v18 = vadd.f32 %v12050_v38, %v15558_v54  ;;  %v9480_v31 = vpop.f32.mrb[65].mxu1 }
 0x837   : > { %v9588_v63 = vmax.f32 %v9524_v10, %v9556_v34  ;;  %v9526_v49 = vadd.f32 %v15558_v54, %v9480_v31 }
 0x838   : > { %9622 = vst.msk [vmem:[%s15566_s23 + $0xe8] sm:$0xff] %vm9592_vm5, %v9589_v0  ;;  %v9559_v55 = vmul.f32 0.2, %v9527_v18 }
 0x839   : > { %9621 = vst.msk [vmem:[%s15566_s23 + $0xe0] sm:$0xff] %vm9592_vm5, %v9588_v63  ;;  %v9558_v41 = vmul.f32 0.2, %v9526_v49 }
 0x83a   : > { %v9591_v35 = vmax.f32 %v9527_v18, %v9559_v55 }
 0x83b   : > { %v9590_v30 = vmax.f32 %v9526_v49, %v9558_v41 }
 0x83c   : > { %9624 = vst.msk [vmem:[%s15566_s23 + $0xf8] sm:$0xff] %vm9592_vm5, %v9591_v35 }
 0x83d   : > { %9623 = vst.msk [vmem:[%s15566_s23 + $0xf0] sm:$0xff] %vm9592_vm5, %v9590_v30 }
 0x83e PF: > { %s36_s3 = sadd.s32 1, %s12611_s3  }
 0x83f   : > { %p33_p4 = scmp.ge.s32.totalorder %s36_s3, 4  }
 0x841   :  { %35 = sbr.rel (!%p33_p4) target bundleno = 7 (0x7), region = 171 }

</bundles_post_ra>
